<compile_context>
chip_gen: v5e
topology: v5e:2x2
jax: 0.10.0
libtpu: 0.0.40
codegen_flags: <defaults>
</compile_context>

<pallas_src>
import functools

import jax
import jax.numpy as jnp
from jax.experimental import pallas as pl
from jax.experimental.pallas import tpu as pltpu

LANE = 128      # vreg lane width    -> channel dims padded to this
SUBLANE = 8     # vreg sublane width -> pooled-graph dim padded to this


def _round_up(x, m):
    return (x + m - 1) // m * m


# ------------------------------- Pallas kernels --------------------------------

def _make_layer_kernel(num_relations, tile_rows, pool):
    """One RGCN layer (+ReLU, optionally + partial global_mean_pool) for one
    destination-row tile.  Grid axis 0 = row-tile index ("parallel")."""
    R, tm = num_relations, tile_rows

    def kernel(a_ref, dinv_ref, xfull_ref, root_ref, w_ref, b_ref, *rest):
        # All source rows, VMEM-resident across the parallel row axis.
        xf = xfull_ref[...]                                        # [Npad, Cpad] f32
        row0 = pl.multiple_of(pl.program_id(0) * tm, tm)
        x_tile = xfull_ref[pl.ds(row0, tm), :]                     # this tile's rows

        # Per-relation mean aggregation: binary bf16 adjacency tile on the MXU
        # (cast to f32 is exact), then the fp32 1/deg_r(i) row scale on the VPU.
        aggs = []
        for r in range(R):
            s = jnp.dot(a_ref[r].astype(jnp.float32), xf,
                        preferred_element_type=jnp.float32)        # [tm, Cpad]
            aggs.append(s * dinv_ref[r])                           # [tm, 1] row scale
        agg_cat = jnp.concatenate(aggs, axis=-1)                   # [tm, R*Cpad]

        # Self/root transform + bias, then ALL relation transforms merged into one
        # MXU matmul with K = R*Cpad (aggregate-then-transform == PyG order, by
        # linearity of W_r).
        acc = jnp.dot(x_tile, root_ref[...], preferred_element_type=jnp.float32)
        acc = acc + b_ref[...]
        acc = acc + jnp.dot(agg_cat, w_ref[...], preferred_element_type=jnp.float32)
        h = jnp.maximum(acc, 0.0)                                  # ReLU every layer

        if pool:
            m_ref, pool_ref = rest
            # Per-tile partial global-mean-pool; each tile owns its output block,
            # so the row axis stays safely "parallel".
            pool_ref[0] = jnp.dot(m_ref[...], h, preferred_element_type=jnp.float32)
        else:
            (out_ref,) = rest
            out_ref[...] = h

    return kernel


# ---------------------------- parameters / packing -----------------------------

def init_graph_encoder_params(key, num_node_types, num_relations, emb_dim=64,
                              hidden=128, num_layers=2):
    # `num_relations` corresponds to the PyTorch module's `num_edges` constructor arg
    # (rel_emb vocab size AND RGCNConv's num_relations).
    num_bases = min(30, num_relations)
    keys = jax.random.split(key, 2 + 4 * num_layers)
    params = {
        "node_emb": jax.random.normal(keys[0], (num_node_types, emb_dim), jnp.float32),
        "rel_emb": jax.random.normal(keys[1], (num_relations, emb_dim), jnp.float32),  # unused in fwd
        "layers": [],
    }
    in_dim = emb_dim
    for l in range(num_layers):
        k0, k1, k2, k3 = keys[2 + 4 * l: 6 + 4 * l]
        scale = 1.0 / jnp.sqrt(jnp.float32(in_dim))
        params["layers"].append(
            {
                "bases": jax.random.normal(k0, (num_bases, in_dim, hidden), jnp.float32) * scale,
                "comp": jax.random.normal(k1, (num_relations, num_bases), jnp.float32),
                "root": jax.random.normal(k2, (in_dim, hidden), jnp.float32) * scale,
                "bias": jax.random.normal(k3, (hidden,), jnp.float32) * 0.01,
            }
        )
        in_dim = hidden
    return params


def pack_graph_encoder_params(params, num_relations):
    """Per-model (NOT per-forward) weight packing: fold the basis decomposition,
    zero-pad channel dims to the lane width, stack relation weights into one
    [R*Cpad, Cpad] MXU operand, and lane-pad the embedding table."""
    emb_dim = params["node_emb"].shape[1]
    hidden = params["layers"][0]["root"].shape[1]
    cpad = _round_up(max(emb_dim, hidden, LANE), LANE)
    node_emb_p = (jnp.zeros((params["node_emb"].shape[0], cpad), jnp.float32)
                  .at[:, :emb_dim].set(params["node_emb"]))
    layers = []
    for layer in params["layers"]:
        cin, cout = layer["root"].shape
        w = jnp.einsum("rb,bio->rio", layer["comp"], layer["bases"])       # [R,Cin,Cout]
        w_vstack = (jnp.zeros((num_relations, cpad, cpad), jnp.float32)
                    .at[:, :cin, :cout].set(w)
                    .reshape(num_relations * cpad, cpad))                  # row block r = W_r
        root_p = jnp.zeros((cpad, cpad), jnp.float32).at[:cin, :cout].set(layer["root"])
        bias_p = jnp.zeros((1, cpad), jnp.float32).at[0, :cout].set(layer["bias"])
        layers.append((w_vstack, root_p, bias_p))
    return {"node_emb": node_emb_p, "layers": tuple(layers)}


# ----------------------------------- forward -----------------------------------

@functools.partial(jax.jit,
                   static_argnames=("num_relations", "num_graphs", "hidden", "tile_rows"))
def graph_encoder_forward(packed, node_ids, edge_index, edge_type, batch,
                          num_relations, num_graphs, hidden, tile_rows=128):
    R = num_relations
    n = node_ids.shape[0]
    cpad = packed["node_emb"].shape[1]
    tm = tile_rows
    npad = _round_up(max(n, tm), tm)
    gpad = _round_up(max(num_graphs, SUBLANE), SUBLANE)
    num_tiles = npad // tm

    # ---- host-side glue (data-dependent gather / scatter) ----
    # TODO(synk): fold the embedding gather into the first layer kernel (one-hot MXU
    # matmul or PrefetchScalarGridSpec row gather) to shave one HBM round trip.
    x = packed["node_emb"][node_ids]                                    # [n, cpad]
    x_full = jnp.zeros((npad, cpad), jnp.float32).at[:n].set(x)

    # Binary per-relation adjacency counts (bf16 = exact small ints) + fp32 1/deg.
    # TODO(synk): for genuinely large sparse graphs switch to an edge-list kernel
    # (sort by (relation, dst), scalar-prefetch segment offsets) instead of dense A.
    src, dst = edge_index[0], edge_index[1]
    counts = jnp.zeros((R, npad, npad), jnp.float32).at[edge_type, dst, src].add(1.0)
    deg_inv = 1.0 / jnp.maximum(counts.sum(axis=2, keepdims=True), 1.0)  # [R,npad,1] f32
    a_bin = counts.astype(jnp.bfloat16)                                  # exact

    # Global-mean-pool matrix (row-normalized one-hot), sublane padded.
    onehot = (batch[None, :] == jnp.arange(num_graphs, dtype=batch.dtype)[:, None]
              ).astype(jnp.float32)
    gcount = jnp.maximum(onehot.sum(axis=1, keepdims=True), 1.0)
    m_mat = jnp.zeros((gpad, npad), jnp.float32).at[:num_graphs, :n].set(onehot / gcount)

    cparams = pltpu.CompilerParams(
        dimension_semantics=("parallel",),        # megacore-shards row tiles on v7x
        vmem_limit_bytes=32 * 1024 * 1024,        # explicit; re-derive when N grows
    )

    in_specs_common = [
        pl.BlockSpec((R, tm, npad), lambda i: (0, i, 0)),   # A row tile (bf16, streamed)
        pl.BlockSpec((R, tm, 1), lambda i: (0, i, 0)),      # 1/deg row tile (f32)
        pl.BlockSpec((npad, cpad), lambda i: (0, 0)),       # x, all rows (VMEM resident)
        pl.BlockSpec((cpad, cpad), lambda i: (0, 0)),       # root
        pl.BlockSpec((R * cpad, cpad), lambda i: (0, 0)),   # stacked relation weights
        pl.BlockSpec((1, cpad), lambda i: (0, 0)),          # bias
    ]

    num_layers = len(packed["layers"])
    pooled_partial = None
    for l, (w_vstack, root_p, bias_p) in enumerate(packed["layers"]):
        last = l == num_layers - 1
        kernel = _make_layer_kernel(R, tm, pool=last)
        if not last:
            x_full = pl.pallas_call(
                kernel,
                grid=(num_tiles,),
                in_specs=in_specs_common,
                out_specs=pl.BlockSpec((tm, cpad), lambda i: (i, 0)),
                out_shape=jax.ShapeDtypeStruct((npad, cpad), jnp.float32),
                compiler_params=cparams,
            )(a_bin, deg_inv, x_full, root_p, w_vstack, bias_p)
        else:
            pooled_partial = pl.pallas_call(
                kernel,
                grid=(num_tiles,),
                in_specs=in_specs_common + [pl.BlockSpec((gpad, tm), lambda i: (0, i))],
                out_specs=pl.BlockSpec((1, gpad, cpad), lambda i: (i, 0, 0)),
                out_shape=jax.ShapeDtypeStruct((num_tiles, gpad, cpad), jnp.float32),
                compiler_params=cparams,
            )(a_bin, deg_inv, x_full, root_p, w_vstack, bias_p, m_mat)

    pooled = pooled_partial.sum(axis=0)          # tiny reduction over row tiles
    return pooled[:num_graphs, :hidden]


# ---------------------------- pure-JAX reference --------------------------------

def _reference_forward(params, node_ids, edge_index, edge_type, batch, num_relations,
                       num_graphs):
    """fp32 reference reproducing PyG RGCNConv (mean aggr) + ReLU + global_mean_pool."""
    x = params["node_emb"][node_ids]
    n = x.shape[0]
    src, dst = edge_index[0], edge_index[1]
    a = jnp.zeros((num_relations, n, n), jnp.float32).at[edge_type, dst, src].add(1.0)
    a = a / jnp.maximum(a.sum(axis=2, keepdims=True), 1.0)
    for layer in params["layers"]:
        w = jnp.einsum("rb,bio->rio", layer["comp"], layer["bases"])
        h = x @ layer["root"] + layer["bias"]
        for r in range(num_relations):
            h = h + a[r] @ (x @ w[r])
        x = jnp.maximum(h, 0.0)
    onehot = (batch[None, :] == jnp.arange(num_graphs, dtype=batch.dtype)[:, None]
              ).astype(jnp.float32)
    pool = onehot / jnp.maximum(onehot.sum(axis=1, keepdims=True), 1.0)
    return pool @ x


# ------------------------------------ main --------------------------------------

if __name__ == "__main__":
    key = jax.random.PRNGKey(0)

    # Module config (PyTorch defaults): emb_dim=64, hidden=128, 2 layers, 3 relations.
    NUM_NODE_TYPES = 50
    NUM_RELATIONS = 3
    EMB_DIM = 64
    HIDDEN = 128
    NUM_LAYERS = 2

    # Graph batch: 200 nodes in 4 graphs, 600 edges -> 2 destination-row tiles of 128.
    N_NODES = 200
    N_EDGES = 600
    NUM_GRAPHS = 4

    kp, kx, ke, kt = jax.random.split(key, 4)
    params = init_graph_encoder_params(
        kp, NUM_NODE_TYPES, NUM_RELATIONS, EMB_DIM, HIDDEN, NUM_LAYERS)
    # Weight packing hoisted out of the per-forward path (done once per model).
    packed = pack_graph_encoder_params(params, NUM_RELATIONS)

    node_ids = jax.random.randint(kx, (N_NODES,), 0, NUM_NODE_TYPES, dtype=jnp.int32)
    edge_index = jax.random.randint(ke, (2, N_EDGES), 0, N_NODES, dtype=jnp.int32)
    edge_type = jax.random.randint(kt, (N_EDGES,), 0, NUM_RELATIONS, dtype=jnp.int32)
    batch = jnp.repeat(jnp.arange(NUM_GRAPHS, dtype=jnp.int32), N_NODES // NUM_GRAPHS)

    out = graph_encoder_forward(
        packed, node_ids, edge_index, edge_type, batch,
        num_relations=NUM_RELATIONS, num_graphs=NUM_GRAPHS, hidden=HIDDEN, tile_rows=128)
    out = jax.block_until_ready(out)

    assert out.shape == (NUM_GRAPHS, HIDDEN) and out.dtype == jnp.float32
    assert bool(jnp.all(jnp.isfinite(out)))

    ref = _reference_forward(params, node_ids, edge_index, edge_type, batch,
                             NUM_RELATIONS, NUM_GRAPHS)
    assert bool(jnp.allclose(out, ref, rtol=1e-2, atol=1e-2)), (
        float(jnp.max(jnp.abs(out - ref))))
    print("KERNEL_OK")
</pallas_src>

<mosaic_0001>
module attributes {stable_mosaic.version = 11 : i64} {
  func.func @kernel(%arg0: i32, %arg1: memref<3x128x256xbf16, #tpu.memory_space<vmem>>, %arg2: memref<3x128x1xf32, #tpu.memory_space<vmem>>, %arg3: memref<256x128xf32, #tpu.memory_space<vmem>>, %arg4: memref<128x128xf32, #tpu.memory_space<vmem>>, %arg5: memref<384x128xf32, #tpu.memory_space<vmem>>, %arg6: memref<1x128xf32, #tpu.memory_space<vmem>>, %arg7: memref<128x128xf32, #tpu.memory_space<vmem>>) attributes {dimension_semantics = [#tpu.dimension_semantics<parallel>], iteration_bounds = array<i64: 2>, scalar_prefetch = 0 : i64, scratch_operands = 0 : i64, tpu.core_type = #tpu.core_type<tc>, window_params = [{transform_indices = @transform_0, window_bounds = array<i64: 3, 128, 256>}, {transform_indices = @transform_1, window_bounds = array<i64: 3, 128, 1>}, {pipeline_mode = #tpu.pipeline_mode<synchronous>, transform_indices = @transform_2, window_bounds = array<i64: 256, 128>}, {pipeline_mode = #tpu.pipeline_mode<synchronous>, transform_indices = @transform_3, window_bounds = array<i64: 128, 128>}, {pipeline_mode = #tpu.pipeline_mode<synchronous>, transform_indices = @transform_4, window_bounds = array<i64: 384, 128>}, {pipeline_mode = #tpu.pipeline_mode<synchronous>, transform_indices = @transform_5, window_bounds = array<i64: 1, 128>}, {transform_indices = @transform_6, window_bounds = array<i64: 128, 128>}]} {
    %c0 = arith.constant 0 : index
    %c0_0 = arith.constant 0 : index
    %0 = vector.load %arg3[%c0, %c0_0] : memref<256x128xf32, #tpu.memory_space<vmem>>, vector<256x128xf32>
    %c128_i32 = arith.constant 128 : i32
    %1 = arith.muli %arg0, %c128_i32 : i32
    %2 = tpu.assume_multiple %1, 128 : i32
    %3 = arith.index_cast %2 : i32 to index
    %c0_1 = arith.constant 0 : index
    %4 = vector.load %arg3[%3, %c0_1] : memref<256x128xf32, #tpu.memory_space<vmem>>, vector<128x128xf32>
    %c0_2 = arith.constant 0 : index
    %c0_3 = arith.constant 0 : index
    %c0_4 = arith.constant 0 : index
    %5 = vector.load %arg1[%c0_2, %c0_3, %c0_4] : memref<3x128x256xbf16, #tpu.memory_space<vmem>>, vector<1x128x256xbf16>
    %6 = vector.shape_cast %5 : vector<1x128x256xbf16> to vector<128x256xbf16>
    %7 = arith.extf %6 : vector<128x256xbf16> to vector<128x256xf32>
    %cst = arith.constant dense<0.000000e+00> : vector<128x128xf32>
    %8 = tpu.matmul %7, %0, %cst {dimension_numbers = #tpu.dot_dimension_numbers<[1], [0], [0], [1], [0, 0, 1, 1], [], []>} : vector<128x256xf32>, vector<256x128xf32>, vector<128x128xf32> -> vector<128x128xf32>
    %c0_5 = arith.constant 0 : index
    %c0_6 = arith.constant 0 : index
    %c0_7 = arith.constant 0 : index
    %9 = vector.load %arg2[%c0_5, %c0_6, %c0_7] : memref<3x128x1xf32, #tpu.memory_space<vmem>>, vector<1x128x1xf32>
    %10 = vector.shape_cast %9 : vector<1x128x1xf32> to vector<128x1xf32>
    %11 = vector.broadcast %10 : vector<128x1xf32> to vector<128x128xf32>
    %12 = arith.mulf %8, %11 : vector<128x128xf32>
    %c1 = arith.constant 1 : index
    %c0_8 = arith.constant 0 : index
    %c0_9 = arith.constant 0 : index
    %13 = vector.load %arg1[%c1, %c0_8, %c0_9] : memref<3x128x256xbf16, #tpu.memory_space<vmem>>, vector<1x128x256xbf16>
    %14 = vector.shape_cast %13 : vector<1x128x256xbf16> to vector<128x256xbf16>
    %15 = arith.extf %14 : vector<128x256xbf16> to vector<128x256xf32>
    %cst_10 = arith.constant dense<0.000000e+00> : vector<128x128xf32>
    %16 = tpu.matmul %15, %0, %cst_10 {dimension_numbers = #tpu.dot_dimension_numbers<[1], [0], [0], [1], [0, 0, 1, 1], [], []>} : vector<128x256xf32>, vector<256x128xf32>, vector<128x128xf32> -> vector<128x128xf32>
    %c1_11 = arith.constant 1 : index
    %c0_12 = arith.constant 0 : index
    %c0_13 = arith.constant 0 : index
    %17 = vector.load %arg2[%c1_11, %c0_12, %c0_13] : memref<3x128x1xf32, #tpu.memory_space<vmem>>, vector<1x128x1xf32>
    %18 = vector.shape_cast %17 : vector<1x128x1xf32> to vector<128x1xf32>
    %19 = vector.broadcast %18 : vector<128x1xf32> to vector<128x128xf32>
    %20 = arith.mulf %16, %19 : vector<128x128xf32>
    %c2 = arith.constant 2 : index
    %c0_14 = arith.constant 0 : index
    %c0_15 = arith.constant 0 : index
    %21 = vector.load %arg1[%c2, %c0_14, %c0_15] : memref<3x128x256xbf16, #tpu.memory_space<vmem>>, vector<1x128x256xbf16>
    %22 = vector.shape_cast %21 : vector<1x128x256xbf16> to vector<128x256xbf16>
    %23 = arith.extf %22 : vector<128x256xbf16> to vector<128x256xf32>
    %cst_16 = arith.constant dense<0.000000e+00> : vector<128x128xf32>
    %24 = tpu.matmul %23, %0, %cst_16 {dimension_numbers = #tpu.dot_dimension_numbers<[1], [0], [0], [1], [0, 0, 1, 1], [], []>} : vector<128x256xf32>, vector<256x128xf32>, vector<128x128xf32> -> vector<128x128xf32>
    %c2_17 = arith.constant 2 : index
    %c0_18 = arith.constant 0 : index
    %c0_19 = arith.constant 0 : index
    %25 = vector.load %arg2[%c2_17, %c0_18, %c0_19] : memref<3x128x1xf32, #tpu.memory_space<vmem>>, vector<1x128x1xf32>
    %26 = vector.shape_cast %25 : vector<1x128x1xf32> to vector<128x1xf32>
    %27 = vector.broadcast %26 : vector<128x1xf32> to vector<128x128xf32>
    %28 = arith.mulf %24, %27 : vector<128x128xf32>
    %29 = tpu.concatenate %12, %20, %28 in 1 : vector<128x128xf32>, vector<128x128xf32>, vector<128x128xf32> -> vector<128x384xf32>
    %c0_20 = arith.constant 0 : index
    %c0_21 = arith.constant 0 : index
    %30 = vector.load %arg4[%c0_20, %c0_21] : memref<128x128xf32, #tpu.memory_space<vmem>>, vector<128x128xf32>
    %cst_22 = arith.constant dense<0.000000e+00> : vector<128x128xf32>
    %31 = tpu.matmul %4, %30, %cst_22 {dimension_numbers = #tpu.dot_dimension_numbers<[1], [0], [0], [1], [0, 0, 1, 1], [], []>} : vector<128x128xf32>, vector<128x128xf32>, vector<128x128xf32> -> vector<128x128xf32>
    %c0_23 = arith.constant 0 : index
    %c0_24 = arith.constant 0 : index
    %32 = vector.load %arg6[%c0_23, %c0_24] : memref<1x128xf32, #tpu.memory_space<vmem>>, vector<1x128xf32>
    %33 = vector.broadcast %32 : vector<1x128xf32> to vector<128x128xf32>
    %34 = arith.addf %31, %33 : vector<128x128xf32>
    %c0_25 = arith.constant 0 : index
    %c0_26 = arith.constant 0 : index
    %35 = vector.load %arg5[%c0_25, %c0_26] : memref<384x128xf32, #tpu.memory_space<vmem>>, vector<384x128xf32>
    %cst_27 = arith.constant dense<0.000000e+00> : vector<128x128xf32>
    %36 = tpu.matmul %29, %35, %cst_27 {dimension_numbers = #tpu.dot_dimension_numbers<[1], [0], [0], [1], [0, 0, 1, 1], [], []>} : vector<128x384xf32>, vector<384x128xf32>, vector<128x128xf32> -> vector<128x128xf32>
    %37 = arith.addf %34, %36 : vector<128x128xf32>
    %cst_28 = arith.constant 0.000000e+00 : f32
    %38 = vector.broadcast %cst_28 : f32 to vector<128x128xf32>
    %39 = arith.maximumf %37, %38 : vector<128x128xf32>
    %c0_29 = arith.constant 0 : index
    %c0_30 = arith.constant 0 : index
    %40 = vector.load %arg7[%c0_29, %c0_30] : memref<128x128xf32, #tpu.memory_space<vmem>>, vector<128x128xf32>
    tpu.vector_store %arg7[%c0_29, %c0_30], %39 {strides = array<i32>} : memref<128x128xf32, #tpu.memory_space<vmem>>, vector<128x128xf32>,
    return
  }
  func.func @transform_0(%arg0: i32) -> (i32, i32, i32) {
    %c0_i32 = arith.constant 0 : i32
    %c0_i32_0 = arith.constant 0 : i32
    %c0_i32_1 = arith.constant 0 : i32
    return %c0_i32, %arg0, %c0_i32_0 : i32, i32, i32
  }
  func.func @transform_1(%arg0: i32) -> (i32, i32, i32) {
    %c0_i32 = arith.constant 0 : i32
    %c0_i32_0 = arith.constant 0 : i32
    %c0_i32_1 = arith.constant 0 : i32
    return %c0_i32, %arg0, %c0_i32_0 : i32, i32, i32
  }
  func.func @transform_2(%arg0: i32) -> (i32, i32) {
    %c0_i32 = arith.constant 0 : i32
    %c0_i32_0 = arith.constant 0 : i32
    %c0_i32_1 = arith.constant 0 : i32
    return %c0_i32, %c0_i32_0 : i32, i32
  }
  func.func @transform_3(%arg0: i32) -> (i32, i32) {
    %c0_i32 = arith.constant 0 : i32
    %c0_i32_0 = arith.constant 0 : i32
    %c0_i32_1 = arith.constant 0 : i32
    return %c0_i32, %c0_i32_0 : i32, i32
  }
  func.func @transform_4(%arg0: i32) -> (i32, i32) {
    %c0_i32 = arith.constant 0 : i32
    %c0_i32_0 = arith.constant 0 : i32
    %c0_i32_1 = arith.constant 0 : i32
    return %c0_i32, %c0_i32_0 : i32, i32
  }
  func.func @transform_5(%arg0: i32) -> (i32, i32) {
    %c0_i32 = arith.constant 0 : i32
    %c0_i32_0 = arith.constant 0 : i32
    %c0_i32_1 = arith.constant 0 : i32
    return %c0_i32, %c0_i32_0 : i32, i32
  }
  func.func @transform_6(%arg0: i32) -> (i32, i32) {
    %c0_i32 = arith.constant 0 : i32
    %c0_i32_0 = arith.constant 0 : i32
    return %arg0, %c0_i32 : i32, i32
  }
}

module attributes {stable_mosaic.version = 11 : i64} {
  func.func @kernel(%arg0: i32, %arg1: memref<3x128x256xbf16, #tpu.memory_space<vmem>>, %arg2: memref<3x128x1xf32, #tpu.memory_space<vmem>>, %arg3: memref<256x128xf32, #tpu.memory_space<vmem>>, %arg4: memref<128x128xf32, #tpu.memory_space<vmem>>, %arg5: memref<384x128xf32, #tpu.memory_space<vmem>>, %arg6: memref<1x128xf32, #tpu.memory_space<vmem>>, %arg7: memref<8x128xf32, #tpu.memory_space<vmem>>, %arg8: memref<1x8x128xf32, #tpu.memory_space<vmem>>) attributes {dimension_semantics = [#tpu.dimension_semantics<parallel>], iteration_bounds = array<i64: 2>, scalar_prefetch = 0 : i64, scratch_operands = 0 : i64, tpu.core_type = #tpu.core_type<tc>, window_params = [{transform_indices = @transform_0, window_bounds = array<i64: 3, 128, 256>}, {transform_indices = @transform_1, window_bounds = array<i64: 3, 128, 1>}, {pipeline_mode = #tpu.pipeline_mode<synchronous>, transform_indices = @transform_2, window_bounds = array<i64: 256, 128>}, {pipeline_mode = #tpu.pipeline_mode<synchronous>, transform_indices = @transform_3, window_bounds = array<i64: 128, 128>}, {pipeline_mode = #tpu.pipeline_mode<synchronous>, transform_indices = @transform_4, window_bounds = array<i64: 384, 128>}, {pipeline_mode = #tpu.pipeline_mode<synchronous>, transform_indices = @transform_5, window_bounds = array<i64: 1, 128>}, {transform_indices = @transform_6, window_bounds = array<i64: 8, 128>}, {transform_indices = @transform_7, window_bounds = array<i64: 1, 8, 128>}]} {
    %c0 = arith.constant 0 : index
    %c0_0 = arith.constant 0 : index
    %0 = vector.load %arg3[%c0, %c0_0] : memref<256x128xf32, #tpu.memory_space<vmem>>, vector<256x128xf32>
    %c128_i32 = arith.constant 128 : i32
    %1 = arith.muli %arg0, %c128_i32 : i32
    %2 = tpu.assume_multiple %1, 128 : i32
    %3 = arith.index_cast %2 : i32 to index
    %c0_1 = arith.constant 0 : index
    %4 = vector.load %arg3[%3, %c0_1] : memref<256x128xf32, #tpu.memory_space<vmem>>, vector<128x128xf32>
    %c0_2 = arith.constant 0 : index
    %c0_3 = arith.constant 0 : index
    %c0_4 = arith.constant 0 : index
    %5 = vector.load %arg1[%c0_2, %c0_3, %c0_4] : memref<3x128x256xbf16, #tpu.memory_space<vmem>>, vector<1x128x256xbf16>
    %6 = vector.shape_cast %5 : vector<1x128x256xbf16> to vector<128x256xbf16>
    %7 = arith.extf %6 : vector<128x256xbf16> to vector<128x256xf32>
    %cst = arith.constant dense<0.000000e+00> : vector<128x128xf32>
    %8 = tpu.matmul %7, %0, %cst {dimension_numbers = #tpu.dot_dimension_numbers<[1], [0], [0], [1], [0, 0, 1, 1], [], []>} : vector<128x256xf32>, vector<256x128xf32>, vector<128x128xf32> -> vector<128x128xf32>
    %c0_5 = arith.constant 0 : index
    %c0_6 = arith.constant 0 : index
    %c0_7 = arith.constant 0 : index
    %9 = vector.load %arg2[%c0_5, %c0_6, %c0_7] : memref<3x128x1xf32, #tpu.memory_space<vmem>>, vector<1x128x1xf32>
    %10 = vector.shape_cast %9 : vector<1x128x1xf32> to vector<128x1xf32>
    %11 = vector.broadcast %10 : vector<128x1xf32> to vector<128x128xf32>
    %12 = arith.mulf %8, %11 : vector<128x128xf32>
    %c1 = arith.constant 1 : index
    %c0_8 = arith.constant 0 : index
    %c0_9 = arith.constant 0 : index
    %13 = vector.load %arg1[%c1, %c0_8, %c0_9] : memref<3x128x256xbf16, #tpu.memory_space<vmem>>, vector<1x128x256xbf16>
    %14 = vector.shape_cast %13 : vector<1x128x256xbf16> to vector<128x256xbf16>
    %15 = arith.extf %14 : vector<128x256xbf16> to vector<128x256xf32>
    %cst_10 = arith.constant dense<0.000000e+00> : vector<128x128xf32>
    %16 = tpu.matmul %15, %0, %cst_10 {dimension_numbers = #tpu.dot_dimension_numbers<[1], [0], [0], [1], [0, 0, 1, 1], [], []>} : vector<128x256xf32>, vector<256x128xf32>, vector<128x128xf32> -> vector<128x128xf32>
    %c1_11 = arith.constant 1 : index
    %c0_12 = arith.constant 0 : index
    %c0_13 = arith.constant 0 : index
    %17 = vector.load %arg2[%c1_11, %c0_12, %c0_13] : memref<3x128x1xf32, #tpu.memory_space<vmem>>, vector<1x128x1xf32>
    %18 = vector.shape_cast %17 : vector<1x128x1xf32> to vector<128x1xf32>
    %19 = vector.broadcast %18 : vector<128x1xf32> to vector<128x128xf32>
    %20 = arith.mulf %16, %19 : vector<128x128xf32>
    %c2 = arith.constant 2 : index
    %c0_14 = arith.constant 0 : index
    %c0_15 = arith.constant 0 : index
    %21 = vector.load %arg1[%c2, %c0_14, %c0_15] : memref<3x128x256xbf16, #tpu.memory_space<vmem>>, vector<1x128x256xbf16>
    %22 = vector.shape_cast %21 : vector<1x128x256xbf16> to vector<128x256xbf16>
    %23 = arith.extf %22 : vector<128x256xbf16> to vector<128x256xf32>
    %cst_16 = arith.constant dense<0.000000e+00> : vector<128x128xf32>
    %24 = tpu.matmul %23, %0, %cst_16 {dimension_numbers = #tpu.dot_dimension_numbers<[1], [0], [0], [1], [0, 0, 1, 1], [], []>} : vector<128x256xf32>, vector<256x128xf32>, vector<128x128xf32> -> vector<128x128xf32>
    %c2_17 = arith.constant 2 : index
    %c0_18 = arith.constant 0 : index
    %c0_19 = arith.constant 0 : index
    %25 = vector.load %arg2[%c2_17, %c0_18, %c0_19] : memref<3x128x1xf32, #tpu.memory_space<vmem>>, vector<1x128x1xf32>
    %26 = vector.shape_cast %25 : vector<1x128x1xf32> to vector<128x1xf32>
    %27 = vector.broadcast %26 : vector<128x1xf32> to vector<128x128xf32>
    %28 = arith.mulf %24, %27 : vector<128x128xf32>
    %29 = tpu.concatenate %12, %20, %28 in 1 : vector<128x128xf32>, vector<128x128xf32>, vector<128x128xf32> -> vector<128x384xf32>
    %c0_20 = arith.constant 0 : index
    %c0_21 = arith.constant 0 : index
    %30 = vector.load %arg4[%c0_20, %c0_21] : memref<128x128xf32, #tpu.memory_space<vmem>>, vector<128x128xf32>
    %cst_22 = arith.constant dense<0.000000e+00> : vector<128x128xf32>
    %31 = tpu.matmul %4, %30, %cst_22 {dimension_numbers = #tpu.dot_dimension_numbers<[1], [0], [0], [1], [0, 0, 1, 1], [], []>} : vector<128x128xf32>, vector<128x128xf32>, vector<128x128xf32> -> vector<128x128xf32>
    %c0_23 = arith.constant 0 : index
    %c0_24 = arith.constant 0 : index
    %32 = vector.load %arg6[%c0_23, %c0_24] : memref<1x128xf32, #tpu.memory_space<vmem>>, vector<1x128xf32>
    %33 = vector.broadcast %32 : vector<1x128xf32> to vector<128x128xf32>
    %34 = arith.addf %31, %33 : vector<128x128xf32>
    %c0_25 = arith.constant 0 : index
    %c0_26 = arith.constant 0 : index
    %35 = vector.load %arg5[%c0_25, %c0_26] : memref<384x128xf32, #tpu.memory_space<vmem>>, vector<384x128xf32>
    %cst_27 = arith.constant dense<0.000000e+00> : vector<128x128xf32>
    %36 = tpu.matmul %29, %35, %cst_27 {dimension_numbers = #tpu.dot_dimension_numbers<[1], [0], [0], [1], [0, 0, 1, 1], [], []>} : vector<128x384xf32>, vector<384x128xf32>, vector<128x128xf32> -> vector<128x128xf32>
    %37 = arith.addf %34, %36 : vector<128x128xf32>
    %cst_28 = arith.constant 0.000000e+00 : f32
    %38 = vector.broadcast %cst_28 : f32 to vector<128x128xf32>
    %39 = arith.maximumf %37, %38 : vector<128x128xf32>
    %c0_29 = arith.constant 0 : index
    %c0_30 = arith.constant 0 : index
    %40 = vector.load %arg7[%c0_29, %c0_30] : memref<8x128xf32, #tpu.memory_space<vmem>>, vector<8x128xf32>
    %cst_31 = arith.constant dense<0.000000e+00> : vector<8x128xf32>
    %41 = tpu.matmul %40, %39, %cst_31 {dimension_numbers = #tpu.dot_dimension_numbers<[1], [0], [0], [1], [0, 0, 1, 1], [], []>} : vector<8x128xf32>, vector<128x128xf32>, vector<8x128xf32> -> vector<8x128xf32>
    %c0_32 = arith.constant 0 : index
    %c0_33 = arith.constant 0 : index
    %c0_34 = arith.constant 0 : index
    %42 = vector.load %arg8[%c0_32, %c0_33, %c0_34] : memref<1x8x128xf32, #tpu.memory_space<vmem>>, vector<1x8x128xf32>
    %43 = vector.shape_cast %42 : vector<1x8x128xf32> to vector<8x128xf32>
    %44 = vector.shape_cast %41 : vector<8x128xf32> to vector<1x8x128xf32>
    tpu.vector_store %arg8[%c0_32, %c0_33, %c0_34], %44 {strides = array<i32>} : memref<1x8x128xf32, #tpu.memory_space<vmem>>, vector<1x8x128xf32>,
    return
  }
  func.func @transform_0(%arg0: i32) -> (i32, i32, i32) {
    %c0_i32 = arith.constant 0 : i32
    %c0_i32_0 = arith.constant 0 : i32
    %c0_i32_1 = arith.constant 0 : i32
    return %c0_i32, %arg0, %c0_i32_0 : i32, i32, i32
  }
  func.func @transform_1(%arg0: i32) -> (i32, i32, i32) {
    %c0_i32 = arith.constant 0 : i32
    %c0_i32_0 = arith.constant 0 : i32
    %c0_i32_1 = arith.constant 0 : i32
    return %c0_i32, %arg0, %c0_i32_0 : i32, i32, i32
  }
  func.func @transform_2(%arg0: i32) -> (i32, i32) {
    %c0_i32 = arith.constant 0 : i32
    %c0_i32_0 = arith.constant 0 : i32
    %c0_i32_1 = arith.constant 0 : i32
    return %c0_i32, %c0_i32_0 : i32, i32
  }
  func.func @transform_3(%arg0: i32) -> (i32, i32) {
    %c0_i32 = arith.constant 0 : i32
    %c0_i32_0 = arith.constant 0 : i32
    %c0_i32_1 = arith.constant 0 : i32
    return %c0_i32, %c0_i32_0 : i32, i32
  }
  func.func @transform_4(%arg0: i32) -> (i32, i32) {
    %c0_i32 = arith.constant 0 : i32
    %c0_i32_0 = arith.constant 0 : i32
    %c0_i32_1 = arith.constant 0 : i32
    return %c0_i32, %c0_i32_0 : i32, i32
  }
  func.func @transform_5(%arg0: i32) -> (i32, i32) {
    %c0_i32 = arith.constant 0 : i32
    %c0_i32_0 = arith.constant 0 : i32
    %c0_i32_1 = arith.constant 0 : i32
    return %c0_i32, %c0_i32_0 : i32, i32
  }
  func.func @transform_6(%arg0: i32) -> (i32, i32) {
    %c0_i32 = arith.constant 0 : i32
    %c0_i32_0 = arith.constant 0 : i32
    return %c0_i32, %arg0 : i32, i32
  }
  func.func @transform_7(%arg0: i32) -> (i32, i32, i32) {
    %c0_i32 = arith.constant 0 : i32
    %c0_i32_0 = arith.constant 0 : i32
    %c0_i32_1 = arith.constant 0 : i32
    return %arg0, %c0_i32, %c0_i32_0 : i32, i32, i32
  }
}

</mosaic_0001>

<bundles_post_ra>
// kernel: graph_encoder_forward.2
= control target key start
LH: loop header
LB: loop body
LE: loop exit
PB: predicated region body
PF: predicated region fallthrough
CT: control target
= control target key end

     0   :  { %s2312_s21 = smov 0   ;;  %s2314_s22 = smov 0   ;;  %s3322_s0 = inlined_call_operand.vmem [shape: bf16[3,256,256], index: 0, kind: input, shape index: {}]   ;;  %s3323_s1 = inlined_call_operand.vmem [shape: f32[3,256,1], index: 1, kind: input, shape index: {}]   ;;  %s3324_s2 = inlined_call_operand.vmem [shape: f32[256,128], index: 2, kind: input, shape index: {}]   ;;  %s3325_s3 = inlined_call_operand.vmem [shape: f32[128,128], index: 3, kind: input, shape index: {}]   ;;  %s3326_s4 = inlined_call_operand.vmem [shape: f32[384,128], index: 4, kind: input, shape index: {}]   ;;  %s3327_s5 = inlined_call_operand.vmem [shape: f32[1,128], index: 5, kind: input, shape index: {}]   ;;  %s3328_s6 = inlined_call_operand.vmem [shape: f32[256,128], index: 6, kind: output, shape index: {}]  }
   0x1   :  { %s2316_s23 = smov 0  }
   0x2 LB: > { %s2106_s24 = sadd.s32 4294967295, %s2274_s23   ;;  %s2329_s25 = sadd.s32 1, %s2274_s23   ;;  %s2274_s23 = sphi %s2316_s23, %s3332_s23   ;;  %s2270_s22 = sphi %s2314_s22, %s3331_s22   ;;  %s2266_s21 = sphi %s2312_s21, %s3330_s21  }
   0x3   : > { %s20_s26 = ssub.s32 %s2274_s23, %s2329_s25  ;;  %s23_s27 = sadd.s32 1, %s2270_s22 }
   0x4   : > { %p21_p0 = scmp.eq.s32.totalorder %s20_s26, 0  ;;  %p30_p1 = scmp.ne.s32.totalorder %s2270_s22, %s2266_s21 }
   0x5   : > { %p31_p2 = scmp.eq.s32.totalorder %s2274_s23, 0  ;;  %p2109_p4 = scmp.ge.s32.totalorder %s2274_s23, 2 }
   0x6   : > { %s2338_s28 = scalar_select %p21_p0, %s2270_s22, %s23_s27  }
   0x7   : > { %p2340_p3 = por %p31_p2, %p30_p1  ;;  %204 = sbr.rel (%p2109_p4) target bundleno = 116 (0x74), region = 32 }
   0xc   : > { %207 = sbr.rel (!%p2340_p3) target bundleno = 64 (0x40), region = 36  ;;  %s209_s30 = sand.u32 (%p2340_p3), 1, %s2270_s22  }
   0xd   : > { %s2186_s7 = sshll.u32 (%p2340_p3), %s2274_s23, 7  ;;  %s2220_s8 = smul.u32 (%p2340_p3), 384, %s209_s30 }
   0xe   : > { %s2352_s11 = scalar_lea.vmem (%p2340_p3), %s3322_s0, %s2186_s7 }
   0xf   : > { %v338_v0 = vld [vmem:[%s2352_s11] sm:$0xff] (%p2340_p3)  ;;  %v340_v1 = vld [vmem:[%s2352_s11 + $0x8] sm:$0xff] (%p2340_p3)  ;;  %v342_v2 = vld [vmem:[%s2352_s11 + $0x10] sm:$0xff] (%p2340_p3)  ;;  %s2357_s12 = scalar_lea.vmem (%p2340_p3), [#allocation2], %s2220_s8 }
  0x10   : > { %339 = vst [vmem:[%s2357_s12] sm:$0xff] (%p2340_p3), %v338_v0  ;;  %v344_v3 = vld [vmem:[%s2352_s11 + $0x18] sm:$0xff] (%p2340_p3)  ;;  %v346_v4 = vld [vmem:[%s2352_s11 + $0x20] sm:$0xff] (%p2340_p3)  ;;  %v348_v5 = vld [vmem:[%s2352_s11 + $0x28] sm:$0xff] (%p2340_p3) }
  0x11   : > { %341 = vst [vmem:[%s2357_s12 + $0x8] sm:$0xff] %v340_v1  ;;  %v350_v6 = vld [vmem:[%s2352_s11 + $0x30] sm:$0xff]  ;;  %v352_v7 = vld [vmem:[%s2352_s11 + $0x38] sm:$0xff]  ;;  %v354_v8 = vld [vmem:[%s2352_s11 + $0x40] sm:$0xff] }
  0x12   : > { %343 = vst [vmem:[%s2357_s12 + $0x10] sm:$0xff] %v342_v2  ;;  %v356_v9 = vld [vmem:[%s2352_s11 + $0x48] sm:$0xff]  ;;  %v358_v10 = vld [vmem:[%s2352_s11 + $0x50] sm:$0xff]  ;;  %v360_v11 = vld [vmem:[%s2352_s11 + $0x58] sm:$0xff] }
  0x13   : > { %345 = vst [vmem:[%s2357_s12 + $0x18] sm:$0xff] %v344_v3  ;;  %v362_v12 = vld [vmem:[%s2352_s11 + $0x60] sm:$0xff]  ;;  %v364_v13 = vld [vmem:[%s2352_s11 + $0x68] sm:$0xff]  ;;  %v366_v14 = vld [vmem:[%s2352_s11 + $0x70] sm:$0xff] }
  0x14   : > { %347 = vst [vmem:[%s2357_s12 + $0x20] sm:$0xff] %v346_v4  ;;  %v368_v15 = vld [vmem:[%s2352_s11 + $0x78] sm:$0xff]  ;;  %v370_v16 = vld [vmem:[%s2352_s11 + $0x100] sm:$0xff]  ;;  %v372_v17 = vld [vmem:[%s2352_s11 + $0x108] sm:$0xff] }
  0x15   : > { %349 = vst [vmem:[%s2357_s12 + $0x28] sm:$0xff] %v348_v5  ;;  %v374_v18 = vld [vmem:[%s2352_s11 + $0x110] sm:$0xff]  ;;  %v376_v19 = vld [vmem:[%s2352_s11 + $0x118] sm:$0xff]  ;;  %v378_v20 = vld [vmem:[%s2352_s11 + $0x120] sm:$0xff] }
  0x16   : > { %351 = vst [vmem:[%s2357_s12 + $0x30] sm:$0xff] %v350_v6  ;;  %v380_v21 = vld [vmem:[%s2352_s11 + $0x128] sm:$0xff]  ;;  %v382_v22 = vld [vmem:[%s2352_s11 + $0x130] sm:$0xff]  ;;  %v384_v23 = vld [vmem:[%s2352_s11 + $0x138] sm:$0xff] }
  0x17   : > { %353 = vst [vmem:[%s2357_s12 + $0x38] sm:$0xff] %v352_v7  ;;  %v386_v24 = vld [vmem:[%s2352_s11 + $0x140] sm:$0xff]  ;;  %v388_v25 = vld [vmem:[%s2352_s11 + $0x148] sm:$0xff]  ;;  %v390_v26 = vld [vmem:[%s2352_s11 + $0x150] sm:$0xff] }
  0x18   : > { %355 = vst [vmem:[%s2357_s12 + $0x40] sm:$0xff] %v354_v8  ;;  %v392_v27 = vld [vmem:[%s2352_s11 + $0x158] sm:$0xff]  ;;  %v394_v28 = vld [vmem:[%s2352_s11 + $0x160] sm:$0xff]  ;;  %v396_v29 = vld [vmem:[%s2352_s11 + $0x168] sm:$0xff] }
  0x19   : > { %357 = vst [vmem:[%s2357_s12 + $0x48] sm:$0xff] %v356_v9  ;;  %v398_v30 = vld [vmem:[%s2352_s11 + $0x170] sm:$0xff]  ;;  %v400_v31 = vld [vmem:[%s2352_s11 + $0x178] sm:$0xff]  ;;  %v402_v32 = vld [vmem:[%s2352_s11 + $0x200] sm:$0xff] }
  0x1a   : > { %359 = vst [vmem:[%s2357_s12 + $0x50] sm:$0xff] %v358_v10  ;;  %v404_v33 = vld [vmem:[%s2352_s11 + $0x208] sm:$0xff]  ;;  %v406_v34 = vld [vmem:[%s2352_s11 + $0x210] sm:$0xff]  ;;  %v408_v35 = vld [vmem:[%s2352_s11 + $0x218] sm:$0xff] }
  0x1b   : > { %361 = vst [vmem:[%s2357_s12 + $0x58] sm:$0xff] %v360_v11  ;;  %v410_v36 = vld [vmem:[%s2352_s11 + $0x220] sm:$0xff]  ;;  %v412_v37 = vld [vmem:[%s2352_s11 + $0x228] sm:$0xff]  ;;  %v414_v38 = vld [vmem:[%s2352_s11 + $0x230] sm:$0xff] }
  0x1c   : > { %363 = vst [vmem:[%s2357_s12 + $0x60] sm:$0xff] %v362_v12  ;;  %v416_v39 = vld [vmem:[%s2352_s11 + $0x238] sm:$0xff]  ;;  %v418_v40 = vld [vmem:[%s2352_s11 + $0x240] sm:$0xff]  ;;  %v420_v41 = vld [vmem:[%s2352_s11 + $0x248] sm:$0xff] }
  0x1d   : > { %365 = vst [vmem:[%s2357_s12 + $0x68] sm:$0xff] %v364_v13  ;;  %v422_v42 = vld [vmem:[%s2352_s11 + $0x250] sm:$0xff]  ;;  %v424_v43 = vld [vmem:[%s2352_s11 + $0x258] sm:$0xff]  ;;  %v426_v44 = vld [vmem:[%s2352_s11 + $0x260] sm:$0xff] }
  0x1e   : > { %367 = vst [vmem:[%s2357_s12 + $0x70] sm:$0xff] %v366_v14  ;;  %v428_v45 = vld [vmem:[%s2352_s11 + $0x268] sm:$0xff]  ;;  %v430_v46 = vld [vmem:[%s2352_s11 + $0x270] sm:$0xff]  ;;  %v432_v47 = vld [vmem:[%s2352_s11 + $0x278] sm:$0xff] }
  0x1f   : > { %369 = vst [vmem:[%s2357_s12 + $0x78] sm:$0xff] %v368_v15 }
  0x20   : > { %371 = vst [vmem:[%s2357_s12 + $0x80] sm:$0xff] %v370_v16 }
  0x21   : > { %373 = vst [vmem:[%s2357_s12 + $0x88] sm:$0xff] %v372_v17 }
  0x22   : > { %375 = vst [vmem:[%s2357_s12 + $0x90] sm:$0xff] %v374_v18 }
  0x23   : > { %377 = vst [vmem:[%s2357_s12 + $0x98] sm:$0xff] %v376_v19 }
  0x24   : > { %379 = vst [vmem:[%s2357_s12 + $0xa0] sm:$0xff] %v378_v20 }
  0x25   : > { %381 = vst [vmem:[%s2357_s12 + $0xa8] sm:$0xff] %v380_v21 }
  0x26   : > { %383 = vst [vmem:[%s2357_s12 + $0xb0] sm:$0xff] %v382_v22 }
  0x27   : > { %385 = vst [vmem:[%s2357_s12 + $0xb8] sm:$0xff] %v384_v23 }
  0x28   : > { %387 = vst [vmem:[%s2357_s12 + $0xc0] sm:$0xff] %v386_v24 }
  0x29   : > { %389 = vst [vmem:[%s2357_s12 + $0xc8] sm:$0xff] %v388_v25 }
  0x2a   : > { %391 = vst [vmem:[%s2357_s12 + $0xd0] sm:$0xff] %v390_v26 }
  0x2b   : > { %393 = vst [vmem:[%s2357_s12 + $0xd8] sm:$0xff] %v392_v27 }
  0x2c   : > { %395 = vst [vmem:[%s2357_s12 + $0xe0] sm:$0xff] %v394_v28 }
  0x2d   : > { %397 = vst [vmem:[%s2357_s12 + $0xe8] sm:$0xff] %v396_v29 }
  0x2e   : > { %399 = vst [vmem:[%s2357_s12 + $0xf0] sm:$0xff] %v398_v30 }
  0x2f   : > { %401 = vst [vmem:[%s2357_s12 + $0xf8] sm:$0xff] %v400_v31 }
  0x30   : > { %403 = vst [vmem:[%s2357_s12 + $0x100] sm:$0xff] %v402_v32 }
  0x31   : > { %405 = vst [vmem:[%s2357_s12 + $0x108] sm:$0xff] %v404_v33 }
  0x32   : > { %407 = vst [vmem:[%s2357_s12 + $0x110] sm:$0xff] %v406_v34 }
  0x33   : > { %409 = vst [vmem:[%s2357_s12 + $0x118] sm:$0xff] %v408_v35 }
  0x34   : > { %411 = vst [vmem:[%s2357_s12 + $0x120] sm:$0xff] %v410_v36 }
  0x35   : > { %413 = vst [vmem:[%s2357_s12 + $0x128] sm:$0xff] %v412_v37 }
  0x36   : > { %415 = vst [vmem:[%s2357_s12 + $0x130] sm:$0xff] %v414_v38 }
  0x37   : > { %417 = vst [vmem:[%s2357_s12 + $0x138] sm:$0xff] %v416_v39 }
  0x38   : > { %419 = vst [vmem:[%s2357_s12 + $0x140] sm:$0xff] %v418_v40 }
  0x39   : > { %421 = vst [vmem:[%s2357_s12 + $0x148] sm:$0xff] %v420_v41 }
  0x3a   : > { %423 = vst [vmem:[%s2357_s12 + $0x150] sm:$0xff] %v422_v42 }
  0x3b   : > { %425 = vst [vmem:[%s2357_s12 + $0x158] sm:$0xff] %v424_v43 }
  0x3c   : > { %427 = vst [vmem:[%s2357_s12 + $0x160] sm:$0xff] %v426_v44 }
  0x3d   : > { %429 = vst [vmem:[%s2357_s12 + $0x168] sm:$0xff] %v428_v45 }
  0x3e   : > { %431 = vst [vmem:[%s2357_s12 + $0x170] sm:$0xff] %v430_v46 }
  0x3f   : > { %433 = vst [vmem:[%s2357_s12 + $0x178] sm:$0xff] %v432_v47 }
  0x40 PF: > { %439 = sbr.rel (!%p2340_p3) target bundleno = 116 (0x74), region = 74  ;;  %s441_s13 = sand.u32 (%p2340_p3), 1, %s2270_s22  }
  0x41   : > { %s2187_s14 = sshll.u32 (%p2340_p3), %s2274_s23, 7  ;;  %s2221_s15 = smul.u32 (%p2340_p3), 384, %s441_s13 }
  0x42   : > { %s2459_s18 = scalar_lea.vmem (%p2340_p3), %s3323_s1, %s2187_s14 }
  0x43   : > { %v569_v48 = vld [vmem:[%s2459_s18] sm:$0xff] (%p2340_p3)  ;;  %v571_v49 = vld [vmem:[%s2459_s18 + $0x8] sm:$0xff] (%p2340_p3)  ;;  %v573_v50 = vld [vmem:[%s2459_s18 + $0x10] sm:$0xff] (%p2340_p3)  ;;  %s2464_s19 = scalar_lea.vmem (%p2340_p3), [#allocation3], %s2221_s15 }
  0x44   : > { %570 = vst [vmem:[%s2464_s19] sm:$0xff] (%p2340_p3), %v569_v48  ;;  %v575_v51 = vld [vmem:[%s2459_s18 + $0x18] sm:$0xff] (%p2340_p3)  ;;  %v577_v52 = vld [vmem:[%s2459_s18 + $0x20] sm:$0xff] (%p2340_p3)  ;;  %v579_v53 = vld [vmem:[%s2459_s18 + $0x28] sm:$0xff] (%p2340_p3) }
  0x45   : > { %572 = vst [vmem:[%s2464_s19 + $0x8] sm:$0xff] %v571_v49  ;;  %v581_v54 = vld [vmem:[%s2459_s18 + $0x30] sm:$0xff]  ;;  %v583_v55 = vld [vmem:[%s2459_s18 + $0x38] sm:$0xff]  ;;  %v585_v56 = vld [vmem:[%s2459_s18 + $0x40] sm:$0xff] }
  0x46   : > { %574 = vst [vmem:[%s2464_s19 + $0x10] sm:$0xff] %v573_v50  ;;  %v587_v57 = vld [vmem:[%s2459_s18 + $0x48] sm:$0xff]  ;;  %v589_v58 = vld [vmem:[%s2459_s18 + $0x50] sm:$0xff]  ;;  %v591_v59 = vld [vmem:[%s2459_s18 + $0x58] sm:$0xff] }
  0x47   : > { %576 = vst [vmem:[%s2464_s19 + $0x18] sm:$0xff] %v575_v51  ;;  %v593_v60 = vld [vmem:[%s2459_s18 + $0x60] sm:$0xff]  ;;  %v595_v61 = vld [vmem:[%s2459_s18 + $0x68] sm:$0xff]  ;;  %v597_v62 = vld [vmem:[%s2459_s18 + $0x70] sm:$0xff] }
  0x48   : > { %578 = vst [vmem:[%s2464_s19 + $0x20] sm:$0xff] %v577_v52  ;;  %v599_v63 = vld [vmem:[%s2459_s18 + $0x78] sm:$0xff]  ;;  %v601_v0 = vld [vmem:[%s2459_s18 + $0x100] sm:$0xff]  ;;  %v603_v1 = vld [vmem:[%s2459_s18 + $0x108] sm:$0xff] }
  0x49   : > { %580 = vst [vmem:[%s2464_s19 + $0x28] sm:$0xff] %v579_v53  ;;  %v605_v2 = vld [vmem:[%s2459_s18 + $0x110] sm:$0xff]  ;;  %v607_v3 = vld [vmem:[%s2459_s18 + $0x118] sm:$0xff]  ;;  %v609_v4 = vld [vmem:[%s2459_s18 + $0x120] sm:$0xff] }
  0x4a   : > { %582 = vst [vmem:[%s2464_s19 + $0x30] sm:$0xff] %v581_v54  ;;  %v611_v5 = vld [vmem:[%s2459_s18 + $0x128] sm:$0xff]  ;;  %v613_v6 = vld [vmem:[%s2459_s18 + $0x130] sm:$0xff]  ;;  %v615_v7 = vld [vmem:[%s2459_s18 + $0x138] sm:$0xff] }
  0x4b   : > { %584 = vst [vmem:[%s2464_s19 + $0x38] sm:$0xff] %v583_v55  ;;  %v617_v8 = vld [vmem:[%s2459_s18 + $0x140] sm:$0xff]  ;;  %v619_v9 = vld [vmem:[%s2459_s18 + $0x148] sm:$0xff]  ;;  %v621_v10 = vld [vmem:[%s2459_s18 + $0x150] sm:$0xff] }
  0x4c   : > { %586 = vst [vmem:[%s2464_s19 + $0x40] sm:$0xff] %v585_v56  ;;  %v623_v11 = vld [vmem:[%s2459_s18 + $0x158] sm:$0xff]  ;;  %v625_v12 = vld [vmem:[%s2459_s18 + $0x160] sm:$0xff]  ;;  %v627_v13 = vld [vmem:[%s2459_s18 + $0x168] sm:$0xff] }
  0x4d   : > { %588 = vst [vmem:[%s2464_s19 + $0x48] sm:$0xff] %v587_v57  ;;  %v629_v14 = vld [vmem:[%s2459_s18 + $0x170] sm:$0xff]  ;;  %v631_v15 = vld [vmem:[%s2459_s18 + $0x178] sm:$0xff]  ;;  %v633_v16 = vld [vmem:[%s2459_s18 + $0x200] sm:$0xff] }
  0x4e   : > { %590 = vst [vmem:[%s2464_s19 + $0x50] sm:$0xff] %v589_v58  ;;  %v635_v17 = vld [vmem:[%s2459_s18 + $0x208] sm:$0xff]  ;;  %v637_v18 = vld [vmem:[%s2459_s18 + $0x210] sm:$0xff]  ;;  %v639_v19 = vld [vmem:[%s2459_s18 + $0x218] sm:$0xff] }
  0x4f   : > { %592 = vst [vmem:[%s2464_s19 + $0x58] sm:$0xff] %v591_v59  ;;  %v641_v20 = vld [vmem:[%s2459_s18 + $0x220] sm:$0xff]  ;;  %v643_v21 = vld [vmem:[%s2459_s18 + $0x228] sm:$0xff]  ;;  %v645_v22 = vld [vmem:[%s2459_s18 + $0x230] sm:$0xff] }
  0x50   : > { %594 = vst [vmem:[%s2464_s19 + $0x60] sm:$0xff] %v593_v60  ;;  %v647_v23 = vld [vmem:[%s2459_s18 + $0x238] sm:$0xff]  ;;  %v649_v24 = vld [vmem:[%s2459_s18 + $0x240] sm:$0xff]  ;;  %v651_v25 = vld [vmem:[%s2459_s18 + $0x248] sm:$0xff] }
  0x51   : > { %596 = vst [vmem:[%s2464_s19 + $0x68] sm:$0xff] %v595_v61  ;;  %v653_v26 = vld [vmem:[%s2459_s18 + $0x250] sm:$0xff]  ;;  %v655_v27 = vld [vmem:[%s2459_s18 + $0x258] sm:$0xff]  ;;  %v657_v28 = vld [vmem:[%s2459_s18 + $0x260] sm:$0xff] }
  0x52   : > { %598 = vst [vmem:[%s2464_s19 + $0x70] sm:$0xff] %v597_v62  ;;  %v659_v29 = vld [vmem:[%s2459_s18 + $0x268] sm:$0xff]  ;;  %v661_v30 = vld [vmem:[%s2459_s18 + $0x270] sm:$0xff]  ;;  %v663_v31 = vld [vmem:[%s2459_s18 + $0x278] sm:$0xff] }
  0x53   : > { %600 = vst [vmem:[%s2464_s19 + $0x78] sm:$0xff] %v599_v63 }
  0x54   : > { %602 = vst [vmem:[%s2464_s19 + $0x80] sm:$0xff] %v601_v0 }
  0x55   : > { %604 = vst [vmem:[%s2464_s19 + $0x88] sm:$0xff] %v603_v1 }
  0x56   : > { %606 = vst [vmem:[%s2464_s19 + $0x90] sm:$0xff] %v605_v2 }
  0x57   : > { %608 = vst [vmem:[%s2464_s19 + $0x98] sm:$0xff] %v607_v3 }
  0x58   : > { %610 = vst [vmem:[%s2464_s19 + $0xa0] sm:$0xff] %v609_v4 }
  0x59   : > { %612 = vst [vmem:[%s2464_s19 + $0xa8] sm:$0xff] %v611_v5 }
  0x5a   : > { %614 = vst [vmem:[%s2464_s19 + $0xb0] sm:$0xff] %v613_v6 }
  0x5b   : > { %616 = vst [vmem:[%s2464_s19 + $0xb8] sm:$0xff] %v615_v7 }
  0x5c   : > { %618 = vst [vmem:[%s2464_s19 + $0xc0] sm:$0xff] %v617_v8 }
  0x5d   : > { %620 = vst [vmem:[%s2464_s19 + $0xc8] sm:$0xff] %v619_v9 }
  0x5e   : > { %622 = vst [vmem:[%s2464_s19 + $0xd0] sm:$0xff] %v621_v10 }
  0x5f   : > { %624 = vst [vmem:[%s2464_s19 + $0xd8] sm:$0xff] %v623_v11 }
  0x60   : > { %626 = vst [vmem:[%s2464_s19 + $0xe0] sm:$0xff] %v625_v12 }
  0x61   : > { %628 = vst [vmem:[%s2464_s19 + $0xe8] sm:$0xff] %v627_v13 }
  0x62   : > { %630 = vst [vmem:[%s2464_s19 + $0xf0] sm:$0xff] %v629_v14 }
  0x63   : > { %632 = vst [vmem:[%s2464_s19 + $0xf8] sm:$0xff] %v631_v15 }
  0x64   : > { %634 = vst [vmem:[%s2464_s19 + $0x100] sm:$0xff] %v633_v16 }
  0x65   : > { %636 = vst [vmem:[%s2464_s19 + $0x108] sm:$0xff] %v635_v17 }
  0x66   : > { %638 = vst [vmem:[%s2464_s19 + $0x110] sm:$0xff] %v637_v18 }
  0x67   : > { %640 = vst [vmem:[%s2464_s19 + $0x118] sm:$0xff] %v639_v19 }
  0x68   : > { %642 = vst [vmem:[%s2464_s19 + $0x120] sm:$0xff] %v641_v20 }
  0x69   : > { %644 = vst [vmem:[%s2464_s19 + $0x128] sm:$0xff] %v643_v21 }
  0x6a   : > { %646 = vst [vmem:[%s2464_s19 + $0x130] sm:$0xff] %v645_v22 }
  0x6b   : > { %648 = vst [vmem:[%s2464_s19 + $0x138] sm:$0xff] %v647_v23 }
  0x6c   : > { %650 = vst [vmem:[%s2464_s19 + $0x140] sm:$0xff] %v649_v24 }
  0x6d   : > { %652 = vst [vmem:[%s2464_s19 + $0x148] sm:$0xff] %v651_v25 }
  0x6e   : > { %654 = vst [vmem:[%s2464_s19 + $0x150] sm:$0xff] %v653_v26 }
  0x6f   : > { %656 = vst [vmem:[%s2464_s19 + $0x158] sm:$0xff] %v655_v27 }
  0x70   : > { %658 = vst [vmem:[%s2464_s19 + $0x160] sm:$0xff] %v657_v28 }
  0x71   : > { %660 = vst [vmem:[%s2464_s19 + $0x168] sm:$0xff] %v659_v29 }
  0x72   : > { %662 = vst [vmem:[%s2464_s19 + $0x170] sm:$0xff] %v661_v30 }
  0x73   : > { %664 = vst [vmem:[%s2464_s19 + $0x178] sm:$0xff] %v663_v31 }
  0x74 PF: > { %p2115_p5 = scmp.ge.s32.totalorder %s2274_s23, 1  ;;  %p669_p6 = scmp.lt.s32.totalorder %s2274_s23, 3 }
  0x76   : > { %p670_p7 = pnand %p2115_p5, %p669_p6 }
  0x77   : > { %s676_s8 = sand.u32 (!%p670_p7), 1, %s2266_s21   ;;  %s2116_s7 = sshll.u32 (!%p670_p7), %s2106_s24, 4 }
  0x78   : > { %673 = sbr.rel (%p670_p7) target bundleno = 621 (0x26d), region = 112  ;;  %p719_p8 = scmp.lt.s32.totalorder (!%p670_p7), %s2116_s7, 31 }
  0x79   : > { %s2584_s11 = smul.u32 (!%p670_p7), 384, %s676_s8 }
  0x7b   : > { %s2603_s15 = scalar_lea.vmem (!%p670_p7), [#allocation3], %s2584_s11  ;;  %s2780_s12 = scalar_lea.vmem (!%p670_p7), [#allocation2], %s2584_s11 }
  0x7d   : > { %v2564_v32 = vld [vmem:[%s3324_s2 + $0x78] sm:$0xff]  ;;  %v2574_v34 = vld [vmem:[%s3324_s2 + $0x70] sm:$0xff]  ;;  %v2593_v36 = vld [vmem:[%s3324_s2 + $0x68] sm:$0xff]  ;;  %v2276_v38 = vmov 0   ;;  %s3334_s7 = smov (!%p719_p8, %s2116_s7), 31 }
  0x7e   : > { %v2569_v33 = vld [vmem:[%s3324_s2 + $0xf8] sm:$0xff]  ;;  %822 = vmatpush.msra.mxu0 %v2564_v32  ;;  %2188 = vmatpush.msra.mxu2 %v2564_v32  ;;  %v2582_v35 = vld [vmem:[%s3324_s2 + $0xf0] sm:$0xff]  ;;  %v2600_v37 = vld [vmem:[%s3324_s2 + $0xe8] sm:$0xff]  ;;  %s2117_s23 = sshll.u32 %s3334_s7, 3 }
  0x7f   : > { %887 = vmatpush.msra.mxu1 %v2569_v33  ;;  %2204 = vmatpush.msra.mxu3 %v2569_v33  ;;  %v953_v39 = vld [vmem:[%s2603_s15 + $0x8] sm:$0xff]  ;;  %v952_v40 = vld [vmem:[%s2603_s15] sm:$0xff]  ;;  %v2624_v43 = vld [vmem:[%s3324_s2 + $0x58] sm:$0xff]  ;;  %s3279_s21 = scalar_lea.vmem %s3328_s6, %s2117_s23 }
  0x80   : > { %823 = vmatpush.msra.mxu0 %v2574_v34  ;;  %2189 = vmatpush.msra.mxu2 %v2574_v34  ;;  %v2612_v41 = vld [vmem:[%s3324_s2 + $0x60] sm:$0xff]  ;;  %v2631_v44 = vld [vmem:[%s3324_s2 + $0xd8] sm:$0xff]  ;;  %v2638_v45 = vld [vmem:[%s3324_s2 + $0x50] sm:$0xff] }
  0x81   : > { %888 = vmatpush.msra.mxu1 %v2582_v35  ;;  %2205 = vmatpush.msra.mxu3 %v2582_v35  ;;  %v2619_v42 = vld [vmem:[%s3324_s2 + $0xe0] sm:$0xff]  ;;  %v2645_v46 = vld [vmem:[%s3324_s2 + $0xd0] sm:$0xff]  ;;  %v2652_v47 = vld [vmem:[%s3324_s2 + $0x48] sm:$0xff] }
  0x82   : > { %2249 = vset.pattern.permute.xlu1 %v2276_v38  ;;  %2248 = vset.pattern.permute.xlu0 %v2276_v38  ;;  %v2659_v48 = vld [vmem:[%s3324_s2 + $0xc8] sm:$0xff]  ;;  %v2167_v49 = vld [vmem:[%s2603_s15 + $0x100] sm:$0xff]  ;;  %v2682_v53 = vld [vmem:[%s3324_s2 + $0x38] sm:$0xff] }
  0x83   : > { %824 = vmatpush.msra.mxu0 %v2593_v36  ;;  %2190 = vmatpush.msra.mxu2 %v2593_v36  ;;  %v2135_v50 = vld [vmem:[%s2603_s15 + $0x80] sm:$0xff]  ;;  %v2689_v54 = vld [vmem:[%s3324_s2 + $0xb8] sm:$0xff]  ;;  %v2696_v55 = vld [vmem:[%s3324_s2 + $0x30] sm:$0xff] }
  0x84   : > { %889 = vmatpush.msra.mxu1 %v2600_v37  ;;  %2206 = vmatpush.msra.mxu3 %v2600_v37  ;;  %v2670_v51 = vld [vmem:[%s3324_s2 + $0x40] sm:$0xff]  ;;  %v2703_v56 = vld [vmem:[%s3324_s2 + $0xb0] sm:$0xff]  ;;  %v2136_v57 = vld [vmem:[%s2603_s15 + $0x88] sm:$0xff] }
  0x85   : > { %975 = vperm.xlu1 %2249, %v953_v39   ;;  %970 = vperm.xlu0 %2248, %v952_v40   ;;  %v2677_v52 = vld [vmem:[%s3324_s2 + $0xc0] sm:$0xff]  ;;  %v2712_v58 = vld [vmem:[%s3324_s2 + $0x28] sm:$0xff]  ;;  %v2137_v60 = vld [vmem:[%s2603_s15 + $0x90] sm:$0xff] }
  0x86   : > { %825 = vmatpush.msra.mxu0 %v2612_v41  ;;  %2191 = vmatpush.msra.mxu2 %v2612_v41  ;;  %v2719_v59 = vld [vmem:[%s3324_s2 + $0xa8] sm:$0xff]  ;;  %v2729_v62 = vld [vmem:[%s3324_s2 + $0x20] sm:$0xff]  ;;  %v2741_v0 = vld [vmem:[%s3324_s2 + $0x18] sm:$0xff] }
  0x87   : > { %890 = vmatpush.msra.mxu1 %v2619_v42  ;;  %2207 = vmatpush.msra.mxu3 %v2619_v42  ;;  %v2168_v61 = vld [vmem:[%s2603_s15 + $0x108] sm:$0xff]  ;;  %v2736_v63 = vld [vmem:[%s3324_s2 + $0xa0] sm:$0xff]  ;;  %v2748_v1 = vld [vmem:[%s3324_s2 + $0x98] sm:$0xff] }
  0x88   : > { %826 = vmatpush.msra.mxu0 %v2624_v43  ;;  %2192 = vmatpush.msra.mxu2 %v2624_v43  ;;  %v2755_v2 = vld [vmem:[%s3324_s2 + $0x10] sm:$0xff]  ;;  %v2770_v5 = vld [vmem:[%s3324_s2 + $0x8] sm:$0xff]  ;;  %v774_v7 = vld [vmem:[%s2780_s12] sm:$0xff] }
  0x89   : > { %891 = vmatpush.msra.mxu1 %v2631_v44  ;;  %2208 = vmatpush.msra.mxu3 %v2631_v44  ;;  %v2762_v3 = vld [vmem:[%s3324_s2 + $0x90] sm:$0xff]  ;;  %v2777_v6 = vld [vmem:[%s3324_s2 + $0x88] sm:$0xff]  ;;  %v2138_v8 = vld [vmem:[%s2603_s15 + $0x98] sm:$0xff]  ;;  %v790_v13 = vunpack.c.l.bf16 %v774_v7  ;;  %v791_v15 = vunpack.c.h.bf16 %v774_v7 }
  0x8a   : > { %827 = vmatpush.msra.mxu0 %v2638_v45  ;;  %2193 = vmatpush.msra.mxu2 %v2638_v45  ;;  %v954_v4 = vld [vmem:[%s2603_s15 + $0x10] sm:$0xff]  ;;  %v782_v9 = vld [vmem:[%s2780_s12 + $0x40] sm:$0xff]  ;;  %v955_v17 = vld [vmem:[%s2603_s15 + $0x18] sm:$0xff] }
  0x8b   : > { %892 = vmatpush.msra.mxu1 %v2645_v46  ;;  %2209 = vmatpush.msra.mxu3 %v2645_v46  ;;  %v2169_v10 = vld [vmem:[%s2603_s15 + $0x110] sm:$0xff]  ;;  %v2792_v11 = vld [vmem:[%s3324_s2] sm:$0xff]  ;;  %v806_v14 = vunpack.c.l.bf16 %v782_v9  ;;  %v807_v16 = vunpack.c.h.bf16 %v782_v9  ;;  %v775_v18 = vld [vmem:[%s2780_s12 + $0x8] sm:$0xff] }
  0x8c   : > { %828 = vmatpush.msra.mxu0 %v2652_v47  ;;  %2194 = vmatpush.msra.mxu2 %v2652_v47  ;;  %v2799_v12 = vld [vmem:[%s3324_s2 + $0x80] sm:$0xff]  ;;  %v783_v20 = vld [vmem:[%s2780_s12 + $0x48] sm:$0xff]  ;;  %v2170_v21 = vld [vmem:[%s2603_s15 + $0x118] sm:$0xff]  ;;  %v792_v22 = vunpack.c.l.bf16 %v775_v18  ;;  %v793_v24 = vunpack.c.h.bf16 %v775_v18 }
  0x8d   : > { %893 = vmatpush.msra.mxu1 %v2659_v48  ;;  %2210 = vmatpush.msra.mxu3 %v2659_v48  ;;  %v2139_v19 = vld [vmem:[%s2603_s15 + $0xa0] sm:$0xff]  ;;  %v808_v23 = vunpack.c.l.bf16 %v783_v20  ;;  %v809_v25 = vunpack.c.h.bf16 %v783_v20  ;;  %v776_v27 = vld [vmem:[%s2780_s12 + $0x10] sm:$0xff]  ;;  %v2140_v28 = vld [vmem:[%s2603_s15 + $0xa8] sm:$0xff] }
  0x8e   : > { %1554 = vperm.xlu1 %2249, %v2167_v49   ;;  %1262 = vperm.xlu0 %2248, %v2135_v50   ;;  %v956_v26 = vld [vmem:[%s2603_s15 + $0x20] sm:$0xff]  ;;  %v784_v29 = vld [vmem:[%s2780_s12 + $0x50] sm:$0xff]  ;;  %v794_v31 = vunpack.c.l.bf16 %v776_v27  ;;  %v785_v40 = vld [vmem:[%s2780_s12 + $0x58] sm:$0xff] }
  0x8f   : > { %829 = vmatpush.msra.mxu0 %v2670_v51  ;;  %2195 = vmatpush.msra.mxu2 %v2670_v51  ;;  %v2171_v30 = vld [vmem:[%s2603_s15 + $0x120] sm:$0xff]  ;;  %v2141_v39 = vld [vmem:[%s2603_s15 + $0xb0] sm:$0xff]  ;;  %v812_v49 = vunpack.c.l.bf16 %v785_v40  ;;  %v959_v7 = vld [vmem:[%s2603_s15 + $0x38] sm:$0xff] }
  0x90   : > { %894 = vmatpush.msra.mxu1 %v2677_v52  ;;  %2211 = vmatpush.msra.mxu3 %v2677_v52  ;;  %v787_v9 = vld [vmem:[%s2780_s12 + $0x68] sm:$0xff]  ;;  %v781_v18 = vld [vmem:[%s2780_s12 + $0x38] sm:$0xff] }
  0x91   : > { %830 = vmatpush.msra.mxu0 %v2682_v53  ;;  %2196 = vmatpush.msra.mxu2 %v2682_v53  ;;  %v789_v20 = vld [vmem:[%s2780_s12 + $0x78] sm:$0xff] }
  0x92   : > { %895 = vmatpush.msra.mxu1 %v2689_v54  ;;  %2212 = vmatpush.msra.mxu3 %v2689_v54 }
  0x93   : > { %2250 = vset.pattern.permute.xlu2 %v2276_v38  ;;  %831 = vmatpush.msra.mxu0 %v2696_v55  ;;  %v777_v38 = vld [vmem:[%s2780_s12 + $0x18] sm:$0xff] }
  0x94   : > { %2197 = vmatpush.msra.mxu2 %v2696_v55  ;;  %896 = vmatpush.msra.mxu1 %v2703_v56  ;;  %v797_v50 = vunpack.c.h.bf16 %v777_v38 }
  0x95   : > { %2213 = vmatpush.msra.mxu3 %v2703_v56  ;;  %1267 = vperm.xlu2 %2250, %v2136_v57   ;;  %v778_v57 = vld [vmem:[%s2780_s12 + $0x20] sm:$0xff] }
  0x96   : > { %832 = vmatpush.msra.mxu0 %v2712_v58  ;;  %2198 = vmatpush.msra.mxu2 %v2712_v58 }
  0x97   : > { %897 = vmatpush.msra.mxu1 %v2719_v59  ;;  %2214 = vmatpush.msra.mxu3 %v2719_v59 }
  0x98   : > { %1272 = vperm.xlu1 %2249, %v2137_v60   ;;  %1559 = vperm.xlu0 %2248, %v2168_v61   ;;  %v786_v60 = vld [vmem:[%s2780_s12 + $0x60] sm:$0xff]  ;;  %v2173_v61 = vld [vmem:[%s2603_s15 + $0x130] sm:$0xff] }
  0x99   : > { %833 = vmatpush.msra.mxu0 %v2729_v62  ;;  %2199 = vmatpush.msra.mxu2 %v2729_v62 }
  0x9a   : > { %898 = vmatpush.msra.mxu1 %v2736_v63  ;;  %2215 = vmatpush.msra.mxu3 %v2736_v63 }
  0x9b   : > { %834 = vmatpush.msra.mxu0 %v2741_v0  ;;  %2200 = vmatpush.msra.mxu2 %v2741_v0 }
  0x9c   : > { %899 = vmatpush.msra.mxu1 %v2748_v1  ;;  %2216 = vmatpush.msra.mxu3 %v2748_v1 }
  0x9d   : > { %835 = vmatpush.msra.mxu0 %v2755_v2  ;;  %2201 = vmatpush.msra.mxu2 %v2755_v2 }
  0x9e   : > { %900 = vmatpush.msra.mxu1 %v2762_v3  ;;  %2217 = vmatpush.msra.mxu3 %v2762_v3 }
  0x9f   : > { %980 = vperm.xlu2 %2250, %v954_v4   ;;  %836 = vmatpush.msra.mxu0 %v2770_v5  ;;  %v799_v4 = vunpack.c.h.bf16 %v778_v57 }
  0xa0   : > { %2202 = vmatpush.msra.mxu2 %v2770_v5  ;;  %901 = vmatpush.msra.mxu1 %v2777_v6 }
  0xa1   : > { %2218 = vmatpush.msra.mxu3 %v2777_v6  ;;  %1277 = vperm.xlu1 %2249, %v2138_v8   ;;  %v2143_v8 = vld [vmem:[%s2603_s15 + $0xc0] sm:$0xff] }
  0xa2   : > { %1564 = vperm.xlu0 %2248, %v2169_v10   ;;  %837 = vmatpush.msra.mxu0 %v2792_v11 }
  0xa3   : > { %2203 = vmatpush.msra.mxu2 %v2792_v11  ;;  %902 = vmatpush.msra.mxu1 %v2799_v12 }
  0xa4   : > { %2219 = vmatpush.msra.mxu3 %v2799_v12  ;;  %838 = vmatmul.f32.vlgmr.msra.gmra.mxu0 %v790_v13  ;;  %v817_v13 = vunpack.c.h.bf16 %v787_v9 }
  0xa5   : > { %862 = vmatmul.f32.vlgmr.msra.gmra.mxu2 %v806_v14  ;;  %903 = vmatmul.f32.vlgmr.msra.gmra.mxu1 %v791_v15  ;;  %v2144_v14 = vld [vmem:[%s2603_s15 + $0xc8] sm:$0xff]  ;;  %v788_v15 = vld [vmem:[%s2780_s12 + $0x70] sm:$0xff] }
  0xa6   : > { %927 = vmatmul.f32.vlgmr.msra.gmra.mxu3 %v807_v16  ;;  %1113 = vmatpush.msrb.mxu2 %v2564_v32  ;;  %v2175_v16 = vld [vmem:[%s2603_s15 + $0x140] sm:$0xff] }
  0xa7   : > { %1178 = vmatpush.msrb.mxu3 %v2569_v33  ;;  %985 = vperm.xlu2 %2250, %v955_v17  }
  0xa8   : > { %1114 = vmatpush.msrb.mxu2 %v2574_v34  ;;  %1405 = vmatpush.msrb.mxu0 %v2564_v32  ;;  %v810_v32 = vunpack.c.l.bf16 %v784_v29 }
  0xa9   : > { %1179 = vmatpush.msrb.mxu3 %v2582_v35  ;;  %1282 = vperm.xlu1 %2249, %v2139_v19   ;;  %v2145_v19 = vld [vmem:[%s2603_s15 + $0xd0] sm:$0xff] }
  0xaa   : > { %1569 = vperm.xlu0 %2248, %v2170_v21   ;;  %1115 = vmatpush.msrb.mxu2 %v2593_v36  ;;  %v2176_v21 = vld [vmem:[%s2603_s15 + $0x148] sm:$0xff] }
  0xab   : > { %1180 = vmatpush.msrb.mxu3 %v2600_v37  ;;  %1470 = vmatpush.msrb.mxu1 %v2569_v33  ;;  %v795_v33 = vunpack.c.h.bf16 %v776_v27  ;;  %v1780_v27 = vld [vmem:[%s3326_s4 + $0x178] sm:$0xff] }
  0xac   : > { %841 = vmatmul.f32.gmra.mxu0 %v792_v22  ;;  %1116 = vmatpush.msrb.mxu2 %v2612_v41  ;;  %v805_v22 = vunpack.c.h.bf16 %v781_v18 }
  0xad   : > { %865 = vmatmul.f32.gmra.mxu2 %v808_v23  ;;  %906 = vmatmul.f32.gmra.mxu1 %v793_v24  ;;  %v821_v23 = vunpack.c.h.bf16 %v789_v20  ;;  %v1764_v24 = vld [vmem:[%s3326_s4 + $0xf8] sm:$0xff] }
  0xae   : > { %930 = vmatmul.f32.gmra.mxu3 %v809_v25  ;;  %1406 = vmatpush.msrb.mxu0 %v2574_v34  ;;  %v811_v34 = vunpack.c.h.bf16 %v784_v29  ;;  %v2146_v25 = vld [vmem:[%s2603_s15 + $0xd8] sm:$0xff]  ;;  %v1763_v29 = vld [vmem:[%s3326_s4 + $0xf0] sm:$0xff] }
  0xaf   : > { %990 = vperm.xlu2 %2250, %v956_v26   ;;  %1181 = vmatpush.msrb.mxu3 %v2619_v42  ;;  %v2177_v26 = vld [vmem:[%s2603_s15 + $0x150] sm:$0xff] }
  0xb0   : > { %1471 = vmatpush.msrb.mxu1 %v2582_v35  ;;  %1117 = vmatpush.msrb.mxu2 %v2624_v43  ;;  %v957_v35 = vld [vmem:[%s2603_s15 + $0x28] sm:$0xff] }
  0xb1   : > { %1287 = vperm.xlu1 %2249, %v2140_v28   ;;  %1182 = vmatpush.msrb.mxu3 %v2631_v44 }
  0xb2   : > { %1574 = vperm.xlu0 %2248, %v2171_v30   ;;  %1407 = vmatpush.msrb.mxu0 %v2593_v36  ;;  %v2172_v36 = vld [vmem:[%s2603_s15 + $0x128] sm:$0xff] }
  0xb3   : > { %1472 = vmatpush.msrb.mxu1 %v2600_v37  ;;  %1118 = vmatpush.msrb.mxu2 %v2638_v45  ;;  %v796_v37 = vunpack.c.l.bf16 %v777_v38  ;;  %v2152_v38 = vld [vmem:[%s2780_s12 + $0x108] sm:$0xff] }
  0xb4   : > { %844 = vmatmul.f32.gmra.mxu0 %v794_v31  ;;  %1183 = vmatpush.msrb.mxu3 %v2645_v46  ;;  %v1746_v31 = vld [vmem:[%s3326_s4 + $0x68] sm:$0xff] }
  0xb5   : > { %868 = vmatmul.f32.gmra.mxu2 %v810_v32  ;;  %909 = vmatmul.f32.gmra.mxu1 %v795_v33  ;;  %v1779_v33 = vld [vmem:[%s3326_s4 + $0x170] sm:$0xff] }
  0xb6   : > { %933 = vmatmul.f32.gmra.mxu3 %v811_v34  ;;  %1408 = vmatpush.msrb.mxu0 %v2612_v41  ;;  %v813_v41 = vunpack.c.h.bf16 %v785_v40  ;;  %v963_v34 = vld [vmem:[%s2603_s15 + $0x58] sm:$0xff]  ;;  %v1745_v40 = vld [vmem:[%s3326_s4 + $0x60] sm:$0xff] }
  0xb7   : > { %995 = vperm.xlu2 %2250, %v957_v35   ;;  %1473 = vmatpush.msrb.mxu1 %v2619_v42  ;;  %v958_v42 = vld [vmem:[%s2603_s15 + $0x30] sm:$0xff]  ;;  %v1661_v35 = vld [vmem:[%s3325_s3 + $0x68] sm:$0xff] }
  0xb8   : > { %1119 = vmatpush.msrb.mxu2 %v2652_v47  ;;  %1184 = vmatpush.msrb.mxu3 %v2659_v48 }
  0xb9   : > { %1292 = vperm.xlu1 %2249, %v2141_v39   ;;  %1409 = vmatpush.msrb.mxu0 %v2624_v43  ;;  %v2142_v43 = vld [vmem:[%s2603_s15 + $0xb8] sm:$0xff]  ;;  %v1762_v39 = vld [vmem:[%s3326_s4 + $0xe8] sm:$0xff] }
  0xba   : > { %1579 = vperm.xlu0 %2248, %v2172_v36   ;;  %1474 = vmatpush.msrb.mxu1 %v2631_v44  ;;  %v798_v44 = vunpack.c.l.bf16 %v778_v57  ;;  %v2147_v36 = vld [vmem:[%s2603_s15 + $0xe0] sm:$0xff] }
  0xbb   : > { %1120 = vmatpush.msrb.mxu2 %v2670_v51  ;;  %1185 = vmatpush.msrb.mxu3 %v2677_v52  ;;  %v1761_v57 = vld [vmem:[%s3326_s4 + $0xe0] sm:$0xff] }
  0xbc   : > { %847 = vmatmul.f32.gmra.mxu0 %v796_v37  ;;  %1475 = vmatpush.msrb.mxu1 %v2645_v46  ;;  %v814_v46 = vunpack.c.l.bf16 %v786_v60  ;;  %v2120_v37 = vld [vmem:[%s2780_s12 + $0x88] sm:$0xff] }
  0xbd   : > { %871 = vmatmul.f32.gmra.mxu2 %v812_v49  ;;  %912 = vmatmul.f32.gmra.mxu1 %v797_v50  ;;  %v1778_v49 = vld [vmem:[%s3326_s4 + $0x168] sm:$0xff]  ;;  %v2178_v50 = vld [vmem:[%s2603_s15 + $0x158] sm:$0xff] }
  0xbe   : > { %936 = vmatmul.f32.gmra.mxu3 %v813_v41  ;;  %1410 = vmatpush.msrb.mxu0 %v2638_v45  ;;  %v815_v45 = vunpack.c.h.bf16 %v786_v60  ;;  %v1660_v41 = vld [vmem:[%s3325_s3 + $0x60] sm:$0xff]  ;;  %v1083_v60 = vunpack.c.l.bf16 %v2120_v37 }
  0xbf   : > { %1000 = vperm.xlu2 %2250, %v958_v42   ;;  %1121 = vmatpush.msrb.mxu2 %v2682_v53  ;;  %v1375_v42 = vunpack.c.l.bf16 %v2152_v38 }
  0xc0   : > { %1186 = vmatpush.msrb.mxu3 %v2689_v54  ;;  %1411 = vmatpush.msrb.mxu0 %v2652_v47  ;;  %v779_v47 = vld [vmem:[%s2780_s12 + $0x28] sm:$0xff] }
  0xc1   : > { %1297 = vperm.xlu1 %2249, %v2142_v43   ;;  %1476 = vmatpush.msrb.mxu1 %v2659_v48  ;;  %v2174_v48 = vld [vmem:[%s2603_s15 + $0x138] sm:$0xff]  ;;  %v800_v10 = vunpack.c.l.bf16 %v779_v47 }
  0xc2   : > { %1584 = vperm.xlu0 %2248, %v2173_v61   ;;  %1122 = vmatpush.msrb.mxu2 %v2696_v55  ;;  %v1744_v43 = vld [vmem:[%s3326_s4 + $0x58] sm:$0xff]  ;;  %v1376_v61 = vunpack.c.h.bf16 %v2152_v38 }
  0xc3   : > { %1187 = vmatpush.msrb.mxu3 %v2703_v56  ;;  %1412 = vmatpush.msrb.mxu0 %v2670_v51  ;;  %v816_v51 = vunpack.c.l.bf16 %v787_v9  ;;  %v1760_v9 = vld [vmem:[%s3326_s4 + $0xd8] sm:$0xff] }
  0xc4   : > { %850 = vmatmul.f32.gmra.mxu0 %v798_v44  ;;  %1477 = vmatpush.msrb.mxu1 %v2677_v52  ;;  %v801_v52 = vunpack.c.h.bf16 %v779_v47  ;;  %v1777_v44 = vld [vmem:[%s3326_s4 + $0x160] sm:$0xff]  ;;  %v2121_v47 = vld [vmem:[%s2780_s12 + $0x90] sm:$0xff] }
  0xc5   : > { %874 = vmatmul.f32.gmra.mxu2 %v814_v46  ;;  %915 = vmatmul.f32.gmra.mxu1 %v799_v4  ;;  %v1084_v46 = vunpack.c.h.bf16 %v2120_v37  ;;  %v1659_v4 = vld [vmem:[%s3325_s3 + $0x58] sm:$0xff]  ;;  %v2157_v37 = vld [vmem:[%s2780_s12 + $0x130] sm:$0xff] }
  0xc6   : > { %939 = vmatmul.f32.gmra.mxu3 %v815_v45  ;;  %1123 = vmatpush.msrb.mxu2 %v2712_v58  ;;  %v964_v45 = vld [vmem:[%s2603_s15 + $0x60] sm:$0xff] }
  0xc7   : > { %1005 = vperm.xlu2 %2250, %v959_v7   ;;  %1188 = vmatpush.msrb.mxu3 %v2719_v59  ;;  %v2148_v7 = vld [vmem:[%s2603_s15 + $0xe8] sm:$0xff] }
  0xc8   : > { %1413 = vmatpush.msrb.mxu0 %v2682_v53  ;;  %1478 = vmatpush.msrb.mxu1 %v2689_v54  ;;  %v960_v53 = vld [vmem:[%s2603_s15 + $0x40] sm:$0xff]  ;;  %v780_v54 = vld [vmem:[%s2780_s12 + $0x30] sm:$0xff] }
  0xc9   : > { %1302 = vperm.xlu1 %2249, %v2143_v8   ;;  %1124 = vmatpush.msrb.mxu2 %v2729_v62  ;;  %v803_v17 = vunpack.c.h.bf16 %v780_v54  ;;  %v2153_v8 = vld [vmem:[%s2780_s12 + $0x110] sm:$0xff] }
  0xca   : > { %1589 = vperm.xlu0 %2248, %v2174_v48   ;;  %1189 = vmatpush.msrb.mxu3 %v2736_v63  ;;  %v1743_v48 = vld [vmem:[%s3326_s4 + $0x50] sm:$0xff] }
  0xcb   : > { %1414 = vmatpush.msrb.mxu0 %v2696_v55  ;;  %1479 = vmatpush.msrb.mxu1 %v2703_v56  ;;  %v802_v55 = vunpack.c.l.bf16 %v780_v54  ;;  %v818_v56 = vunpack.c.l.bf16 %v788_v15  ;;  %v1378_v54 = vunpack.c.h.bf16 %v2153_v8 }
  0xcc   : > { %853 = vmatmul.f32.gmra.mxu0 %v800_v10  ;;  %1125 = vmatpush.msrb.mxu2 %v2741_v0  ;;  %v1776_v10 = vld [vmem:[%s3326_s4 + $0x158] sm:$0xff] }
  0xcd   : > { %877 = vmatmul.f32.gmra.mxu2 %v816_v51  ;;  %918 = vmatmul.f32.gmra.mxu1 %v801_v52  ;;  %v2179_v51 = vld [vmem:[%s2603_s15 + $0x160] sm:$0xff]  ;;  %v1658_v52 = vld [vmem:[%s3325_s3 + $0x50] sm:$0xff] }
  0xce   : > { %942 = vmatmul.f32.gmra.mxu3 %v817_v13  ;;  %1415 = vmatpush.msrb.mxu0 %v2712_v58  ;;  %v819_v58 = vunpack.c.h.bf16 %v788_v15  ;;  %v1377_v13 = vunpack.c.l.bf16 %v2153_v8  ;;  %v965_v15 = vld [vmem:[%s2603_s15 + $0x68] sm:$0xff] }
  0xcf   : > { %1010 = vperm.xlu2 %2250, %v960_v53   ;;  %1190 = vmatpush.msrb.mxu3 %v2748_v1  ;;  %v1085_v53 = vunpack.c.l.bf16 %v2121_v47 }
  0xd0   : > { %1480 = vmatpush.msrb.mxu1 %v2719_v59  ;;  %1126 = vmatpush.msrb.mxu2 %v2755_v2  ;;  %v961_v59 = vld [vmem:[%s2603_s15 + $0x48] sm:$0xff] }
  0xd1   : > { %1307 = vperm.xlu1 %2249, %v2144_v14   ;;  %1191 = vmatpush.msrb.mxu3 %v2762_v3  ;;  %v1086_v14 = vunpack.c.h.bf16 %v2121_v47 }
  0xd2   : > { %1594 = vperm.xlu0 %2248, %v2175_v16   ;;  %1416 = vmatpush.msrb.mxu0 %v2729_v62  ;;  %v804_v62 = vunpack.c.l.bf16 %v781_v18  ;;  %v2149_v16 = vld [vmem:[%s2603_s15 + $0xf0] sm:$0xff]  ;;  %v2180_v18 = vld [vmem:[%s2603_s15 + $0x168] sm:$0xff] }
  0xd3   : > { %1481 = vmatpush.msrb.mxu1 %v2736_v63  ;;  %1127 = vmatpush.msrb.mxu2 %v2770_v5  ;;  %v820_v63 = vunpack.c.l.bf16 %v789_v20 }
  0xd4   : > { %856 = vmatmul.f32.gmra.mxu0 %v802_v55  ;;  %1192 = vmatpush.msrb.mxu3 %v2777_v6  ;;  %v2122_v55 = vld [vmem:[%s2780_s12 + $0x98] sm:$0xff] }
  0xd5   : > { %880 = vmatmul.f32.gmra.mxu2 %v818_v56  ;;  %921 = vmatmul.f32.gmra.mxu1 %v803_v17  ;;  %v2154_v56 = vld [vmem:[%s2780_s12 + $0x118] sm:$0xff]  ;;  %v1759_v17 = vld [vmem:[%s3326_s4 + $0xd0] sm:$0xff] }
  0xd6   : > { %945 = vmatmul.f32.gmra.mxu3 %v819_v58  ;;  %1417 = vmatpush.msrb.mxu0 %v2741_v0  ;;  %v1748_v0 = vld [vmem:[%s3326_s4 + $0x78] sm:$0xff]  ;;  %v1742_v58 = vld [vmem:[%s3326_s4 + $0x48] sm:$0xff]  ;;  %v1379_v20 = vunpack.c.l.bf16 %v2154_v56 }
  0xd7   : > { %1015 = vperm.xlu2 %2250, %v961_v59   ;;  %1482 = vmatpush.msrb.mxu1 %v2748_v1  ;;  %v962_v1 = vld [vmem:[%s2603_s15 + $0x50] sm:$0xff] }
  0xd8   : > { %1418 = vmatpush.msrb.mxu0 %v2755_v2  ;;  %1128 = vmatpush.msrb.mxu2 %v2792_v11  ;;  %v2151_v2 = vld [vmem:[%s2780_s12 + $0x100] sm:$0xff]  ;;  %v1775_v59 = vld [vmem:[%s3326_s4 + $0x150] sm:$0xff] }
  0xd9   : > { %1312 = vperm.xlu1 %2249, %v2145_v19   ;;  %1483 = vmatpush.msrb.mxu1 %v2762_v3  ;;  %v1663_v3 = vld [vmem:[%s3325_s3 + $0x78] sm:$0xff]  ;;  %v1373_v28 = vunpack.c.l.bf16 %v2151_v2  ;;  %v1657_v19 = vld [vmem:[%s3325_s3 + $0x48] sm:$0xff] }
  0xda   : > { %1599 = vperm.xlu0 %2248, %v2176_v21   ;;  %1193 = vmatpush.msrb.mxu3 %v2799_v12  ;;  %v1087_v21 = vunpack.c.l.bf16 %v2122_v55 }
  0xdb   : > { %1419 = vmatpush.msrb.mxu0 %v2770_v5  ;;  %1484 = vmatpush.msrb.mxu1 %v2777_v6  ;;  %v2119_v5 = vld [vmem:[%s2780_s12 + $0x80] sm:$0xff]  ;;  %v1747_v6 = vld [vmem:[%s3326_s4 + $0x70] sm:$0xff] }
  0xdc   : > { %859 = vmatmul.f32.gmra.mxu0 %v804_v62  ;;  %1781 = vmatpush.msra.mxu3 %v1748_v0  ;;  %v1081_v30 = vunpack.c.l.bf16 %v2119_v5  ;;  %v1082_v32 = vunpack.c.h.bf16 %v2119_v5  ;;  %v1380_v62 = vunpack.c.h.bf16 %v2154_v56  ;;  %v2150_v0 = vld [vmem:[%s2603_s15 + $0xf8] sm:$0xff]  ;;  %v1656_v5 = vld [vmem:[%s3325_s3 + $0x40] sm:$0xff] }
  0xdd   : > { %883 = vmatmul.f32.gmra.mxu2 %v820_v63  ;;  %924 = vmatmul.f32.gmra.mxu1 %v805_v22  ;;  %v1088_v63 = vunpack.c.h.bf16 %v2122_v55  ;;  %v966_v22 = vld [vmem:[%s2603_s15 + $0x70] sm:$0xff] }
  0xde   : > { %948 = vmatmul.f32.gmra.mxu3 %v821_v23  ;;  %1420 = vmatpush.msrb.mxu0 %v2792_v11  ;;  %v1662_v11 = vld [vmem:[%s3325_s3 + $0x70] sm:$0xff]  ;;  %v2123_v23 = vld [vmem:[%s2780_s12 + $0xa0] sm:$0xff] }
  0xdf   : > { %1020 = vperm.xlu2 %2250, %v962_v1   ;;  %1485 = vmatpush.msrb.mxu1 %v2799_v12  ;;  %v1374_v12 = vunpack.c.h.bf16 %v2151_v2  ;;  %v2155_v1 = vld [vmem:[%s2780_s12 + $0x120] sm:$0xff]  ;;  %v1758_v2 = vld [vmem:[%s3326_s4 + $0xc8] sm:$0xff] }
  0xe0   : > { %1668 = vmatpush.msra.mxu2 %v1663_v3  ;;  %1846 = vmatpush.msra.mxu0 %v1764_v24  ;;  %v1741_v3 = vld [vmem:[%s3326_s4 + $0x40] sm:$0xff]  ;;  %v1774_v24 = vld [vmem:[%s3326_s4 + $0x148] sm:$0xff] }
  0xe1   : > { %1317 = vperm.xlu1 %2249, %v2146_v25   ;;  %1782 = vmatpush.msra.mxu3 %v1747_v6  ;;  %v2181_v25 = vld [vmem:[%s2603_s15 + $0x170] sm:$0xff]  ;;  %v1381_v6 = vunpack.c.l.bf16 %v2155_v1 }
  0xe2   : > { %1604 = vperm.xlu0 %2248, %v2177_v26   ;;  %1911 = vmatpush.msra.mxu1 %v1780_v27  ;;  %v1089_v26 = vunpack.c.l.bf16 %v2123_v23  ;;  %v1382_v27 = vunpack.c.h.bf16 %v2155_v1 }
  0xe3   : > { %1669 = vmatpush.msra.mxu2 %v1662_v11  ;;  %1847 = vmatpush.msra.mxu0 %v1763_v29  ;;  %v967_v11 = vld [vmem:[%s2603_s15 + $0x78] sm:$0xff]  ;;  %v2124_v29 = vld [vmem:[%s2780_s12 + $0xa8] sm:$0xff] }
  0xe4   : > { %1421 = vmatmul.f32.vlgmr.msrb.gmra.mxu0 %v1373_v28  ;;  %1783 = vmatpush.msra.mxu3 %v1746_v31  ;;  %v1090_v28 = vunpack.c.h.bf16 %v2123_v23  ;;  %v1740_v31 = vld [vmem:[%s3326_s4 + $0x38] sm:$0xff]  ;;  %v1092_v38 = vunpack.c.h.bf16 %v2124_v29 }
  0xe5   : > { %1129 = vmatmul.f32.vlgmr.msrb.gmra.mxu2 %v1081_v30  ;;  %1486 = vmatmul.f32.vlgmr.msrb.gmra.mxu1 %v1374_v12  ;;  %v2156_v30 = vld [vmem:[%s2780_s12 + $0x128] sm:$0xff]  ;;  %v1757_v12 = vld [vmem:[%s3326_s4 + $0xc0] sm:$0xff] }
  0xe6   : > { %1194 = vmatmul.f32.vlgmr.msrb.gmra.mxu3 %v1082_v32  ;;  %1912 = vmatpush.msra.mxu1 %v1779_v33  ;;  %v1773_v32 = vld [vmem:[%s3326_s4 + $0x140] sm:$0xff]  ;;  %v1383_v33 = vunpack.c.l.bf16 %v2156_v30 }
  0xe7   : > { %1025 = vperm.xlu2 %2250, %v963_v34   ;;  %1670 = vmatpush.msra.mxu2 %v1661_v35  ;;  %v1091_v34 = vunpack.c.l.bf16 %v2124_v29  ;;  %v1384_v35 = vunpack.c.h.bf16 %v2156_v30 }
  0xe8   : > { %1848 = vmatpush.msra.mxu0 %v1762_v39  ;;  %1784 = vmatpush.msra.mxu3 %v1745_v40  ;;  %v1655_v39 = vld [vmem:[%s3325_s3 + $0x38] sm:$0xff] }
  0xe9   : > { %1322 = vperm.xlu1 %2249, %v2147_v36   ;;  %1913 = vmatpush.msra.mxu1 %v1778_v49  ;;  %v2182_v40 = vld [vmem:[%s2603_s15 + $0x178] sm:$0xff]  ;;  %v2125_v36 = vld [vmem:[%s2780_s12 + $0xb0] sm:$0xff]  ;;  %s2118_s15 = sshll.u32 %s2106_s24, 7 }
  0xea   : > { %1609 = vperm.xlu0 %2248, %v2178_v50   ;;  %1671 = vmatpush.msra.mxu2 %v1660_v41  ;;  %v1756_v49 = vld [vmem:[%s3326_s4 + $0xb8] sm:$0xff]  ;;  %v1739_v50 = vld [vmem:[%s3326_s4 + $0x30] sm:$0xff]  ;;  %s3209_s30 = scalar_lea.vmem %s3324_s2, %s2118_s15 }
  0xeb   : > { %1849 = vmatpush.msra.mxu0 %v1761_v57  ;;  %1785 = vmatpush.msra.mxu3 %v1744_v43  ;;  %v1772_v41 = vld [vmem:[%s3326_s4 + $0x138] sm:$0xff]  ;;  %v1093_v57 = vunpack.c.l.bf16 %v2125_v36  ;;  %v1386_v43 = vunpack.c.h.bf16 %v2157_v37 }
  0xec   : > { %1424 = vmatmul.f32.gmra.mxu0 %v1375_v42  ;;  %1914 = vmatpush.msra.mxu1 %v1777_v44  ;;  %v1385_v42 = vunpack.c.l.bf16 %v2157_v37  ;;  %v2126_v44 = vld [vmem:[%s2780_s12 + $0xb8] sm:$0xff]  ;;  %v1734_v37 = vld [vmem:[%s3326_s4 + $0x8] sm:$0xff] }
  0xed   : > { %1132 = vmatmul.f32.gmra.mxu2 %v1083_v60  ;;  %1489 = vmatmul.f32.gmra.mxu1 %v1376_v61  ;;  %v1094_v60 = vunpack.c.h.bf16 %v2125_v36  ;;  %v1654_v61 = vld [vmem:[%s3325_s3 + $0x30] sm:$0xff]  ;;  %v1095_v8 = vunpack.c.l.bf16 %v2126_v44 }
  0xee   : > { %1197 = vmatmul.f32.gmra.mxu3 %v1084_v46  ;;  %1672 = vmatpush.msra.mxu2 %v1659_v4  ;;  %v2158_v46 = vld [vmem:[%s2780_s12 + $0x138] sm:$0xff]  ;;  %v1755_v4 = vld [vmem:[%s3326_s4 + $0xb0] sm:$0xff] }
  0xef   : > { %1030 = vperm.xlu2 %2250, %v964_v45   ;;  %1850 = vmatpush.msra.mxu0 %v1760_v9  ;;  %v1738_v45 = vld [vmem:[%s3326_s4 + $0x28] sm:$0xff]  ;;  %v1387_v47 = vunpack.c.l.bf16 %v2158_v46  ;;  %v1388_v9 = vunpack.c.h.bf16 %v2158_v46  ;;  %v1751_v36 = vld [vmem:[%s3326_s4 + $0x90] sm:$0xff] }
  0xf0   : > { %1786 = vmatpush.msra.mxu3 %v1743_v48  ;;  %1915 = vmatpush.msra.mxu1 %v1776_v10  ;;  %v1096_v48 = vunpack.c.h.bf16 %v2126_v44  ;;  %v1653_v10 = vld [vmem:[%s3325_s3 + $0x28] sm:$0xff] }
  0xf1   : > { %1327 = vperm.xlu1 %2249, %v2148_v7   ;;  %1673 = vmatpush.msra.mxu2 %v1658_v52  ;;  %v1771_v7 = vld [vmem:[%s3326_s4 + $0x130] sm:$0xff]  ;;  %v2159_v52 = vld [vmem:[%s2780_s12 + $0x140] sm:$0xff] }
  0xf2   : > { %1614 = vperm.xlu0 %2248, %v2179_v51   ;;  %1851 = vmatpush.msra.mxu0 %v1759_v17  ;;  %v2127_v51 = vld [vmem:[%s2780_s12 + $0xc0] sm:$0xff]  ;;  %v1390_v55 = vunpack.c.h.bf16 %v2159_v52 }
  0xf3   : > { %1787 = vmatpush.msra.mxu3 %v1742_v58  ;;  %1916 = vmatpush.msra.mxu1 %v1775_v59  ;;  %v1098_v17 = vunpack.c.h.bf16 %v2127_v51  ;;  %v1652_v58 = vld [vmem:[%s3325_s3 + $0x20] sm:$0xff]  ;;  %v2128_v59 = vld [vmem:[%s2780_s12 + $0xc8] sm:$0xff] }
  0xf4   : > { %1427 = vmatmul.f32.gmra.mxu0 %v1377_v13  ;;  %1674 = vmatpush.msra.mxu2 %v1657_v19  ;;  %v1754_v13 = vld [vmem:[%s3326_s4 + $0xa8] sm:$0xff]  ;;  %v1753_v19 = vld [vmem:[%s3326_s4 + $0xa0] sm:$0xff] }
  0xf5   : > { %1135 = vmatmul.f32.gmra.mxu2 %v1085_v53  ;;  %1492 = vmatmul.f32.gmra.mxu1 %v1378_v54  ;;  %v1737_v53 = vld [vmem:[%s3326_s4 + $0x20] sm:$0xff]  ;;  %v1770_v54 = vld [vmem:[%s3326_s4 + $0x128] sm:$0xff] }
  0xf6   : > { %1200 = vmatmul.f32.gmra.mxu3 %v1086_v14  ;;  %1852 = vmatpush.msra.mxu0 %v1758_v2  ;;  %v1389_v14 = vunpack.c.l.bf16 %v2159_v52 }
  0xf7   : > { %1035 = vperm.xlu2 %2250, %v965_v15   ;;  %1788 = vmatpush.msra.mxu3 %v1741_v3 }
  0xf8   : > { %1917 = vmatpush.msra.mxu1 %v1774_v24  ;;  %1675 = vmatpush.msra.mxu2 %v1656_v5  ;;  %v1100_v24 = vunpack.c.h.bf16 %v2128_v59  ;;  %v2129_v5 = vld [vmem:[%s2780_s12 + $0xd0] sm:$0xff] }
  0xf9   : > { %1332 = vperm.xlu1 %2249, %v2149_v16   ;;  %1853 = vmatpush.msra.mxu0 %v1757_v12  ;;  %v1097_v16 = vunpack.c.l.bf16 %v2127_v51  ;;  %v1101_v12 = vunpack.c.l.bf16 %v2129_v5 }
  0xfa   : > { %1619 = vperm.xlu0 %2248, %v2180_v18   ;;  %1789 = vmatpush.msra.mxu3 %v1740_v31  ;;  %v2160_v18 = vld [vmem:[%s2780_s12 + $0x148] sm:$0xff] }
  0xfb   : > { %1918 = vmatpush.msra.mxu1 %v1773_v32  ;;  %1676 = vmatpush.msra.mxu2 %v1655_v39  ;;  %v1392_v23 = vunpack.c.h.bf16 %v2160_v18  ;;  %v2130_v39 = vld [vmem:[%s2780_s12 + $0xd8] sm:$0xff] }
  0xfc   : > { %1430 = vmatmul.f32.gmra.mxu0 %v1379_v20  ;;  %1790 = vmatpush.msra.mxu3 %v1739_v50  ;;  %v1736_v20 = vld [vmem:[%s3326_s4 + $0x18] sm:$0xff]  ;;  %v1104_v46 = vunpack.c.h.bf16 %v2130_v39 }
  0xfd   : > { %1138 = vmatmul.f32.gmra.mxu2 %v1087_v21  ;;  %1495 = vmatmul.f32.gmra.mxu1 %v1380_v62  ;;  %v1769_v21 = vld [vmem:[%s3326_s4 + $0x120] sm:$0xff] }
  0xfe   : > { %1203 = vmatmul.f32.gmra.mxu3 %v1088_v63  ;;  %1854 = vmatpush.msra.mxu0 %v1756_v49  ;;  %v1391_v63 = vunpack.c.l.bf16 %v2160_v18  ;;  %v1767_v49 = vld [vmem:[%s3326_s4 + $0x110] sm:$0xff]  ;;  %v2132_v18 = vld [vmem:[%s2780_s12 + $0xe8] sm:$0xff] }
  0xff   : > { %1040 = vperm.xlu2 %2250, %v966_v22   ;;  %1919 = vmatpush.msra.mxu1 %v1772_v41 }
 0x100   : > { %1677 = vmatpush.msra.mxu2 %v1654_v61  ;;  %1855 = vmatpush.msra.mxu0 %v1755_v4  ;;  %v1649_v4 = vld [vmem:[%s3325_s3 + $0x8] sm:$0xff] }
 0x101   : > { %1337 = vperm.xlu1 %2249, %v2150_v0   ;;  %1791 = vmatpush.msra.mxu3 %v1738_v45  ;;  %v1099_v0 = vunpack.c.l.bf16 %v2128_v59  ;;  %v3142_v45 = vpop.permute.xlu0 %970  ;;  %v2164_v59 = vld [vmem:[%s2780_s12 + $0x168] sm:$0xff] }
 0x102   : > { %1624 = vperm.xlu0 %2248, %v2181_v25   ;;  %1920 = vmatpush.msra.mxu1 %v1771_v7  ;;  %v1651_v25 = vld [vmem:[%s3325_s3 + $0x18] sm:$0xff]  ;;  %v2131_v7 = vld [vmem:[%s2780_s12 + $0xe0] sm:$0xff] }
 0x103   : > { %1678 = vmatpush.msra.mxu2 %v1653_v10  ;;  %1856 = vmatpush.msra.mxu0 %v1754_v13  ;;  %v1105_v13 = vunpack.c.l.bf16 %v2131_v7 }
 0x104   : > { %1433 = vmatmul.f32.gmra.mxu0 %v1381_v6  ;;  %1792 = vmatpush.msra.mxu3 %v1737_v53  ;;  %v2161_v6 = vld [vmem:[%s2780_s12 + $0x150] sm:$0xff] }
 0x105   : > { %1141 = vmatmul.f32.gmra.mxu2 %v1089_v26  ;;  %1498 = vmatmul.f32.gmra.mxu1 %v1382_v27  ;;  %v1752_v26 = vld [vmem:[%s3326_s4 + $0x98] sm:$0xff]  ;;  %v1735_v27 = vld [vmem:[%s3326_s4 + $0x10] sm:$0xff]  ;;  %v1393_v29 = vunpack.c.l.bf16 %v2161_v6  ;;  %v1394_v31 = vunpack.c.h.bf16 %v2161_v6  ;;  %v1108_v6 = vunpack.c.h.bf16 %v2132_v18 }
 0x106   : > { %1206 = vmatmul.f32.gmra.mxu3 %v1090_v28  ;;  %1921 = vmatpush.msra.mxu1 %v1770_v54  ;;  %v1768_v28 = vld [vmem:[%s3326_s4 + $0x118] sm:$0xff] }
 0x107   : > { %1045 = vperm.xlu2 %2250, %v967_v11   ;;  %1679 = vmatpush.msra.mxu2 %v1652_v58  ;;  %v3164_v58 = vpop.permute.xlu2 %1267 }
 0x108   : > { %1857 = vmatpush.msra.mxu0 %v1753_v19  ;;  %1793 = vmatpush.msra.mxu3 %v1736_v20  ;;  %v1749_v19 = vld [vmem:[%s3326_s4 + $0x80] sm:$0xff] }
 0x109   : > { %1922 = vmatpush.msra.mxu1 %v1769_v21  ;;  %1680 = vmatpush.msra.mxu2 %v1651_v25  ;;  %v1765_v20 = vld [vmem:[%s3326_s4 + $0x100] sm:$0xff]  ;;  %v3174_v21 = vpop.permute.xlu0 %1262 }
 0x10a   : > { %1858 = vmatpush.msra.mxu0 %v1752_v26  ;;  %1794 = vmatpush.msra.mxu3 %v1735_v27  ;;  %v3182_v26 = vpop.permute.xlu1 %975  ;;  %v2165_v27 = vld [vmem:[%s2780_s12 + $0x170] sm:$0xff] }
 0x10b   : > { %1923 = vmatpush.msra.mxu1 %v1768_v28  ;;  %v2133_v28 = vld [vmem:[%s2780_s12 + $0xf0] sm:$0xff] }
 0x10c   : > { %1436 = vmatmul.f32.gmra.mxu0 %v1383_v33  ;;  %1795 = vmatpush.msra.mxu3 %v1734_v37  ;;  %v1110_v37 = vunpack.c.h.bf16 %v2133_v28 }
 0x10d   : > { %1144 = vmatmul.f32.gmra.mxu2 %v1091_v34  ;;  %1501 = vmatmul.f32.gmra.mxu1 %v1384_v35  ;;  %v1102_v35 = vunpack.c.h.bf16 %v2129_v5 }
 0x10e   : > { %1209 = vmatmul.f32.gmra.mxu3 %v1092_v38  ;;  %v1650_v38 = vld [vmem:[%s3325_s3 + $0x10] sm:$0xff]  ;;  %1859 = vmatpush.msra.mxu0 %v1751_v36 }
 0x10f   : > { %1629 = vperm.xlu2 %2250, %v2182_v40   ;;  %1681 = vmatpush.msra.mxu2 %v1650_v38  ;;  %v2162_v40 = vld [vmem:[%s2780_s12 + $0x158] sm:$0xff]  ;;  %v1402_v38 = vunpack.c.h.bf16 %v2165_v27 }
 0x110   : > { %v1395_v41 = vunpack.c.l.bf16 %v2162_v40  ;;  %1924 = vmatpush.msra.mxu1 %v1767_v49  ;;  %v2166_v49 = vld [vmem:[%s2780_s12 + $0x178] sm:$0xff] }
 0x111   : > { %1682 = vmatpush.msra.mxu2 %v1649_v4 }
 0x114   : > { %1439 = vmatmul.f32.gmra.mxu0 %v1385_v42 }
 0x115   : > { %1147 = vmatmul.f32.gmra.mxu2 %v1093_v57  ;;  %1504 = vmatmul.f32.gmra.mxu1 %v1386_v43  ;;  %v1103_v57 = vunpack.c.l.bf16 %v2130_v39  ;;  %v1396_v43 = vunpack.c.h.bf16 %v2162_v40 }
 0x116   : > { %1212 = vmatmul.f32.gmra.mxu3 %v1094_v60 }
 0x11c   : > { %1442 = vmatmul.f32.gmra.mxu0 %v1387_v47  ;;  %v2163_v47 = vld [vmem:[%s2780_s12 + $0x160] sm:$0xff] }
 0x11d   : > { %1150 = vmatmul.f32.gmra.mxu2 %v1095_v8  ;;  %1507 = vmatmul.f32.gmra.mxu1 %v1388_v9  ;;  %v1750_v8 = vld [vmem:[%s3326_s4 + $0x88] sm:$0xff]  ;;  %v1733_v9 = vld [vmem:[%s3326_s4] sm:$0xff]  ;;  %v1397_v51 = vunpack.c.l.bf16 %v2163_v47  ;;  %v1398_v53 = vunpack.c.h.bf16 %v2163_v47 }
 0x11e   : > { %1215 = vmatmul.f32.gmra.mxu3 %v1096_v48  ;;  %v1766_v48 = vld [vmem:[%s3326_s4 + $0x108] sm:$0xff]  ;;  %1860 = vmatpush.msra.mxu0 %v1750_v8 }
 0x11f   : > { %1796 = vmatpush.msra.mxu3 %v1733_v9  ;;  %1925 = vmatpush.msra.mxu1 %v1766_v48 }
 0x120   : > { %1861 = vmatpush.msra.mxu0 %v1749_v19 }
 0x121   : > { %v3075_v15 = vpop.f32.mrf.mxu0  ;;  %1926 = vmatpush.msra.mxu1 %v1765_v20 }
 0x122   : > { %v3077_v56 = vpop.f32.mrf.mxu1 }
 0x124   : > { %1445 = vmatmul.f32.gmra.mxu0 %v1389_v14 }
 0x125   : > { %1153 = vmatmul.f32.gmra.mxu2 %v1097_v16  ;;  %1510 = vmatmul.f32.gmra.mxu1 %v1390_v55  ;;  %v1106_v55 = vunpack.c.h.bf16 %v2131_v7  ;;  %v1404_v7 = vunpack.c.h.bf16 %v2166_v49 }
 0x126   : > { %1218 = vmatmul.f32.gmra.mxu3 %v1098_v17  ;;  %v1648_v17 = vld [vmem:[%s3325_s3] sm:$0xff] }
 0x127   : > { %1683 = vmatpush.msra.mxu2 %v1648_v17 }
 0x128   : > { %v863_v62 = vpop.f32.mrf.mxu2 }
 0x129   : > { %v928_v22 = vpop.f32.mrf.mxu3  ;;  %v3095_v2 = vpop.f32.mrf.mxu0 }
 0x12a   : > { %v3093_v1 = vadd.f32 %v928_v22, %v863_v62  ;;  %v3097_v3 = vpop.f32.mrf.mxu1 }
 0x12c   : > { %1448 = vmatmul.f32.gmra.mxu0 %v1391_v63  ;;  %v1399_v63 = vunpack.c.l.bf16 %v2164_v59 }
 0x12d   : > { %1156 = vmatmul.f32.gmra.mxu2 %v1099_v0  ;;  %1513 = vmatmul.f32.gmra.mxu1 %v1392_v23  ;;  %v1107_v0 = vunpack.c.l.bf16 %v2132_v18  ;;  %v1400_v23 = vunpack.c.h.bf16 %v2164_v59  ;;  %v758_v18 = vld [vmem:[%s3209_s30] sm:$0xff] }
 0x12e   : > { %1221 = vmatmul.f32.gmra.mxu3 %v1100_v24 }
 0x130   : > { %v866_v11 = vpop.f32.mrf.mxu2 }
 0x131   : > { %v931_v30 = vpop.f32.mrf.mxu3  ;;  %v3115_v33 = vpop.f32.mrf.mxu0 }
 0x132   : > { %v3113_v32 = vadd.f32 %v931_v30, %v866_v11  ;;  %v3117_v34 = vpop.f32.mrf.mxu1  ;;  %v3186_v11 = vpop.permute.xlu2 %980  ;;  %v1401_v30 = vunpack.c.l.bf16 %v2165_v27 }
 0x134   : > { %1451 = vmatmul.f32.gmra.mxu0 %v1393_v29 }
 0x135   : > { %1159 = vmatmul.f32.gmra.mxu2 %v1101_v12  ;;  %1516 = vmatmul.f32.gmra.mxu1 %v1394_v31  ;;  %v1560_v12 = vpop.permute.xlu0 %1559 }
 0x136   : > { %1224 = vmatmul.f32.gmra.mxu3 %v1102_v35  ;;  %v1109_v35 = vunpack.c.l.bf16 %v2133_v28  ;;  %v759_v28 = vld [vmem:[%s3209_s30 + $0x8] sm:$0xff] }
 0x138   : > { %v869_v50 = vpop.f32.mrf.mxu2 }
 0x139   : > { %v934_v42 = vpop.f32.mrf.mxu3  ;;  %v3135_v61 = vpop.f32.mrf.mxu0 }
 0x13a   : > { %v3133_v60 = vadd.f32 %v934_v42, %v869_v50  ;;  %v3137_v44 = vpop.f32.mrf.mxu1  ;;  %v2134_v50 = vld [vmem:[%s2780_s12 + $0xf8] sm:$0xff] }
 0x13b   : > { %v1111_v4 = vunpack.c.l.bf16 %v2134_v50  ;;  %v1112_v48 = vunpack.c.h.bf16 %v2134_v50 }
 0x13c   : > { %1454 = vmatmul.f32.gmra.mxu0 %v1395_v41  ;;  %v1555_v41 = vpop.permute.xlu1 %1554 }
 0x13d   : > { %1162 = vmatmul.f32.gmra.mxu2 %v1103_v57  ;;  %1519 = vmatmul.f32.gmra.mxu1 %v1396_v43  ;;  %v1403_v57 = vunpack.c.l.bf16 %v2166_v49  ;;  %v3196_v43 = vpop.permute.xlu2 %985 }
 0x13e   : > { %1227 = vmatmul.f32.gmra.mxu3 %v1104_v46 }
 0x140   : > { %v872_v10 = vpop.f32.mrf.mxu2 }
 0x141   : > { %v937_v52 = vpop.f32.mrf.mxu3  ;;  %v3157_v14 = vpop.f32.mrf.mxu0 }
 0x142   : > { %v3155_v54 = vadd.f32 %v937_v52, %v872_v10  ;;  %v3159_v16 = vpop.f32.mrf.mxu1  ;;  %v1565_v10 = vpop.permute.xlu0 %1564 }
 0x144   : > { %1457 = vmatmul.f32.gmra.mxu0 %v1397_v51  ;;  %v905_v51 = vadd.f32 %v3077_v56, %v3075_v15  ;;  %v908_v15 = vadd.f32 %v3097_v3, %v3095_v2  ;;  %v911_v3 = vadd.f32 %v3117_v34, %v3115_v33  ;;  %v914_v33 = vadd.f32 %v3137_v44, %v3135_v61 }
 0x145   : > { %1165 = vmatmul.f32.gmra.mxu2 %v1105_v13  ;;  %1522 = vmatmul.f32.gmra.mxu1 %v1398_v53  ;;  %v1273_v13 = vpop.permute.xlu1 %1272  ;;  %v3216_v19 = vpop.permute.xlu2 %990  ;;  %v917_v61 = vadd.f32 %v3159_v16, %v3157_v14 }
 0x146   : > { %1230 = vmatmul.f32.gmra.mxu3 %v1106_v55 }
 0x148   : > { %v875_v62 = vpop.f32.mrf.mxu2 }
 0x149   : > { %v940_v22 = vpop.f32.mrf.mxu3  ;;  %v3178_v25 = vpop.f32.mrf.mxu0 }
 0x14a   : > { %v3176_v24 = vadd.f32 %v940_v22, %v875_v62  ;;  %v3180_v5 = vpop.f32.mrf.mxu1  ;;  %v1048_v62 = vmul.f32 %v3142_v45, %v905_v51 }
 0x14b   : > { %v920_v14 = vadd.f32 %v3180_v5, %v3178_v25 }
 0x14c   : > { %1460 = vmatmul.f32.gmra.mxu0 %v1399_v63  ;;  %v1570_v63 = vpop.permute.xlu0 %1569 }
 0x14d   : > { %1168 = vmatmul.f32.gmra.mxu2 %v1107_v0  ;;  %1525 = vmatmul.f32.gmra.mxu1 %v1400_v23 }
 0x14e   : > { %1233 = vmatmul.f32.gmra.mxu3 %v1108_v6 }
 0x150   : > { %v878_v29 = vpop.f32.mrf.mxu2 }
 0x151   : > { %v943_v31 = vpop.f32.mrf.mxu3  ;;  %v3190_v40 = vpop.f32.mrf.mxu0 }
 0x152   : > { %v3188_v39 = vadd.f32 %v943_v31, %v878_v29  ;;  %v3192_v36 = vpop.f32.mrf.mxu1  ;;  %v1278_v29 = vpop.permute.xlu1 %1277  ;;  %v1049_v31 = vmul.f32 %v3182_v26, %v908_v15 }
 0x153   : > { %v923_v25 = vadd.f32 %v3192_v36, %v3190_v40 }
 0x154   : > { %1463 = vmatmul.f32.gmra.mxu0 %v1401_v30  ;;  %v1575_v2 = vpop.permute.xlu0 %1574 }
 0x155   : > { %1171 = vmatmul.f32.gmra.mxu2 %v1109_v35  ;;  %1528 = vmatmul.f32.gmra.mxu1 %v1402_v38  ;;  %v3224_v35 = vpop.permute.xlu2 %995 }
 0x156   : > { %1236 = vmatmul.f32.gmra.mxu3 %v1110_v37 }
 0x158   : > { %v881_v42 = vpop.f32.mrf.mxu2 }
 0x159   : > { %v946_v46 = vpop.f32.mrf.mxu3  ;;  %v3200_v8 = vpop.f32.mrf.mxu0 }
 0x15a   : > { %v3198_v47 = vadd.f32 %v946_v46, %v881_v42  ;;  %v3202_v9 = vpop.f32.mrf.mxu1  ;;  %v1283_v46 = vpop.permute.xlu1 %1282 }
 0x15b   : > { %v926_v40 = vadd.f32 %v3202_v9, %v3200_v8 }
 0x15c   : > { %1466 = vmatmul.f32.gmra.mxu0 %v1403_v57  ;;  %v760_v57 = vld [vmem:[%s3209_s30 + $0x10] sm:$0xff] }
 0x15d   : > { %1174 = vmatmul.f32.gmra.mxu2 %v1111_v4  ;;  %1531 = vmatmul.f32.gmra.mxu1 %v1404_v7  ;;  %v3231_v7 = vpop.permute.xlu2 %1000 }
 0x15e   : > { %1239 = vmatmul.f32.gmra.mxu3 %v1112_v48  ;;  %v1580_v48 = vpop.permute.xlu0 %1579 }
 0x160   : > { %v884_v52 = vpop.f32.mrf.mxu2 }
 0x161   : > { %v949_v53 = vpop.f32.mrf.mxu3  ;;  %v1422_v17 = vpop.f32.mrf.mxu0 }
 0x162   : > { %v3213_v55 = vadd.f32 %v949_v53, %v884_v52  ;;  %v1487_v59 = vpop.f32.mrf.mxu1 }
 0x163   : > { %v1488_v20 = vadd.f32 %v1487_v59, %v1422_v17  ;;  %v761_v17 = vld [vmem:[%s3209_s30 + $0x18] sm:$0xff] }
 0x165   : > { %v1632_v22 = vmul.f32 %v1555_v41, %v1488_v20  ;;  %1684 = vmatmul.f32.vlgmr.msra.gmra.mxu2 %v758_v18  ;;  %v1288_v20 = vpop.permute.xlu1 %1287 }
 0x166   : > { %1797 = vmatmul.f32.vlgmr.msra.gmra.mxu3 %v1048_v62  ;;  %v1006_v62 = vpop.permute.xlu2 %1005 }
 0x167   : > { %1927 = vmatmul.f32.vlgmr.msra.gmra.mxu1 %v1632_v22 }
 0x168   : > { %v1130_v56 = vpop.f32.mrf.mxu2 }
 0x169   : > { %v1195_v0 = vpop.f32.mrf.mxu3  ;;  %v1425_v6 = vpop.f32.mrf.mxu0 }
 0x16a   : > { %v1196_v23 = vadd.f32 %v1195_v0, %v1130_v56  ;;  %v1490_v27 = vpop.f32.mrf.mxu1 }
 0x16b   : > { %v1491_v30 = vadd.f32 %v1490_v27, %v1425_v6  ;;  %v1585_v6 = vpop.permute.xlu0 %1584 }
 0x16c   : > { %v1340_v45 = vmul.f32 %v3174_v21, %v1196_v23  ;;  %v1050_v21 = vmul.f32 %v3186_v11, %v911_v3  ;;  %v762_v23 = vld [vmem:[%s3209_s30 + $0x20] sm:$0xff]  ;;  %v763_v3 = vld [vmem:[%s3209_s30 + $0x28] sm:$0xff] }
 0x16d   : > { %v1633_v38 = vmul.f32 %v1560_v12, %v1491_v30  ;;  %1687 = vmatmul.f32.gmra.mxu2 %v759_v28  ;;  %v1293_v28 = vpop.permute.xlu1 %1292 }
 0x16e   : > { %1800 = vmatmul.f32.gmra.mxu3 %v1049_v31  ;;  %1862 = vmatmul.f32.vlgmr.msra.gmra.mxu0 %v1340_v45 }
 0x16f   : > { %1930 = vmatmul.f32.gmra.mxu1 %v1633_v38 }
 0x170   : > { %v1133_v37 = vpop.f32.mrf.mxu2 }
 0x171   : > { %v1198_v49 = vpop.f32.mrf.mxu3  ;;  %v1428_v41 = vpop.f32.mrf.mxu0 }
 0x172   : > { %v1199_v50 = vadd.f32 %v1198_v49, %v1133_v37  ;;  %v1493_v42 = vpop.f32.mrf.mxu1  ;;  %v1011_v37 = vpop.permute.xlu2 %1010 }
 0x173   : > { %v1494_v26 = vadd.f32 %v1493_v42, %v1428_v41 }
 0x174   : > { %v1341_v12 = vmul.f32 %v3164_v58, %v1199_v50  ;;  %v1051_v58 = vmul.f32 %v3196_v43, %v914_v33 }
 0x175   : > { %v1634_v4 = vmul.f32 %v1565_v10, %v1494_v26  ;;  %1690 = vmatmul.f32.gmra.mxu2 %v760_v57 }
 0x176   : > { %1803 = vmatmul.f32.gmra.mxu3 %v1050_v21  ;;  %1865 = vmatmul.f32.gmra.mxu0 %v1341_v12  ;;  %v764_v21 = vld [vmem:[%s3209_s30 + $0x30] sm:$0xff]  ;;  %v1298_v12 = vpop.permute.xlu1 %1297 }
 0x177   : > { %1933 = vmatmul.f32.gmra.mxu1 %v1634_v4 }
 0x178   : > { %v1136_v34 = vpop.f32.mrf.mxu2 }
 0x179   : > { %v1201_v51 = vpop.f32.mrf.mxu3  ;;  %v1431_v53 = vpop.f32.mrf.mxu0 }
 0x17a   : > { %v1202_v52 = vadd.f32 %v1201_v51, %v1136_v34  ;;  %v1496_v11 = vpop.f32.mrf.mxu1  ;;  %v1016_v33 = vpop.permute.xlu2 %1015 }
 0x17b   : > { %v1497_v59 = vadd.f32 %v1496_v11, %v1431_v53 }
 0x17c   : > { %v1342_v10 = vmul.f32 %v1273_v13, %v1202_v52  ;;  %v1052_v13 = vmul.f32 %v3216_v19, %v917_v61  ;;  %v1053_v19 = vmul.f32 %v3224_v35, %v920_v14  ;;  %v1054_v35 = vmul.f32 %v3231_v7, %v923_v25  ;;  %v768_v25 = vld [vmem:[%s3209_s30 + $0x50] sm:$0xff] }
 0x17d   : > { %v1635_v18 = vmul.f32 %v1570_v63, %v1497_v59  ;;  %1693 = vmatmul.f32.gmra.mxu2 %v761_v17  ;;  %v765_v17 = vld [vmem:[%s3209_s30 + $0x38] sm:$0xff]  ;;  %v1055_v7 = vmul.f32 %v1006_v62, %v926_v40 }
 0x17e   : > { %1806 = vmatmul.f32.gmra.mxu3 %v1051_v58  ;;  %1868 = vmatmul.f32.gmra.mxu0 %v1342_v10  ;;  %v1303_v10 = vpop.permute.xlu1 %1302 }
 0x17f   : > { %1936 = vmatmul.f32.gmra.mxu1 %v1635_v18 }
 0x180   : > { %v1139_v44 = vpop.f32.mrf.mxu2 }
 0x181   : > { %v1204_v22 = vpop.f32.mrf.mxu3  ;;  %v1434_v56 = vpop.f32.mrf.mxu0 }
 0x182   : > { %v1205_v15 = vadd.f32 %v1204_v22, %v1139_v44  ;;  %v1499_v0 = vpop.f32.mrf.mxu1 }
 0x183   : > { %v1500_v43 = vadd.f32 %v1499_v0, %v1434_v56  ;;  %v766_v56 = vld [vmem:[%s3209_s30 + $0x40] sm:$0xff] }
 0x184   : > { %v1343_v63 = vmul.f32 %v1278_v29, %v1205_v15 }
 0x185   : > { %v1636_v27 = vmul.f32 %v1575_v2, %v1500_v43  ;;  %1696 = vmatmul.f32.gmra.mxu2 %v762_v23  ;;  %v1590_v2 = vpop.permute.xlu0 %1589  ;;  %v1056_v23 = vmul.f32 %v1011_v37, %v3093_v1 }
 0x186   : > { %1809 = vmatmul.f32.gmra.mxu3 %v1052_v13  ;;  %1871 = vmatmul.f32.gmra.mxu0 %v1343_v63  ;;  %v1308_v43 = vpop.permute.xlu1 %1307 }
 0x187   : > { %1939 = vmatmul.f32.gmra.mxu1 %v1636_v27 }
 0x188   : > { %v1142_v16 = vpop.f32.mrf.mxu2 }
 0x189   : > { %v1207_v30 = vpop.f32.mrf.mxu3  ;;  %v1437_v45 = vpop.f32.mrf.mxu0 }
 0x18a   : > { %v1208_v31 = vadd.f32 %v1207_v30, %v1142_v16  ;;  %v1502_v38 = vpop.f32.mrf.mxu1  ;;  %v767_v30 = vld [vmem:[%s3209_s30 + $0x48] sm:$0xff] }
 0x18b   : > { %v1503_v49 = vadd.f32 %v1502_v38, %v1437_v45  ;;  %v1057_v38 = vmul.f32 %v1016_v33, %v3113_v32  ;;  %v769_v33 = vld [vmem:[%s3209_s30 + $0x58] sm:$0xff] }
 0x18c   : > { %v1344_v29 = vmul.f32 %v1283_v46, %v1208_v31 }
 0x18d   : > { %v1637_v50 = vmul.f32 %v1580_v48, %v1503_v49  ;;  %1699 = vmatmul.f32.gmra.mxu2 %v763_v3  ;;  %v1595_v48 = vpop.permute.xlu0 %1594 }
 0x18e   : > { %1812 = vmatmul.f32.gmra.mxu3 %v1053_v19  ;;  %1874 = vmatmul.f32.gmra.mxu0 %v1344_v29  ;;  %v1313_v49 = vpop.permute.xlu1 %1312 }
 0x18f   : > { %1942 = vmatmul.f32.gmra.mxu1 %v1637_v50 }
 0x190   : > { %v1145_v5 = vpop.f32.mrf.mxu2 }
 0x191   : > { %v1210_v41 = vpop.f32.mrf.mxu3  ;;  %v1440_v57 = vpop.f32.mrf.mxu0 }
 0x192   : > { %v1211_v42 = vadd.f32 %v1210_v41, %v1145_v5  ;;  %v1505_v26 = vpop.f32.mrf.mxu1 }
 0x193   : > { %v1506_v4 = vadd.f32 %v1505_v26, %v1440_v57 }
 0x194   : > { %v1345_v46 = vmul.f32 %v1288_v20, %v1211_v42  ;;  %v1021_v20 = vpop.permute.xlu2 %1020 }
 0x195   : > { %v1638_v34 = vmul.f32 %v1585_v6, %v1506_v4  ;;  %1702 = vmatmul.f32.gmra.mxu2 %v764_v21  ;;  %v1600_v44 = vpop.permute.xlu0 %1599  ;;  %v1058_v41 = vmul.f32 %v1021_v20, %v3133_v60 }
 0x196   : > { %1815 = vmatmul.f32.gmra.mxu3 %v1054_v35  ;;  %1877 = vmatmul.f32.gmra.mxu0 %v1345_v46 }
 0x197   : > { %1945 = vmatmul.f32.gmra.mxu1 %v1638_v34  ;;  %v1318_v34 = vpop.permute.xlu1 %1317 }
 0x198   : > { %v1148_v36 = vpop.f32.mrf.mxu2 }
 0x199   : > { %v1213_v51 = vpop.f32.mrf.mxu3  ;;  %v1443_v53 = vpop.f32.mrf.mxu0 }
 0x19a   : > { %v1214_v52 = vadd.f32 %v1213_v51, %v1148_v36  ;;  %v1508_v11 = vpop.f32.mrf.mxu1 }
 0x19b   : > { %v1509_v59 = vadd.f32 %v1508_v11, %v1443_v53 }
 0x19c   : > { %v1346_v58 = vmul.f32 %v1293_v28, %v1214_v52  ;;  %v1026_v63 = vpop.permute.xlu2 %1025 }
 0x19d   : > { %v1639_v18 = vmul.f32 %v1590_v2, %v1509_v59  ;;  %1705 = vmatmul.f32.gmra.mxu2 %v765_v17  ;;  %v1605_v31 = vpop.permute.xlu0 %1604  ;;  %v1059_v40 = vmul.f32 %v1026_v63, %v3155_v54 }
 0x19e   : > { %1818 = vmatmul.f32.gmra.mxu3 %v1055_v7  ;;  %1880 = vmatmul.f32.gmra.mxu0 %v1346_v58  ;;  %v770_v58 = vld [vmem:[%s3209_s30 + $0x60] sm:$0xff] }
 0x19f   : > { %1948 = vmatmul.f32.gmra.mxu1 %v1639_v18  ;;  %v1323_v54 = vpop.permute.xlu1 %1322 }
 0x1a0   : > { %v1151_v61 = vpop.f32.mrf.mxu2 }
 0x1a1   : > { %v1216_v8 = vpop.f32.mrf.mxu3  ;;  %v1446_v22 = vpop.f32.mrf.mxu0 }
 0x1a2   : > { %v1217_v9 = vadd.f32 %v1216_v8, %v1151_v61  ;;  %v1511_v15 = vpop.f32.mrf.mxu1 }
 0x1a3   : > { %v1512_v0 = vadd.f32 %v1511_v15, %v1446_v22 }
 0x1a4   : > { %v1347_v62 = vmul.f32 %v1298_v12, %v1217_v9  ;;  %v1031_v42 = vpop.permute.xlu2 %1030 }
 0x1a5   : > { %v1640_v6 = vmul.f32 %v1595_v48, %v1512_v0  ;;  %1708 = vmatmul.f32.gmra.mxu2 %v766_v56  ;;  %v1610_v32 = vpop.permute.xlu0 %1609  ;;  %v1060_v18 = vmul.f32 %v1031_v42, %v3176_v24 }
 0x1a6   : > { %1821 = vmatmul.f32.gmra.mxu3 %v1056_v23  ;;  %1883 = vmatmul.f32.gmra.mxu0 %v1347_v62  ;;  %v771_v23 = vld [vmem:[%s3209_s30 + $0x68] sm:$0xff] }
 0x1a7   : > { %1951 = vmatmul.f32.gmra.mxu1 %v1640_v6 }
 0x1a8   : > { %v1154_v13 = vpop.f32.mrf.mxu2 }
 0x1a9   : > { %v1219_v27 = vpop.f32.mrf.mxu3  ;;  %v1449_v16 = vpop.f32.mrf.mxu0 }
 0x1aa   : > { %v1220_v14 = vadd.f32 %v1219_v27, %v1154_v13  ;;  %v1514_v28 = vpop.f32.mrf.mxu1  ;;  %v1328_v13 = vpop.permute.xlu1 %1327 }
 0x1ab   : > { %v1515_v45 = vadd.f32 %v1514_v28, %v1449_v16 }
 0x1ac   : > { %v1348_v1 = vmul.f32 %v1303_v10, %v1220_v14  ;;  %v1036_v51 = vpop.permute.xlu2 %1035 }
 0x1ad   : > { %v1641_v3 = vmul.f32 %v1600_v44, %v1515_v45  ;;  %1711 = vmatmul.f32.gmra.mxu2 %v767_v30  ;;  %v1615_v52 = vpop.permute.xlu0 %1614  ;;  %v1061_v6 = vmul.f32 %v1036_v51, %v3188_v39  ;;  %v772_v30 = vld [vmem:[%s3209_s30 + $0x70] sm:$0xff] }
 0x1ae   : > { %1824 = vmatmul.f32.gmra.mxu3 %v1057_v38  ;;  %1886 = vmatmul.f32.gmra.mxu0 %v1348_v1 }
 0x1af   : > { %1954 = vmatmul.f32.gmra.mxu1 %v1641_v3 }
 0x1b0   : > { %v1157_v37 = vpop.f32.mrf.mxu2 }
 0x1b1   : > { %v1222_v19 = vpop.f32.mrf.mxu3  ;;  %v1452_v2 = vpop.f32.mrf.mxu0 }
 0x1b2   : > { %v1223_v29 = vadd.f32 %v1222_v19, %v1157_v37  ;;  %v1517_v50 = vpop.f32.mrf.mxu1 }
 0x1b3   : > { %v1518_v5 = vadd.f32 %v1517_v50, %v1452_v2 }
 0x1b4   : > { %v1349_v57 = vmul.f32 %v1308_v43, %v1223_v29  ;;  %v1041_v44 = vpop.permute.xlu2 %1040 }
 0x1b5   : > { %v1642_v26 = vmul.f32 %v1605_v31, %v1518_v5  ;;  %1714 = vmatmul.f32.gmra.mxu2 %v768_v25  ;;  %v1620_v9 = vpop.permute.xlu0 %1619  ;;  %v1062_v45 = vmul.f32 %v1041_v44, %v3198_v47  ;;  %v773_v25 = vld [vmem:[%s3209_s30 + $0x78] sm:$0xff] }
 0x1b6   : > { %1827 = vmatmul.f32.gmra.mxu3 %v1058_v41  ;;  %1889 = vmatmul.f32.gmra.mxu0 %v1349_v57 }
 0x1b7   : > { %1957 = vmatmul.f32.gmra.mxu1 %v1642_v26 }
 0x1b8   : > { %v1160_v21 = vpop.f32.mrf.mxu2 }
 0x1b9   : > { %v1225_v12 = vpop.f32.mrf.mxu3  ;;  %v1455_v35 = vpop.f32.mrf.mxu0 }
 0x1ba   : > { %v1226_v4 = vadd.f32 %v1225_v12, %v1160_v21  ;;  %v1520_v46 = vpop.f32.mrf.mxu1 }
 0x1bb   : > { %v1521_v48 = vadd.f32 %v1520_v46, %v1455_v35 }
 0x1bc   : > { %v1350_v60 = vmul.f32 %v1313_v49, %v1226_v4  ;;  %v1046_v38 = vpop.permute.xlu2 %1045  ;;  %v1333_v49 = vpop.permute.xlu1 %1332 }
 0x1bd   : > { %v1643_v36 = vmul.f32 %v1610_v32, %v1521_v48  ;;  %1717 = vmatmul.f32.gmra.mxu2 %v769_v33  ;;  %v1625_v1 = vpop.permute.xlu0 %1624  ;;  %v1063_v41 = vmul.f32 %v1046_v38, %v3213_v55  ;;  %v3273_v55 = vld [vmem:[%s3327_s5] ss:$0 sm:$0xff] }
 0x1be   : > { %1830 = vmatmul.f32.gmra.mxu3 %v1059_v40  ;;  %1892 = vmatmul.f32.gmra.mxu0 %v1350_v60 }
 0x1bf   : > { %1960 = vmatmul.f32.gmra.mxu1 %v1643_v36 }
 0x1c0   : > { %v1163_v53 = vpop.f32.mrf.mxu2 }
 0x1c1   : > { %v1228_v11 = vpop.f32.mrf.mxu3  ;;  %v1458_v59 = vpop.f32.mrf.mxu0 }
 0x1c2   : > { %v1229_v17 = vadd.f32 %v1228_v11, %v1163_v53  ;;  %v1523_v7 = vpop.f32.mrf.mxu1 }
 0x1c3   : > { %v1524_v10 = vadd.f32 %v1523_v7, %v1458_v59 }
 0x1c4   : > { %v1351_v20 = vmul.f32 %v1318_v34, %v1229_v17  ;;  %v1630_v47 = vpop.permute.xlu2 %1629  ;;  %v1338_v12 = vpop.permute.xlu1 %1337 }
 0x1c5   : > { %v1644_v61 = vmul.f32 %v1615_v52, %v1524_v10  ;;  %1720 = vmatmul.f32.gmra.mxu2 %v770_v58 }
 0x1c6   : > { %1833 = vmatmul.f32.gmra.mxu3 %v1060_v18  ;;  %1895 = vmatmul.f32.gmra.mxu0 %v1351_v20 }
 0x1c7   : > { %1963 = vmatmul.f32.gmra.mxu1 %v1644_v61 }
 0x1c8   : > { %v1166_v8 = vpop.f32.mrf.mxu2 }
 0x1c9   : > { %v1231_v22 = vpop.f32.mrf.mxu3  ;;  %v1461_v56 = vpop.f32.mrf.mxu0 }
 0x1ca   : > { %v1232_v15 = vadd.f32 %v1231_v22, %v1166_v8  ;;  %v1526_v0 = vpop.f32.mrf.mxu1 }
 0x1cb   : > { %v1527_v62 = vadd.f32 %v1526_v0, %v1461_v56 }
 0x1cc   : > { %v1352_v24 = vmul.f32 %v1323_v54, %v1232_v15 }
 0x1cd   : > { %v1645_v43 = vmul.f32 %v1620_v9, %v1527_v62  ;;  %1723 = vmatmul.f32.gmra.mxu2 %v771_v23 }
 0x1ce   : > { %1836 = vmatmul.f32.gmra.mxu3 %v1061_v6  ;;  %1898 = vmatmul.f32.gmra.mxu0 %v1352_v24 }
 0x1cf   : > { %1966 = vmatmul.f32.gmra.mxu1 %v1645_v43 }
 0x1d0   : > { %v1169_v63 = vpop.f32.mrf.mxu2 }
 0x1d1   : > { %v1234_v27 = vpop.f32.mrf.mxu3  ;;  %v1464_v16 = vpop.f32.mrf.mxu0 }
 0x1d2   : > { %v1235_v14 = vadd.f32 %v1234_v27, %v1169_v63  ;;  %v1529_v28 = vpop.f32.mrf.mxu1 }
 0x1d3   : > { %v1530_v31 = vadd.f32 %v1529_v28, %v1464_v16 }
 0x1d4   : > { %v1353_v39 = vmul.f32 %v1328_v13, %v1235_v14 }
 0x1d5   : > { %v1646_v3 = vmul.f32 %v1625_v1, %v1530_v31  ;;  %1726 = vmatmul.f32.gmra.mxu2 %v772_v30 }
 0x1d6   : > { %1839 = vmatmul.f32.gmra.mxu3 %v1062_v45  ;;  %1901 = vmatmul.f32.gmra.mxu0 %v1353_v39 }
 0x1d7   : > { %1969 = vmatmul.f32.gmra.mxu1 %v1646_v3 }
 0x1d8   : > { %v1172_v37 = vpop.f32.mrf.mxu2 }
 0x1d9   : > { %v1237_v19 = vpop.f32.mrf.mxu3  ;;  %v1467_v2 = vpop.f32.mrf.mxu0 }
 0x1da   : > { %v1238_v29 = vadd.f32 %v1237_v19, %v1172_v37  ;;  %v1532_v50 = vpop.f32.mrf.mxu1 }
 0x1db   : > { %v1533_v5 = vadd.f32 %v1532_v50, %v1467_v2 }
 0x1dc   : > { %v1354_v42 = vmul.f32 %v1333_v49, %v1238_v29 }
 0x1dd   : > { %v1647_v57 = vmul.f32 %v1630_v47, %v1533_v5  ;;  %1729 = vmatmul.f32.gmra.mxu2 %v773_v25 }
 0x1de   : > { %1842 = vmatmul.f32.gmra.mxu3 %v1063_v41  ;;  %1904 = vmatmul.f32.gmra.mxu0 %v1354_v42 }
 0x1df   : > { %1972 = vmatmul.f32.gmra.mxu1 %v1647_v57 }
 0x1e0   : > { %v1175_v32 = vpop.f32.mrf.mxu2 }
 0x1e1   : > { %v1240_v26 = vpop.f32.mrf.mxu3 }
 0x1e2   : > { %v1241_v21 = vadd.f32 %v1240_v26, %v1175_v32 }
 0x1e4   : > { %v1355_v4 = vmul.f32 %v1338_v12, %v1241_v21  ;;  %v1928_v35 = vpop.f32.mrf.mxu1 }
 0x1e6   : > { %1907 = vmatmul.f32.gmra.mxu0 %v1355_v4 }
 0x1e8   : > { %v1685_v46 = vpop.f32.mrf.mxu2 }
 0x1e9   : > { %v1798_v33 = vpop.f32.mrf.mxu3  ;;  %v1686_v40 = vadd.f32 %v3273_v55, %v1685_v46 }
 0x1eb   : > { %v1863_v34 = vpop.f32.mrf.mxu0 }
 0x1ec   : > { %v1864_v48 = vadd.f32 %v1863_v34, %v1798_v33  ;;  %v1931_v60 = vpop.f32.mrf.mxu1 }
 0x1ee   : > { %v1929_v36 = vadd.f32 %v1928_v35, %v1864_v48 }
 0x1f0   : > { %v1976_v51 = vadd.f32 %v1929_v36, %v1686_v40  ;;  %v1688_v52 = vpop.f32.mrf.mxu2 }
 0x1f1   : > { %v1801_v53 = vpop.f32.mrf.mxu3  ;;  %v1689_v7 = vadd.f32 %v3273_v55, %v1688_v52 }
 0x1f2   : > { %v1992_v11 = vmax.f32 %v1976_v51, 0.0 }
 0x1f3   : > { %v1866_v17 = vpop.f32.mrf.mxu0 }
 0x1f4   : > { %2008 = vst [vmem:[%s3279_s21] sm:$0xff] %v1992_v11  ;;  %v1867_v59 = vadd.f32 %v1866_v17, %v1801_v53  ;;  %v1934_v58 = vpop.f32.mrf.mxu1 }
 0x1f6   : > { %v1932_v10 = vadd.f32 %v1931_v60, %v1867_v59 }
 0x1f8   : > { %v1977_v18 = vadd.f32 %v1932_v10, %v1689_v7  ;;  %v1691_v20 = vpop.f32.mrf.mxu2 }
 0x1f9   : > { %v1804_v54 = vpop.f32.mrf.mxu3  ;;  %v1692_v9 = vadd.f32 %v3273_v55, %v1691_v20 }
 0x1fa   : > { %v1993_v61 = vmax.f32 %v1977_v18, 0.0 }
 0x1fb   : > { %v1869_v44 = vpop.f32.mrf.mxu0 }
 0x1fc   : > { %2009 = vst [vmem:[%s3279_s21 + $0x8] sm:$0xff] %v1993_v61  ;;  %v1870_v8 = vadd.f32 %v1869_v44, %v1804_v54  ;;  %v1937_v22 = vpop.f32.mrf.mxu1 }
 0x1fe   : > { %v1935_v15 = vadd.f32 %v1934_v58, %v1870_v8 }
 0x200   : > { %v1978_v56 = vadd.f32 %v1935_v15, %v1692_v9  ;;  %v1694_v0 = vpop.f32.mrf.mxu2 }
 0x201   : > { %v1807_v23 = vpop.f32.mrf.mxu3  ;;  %v1695_v43 = vadd.f32 %v3273_v55, %v1694_v0 }
 0x202   : > { %v1994_v62 = vmax.f32 %v1978_v56, 0.0 }
 0x203   : > { %v1872_v6 = vpop.f32.mrf.mxu0 }
 0x204   : > { %2010 = vst [vmem:[%s3279_s21 + $0x10] sm:$0xff] %v1994_v62  ;;  %v1873_v24 = vadd.f32 %v1872_v6, %v1807_v23  ;;  %v1940_v13 = vpop.f32.mrf.mxu1 }
 0x206   : > { %v1938_v63 = vadd.f32 %v1937_v22, %v1873_v24 }
 0x208   : > { %v1979_v27 = vadd.f32 %v1938_v63, %v1695_v43  ;;  %v1697_v14 = vpop.f32.mrf.mxu2 }
 0x209   : > { %v1810_v16 = vpop.f32.mrf.mxu3  ;;  %v1698_v45 = vadd.f32 %v3273_v55, %v1697_v14 }
 0x20a   : > { %v1995_v28 = vmax.f32 %v1979_v27, 0.0 }
 0x20b   : > { %v1875_v30 = vpop.f32.mrf.mxu0 }
 0x20c   : > { %2011 = vst [vmem:[%s3279_s21 + $0x18] sm:$0xff] %v1995_v28  ;;  %v1876_v31 = vadd.f32 %v1875_v30, %v1810_v16  ;;  %v1943_v38 = vpop.f32.mrf.mxu1 }
 0x20e   : > { %v1941_v1 = vadd.f32 %v1940_v13, %v1876_v31 }
 0x210   : > { %v1980_v39 = vadd.f32 %v1941_v1, %v1698_v45  ;;  %v1700_v3 = vpop.f32.mrf.mxu2 }
 0x211   : > { %v1813_v37 = vpop.f32.mrf.mxu3  ;;  %v1701_v2 = vadd.f32 %v3273_v55, %v1700_v3 }
 0x212   : > { %v1996_v49 = vmax.f32 %v1980_v39, 0.0 }
 0x213   : > { %v1878_v19 = vpop.f32.mrf.mxu0 }
 0x214   : > { %2012 = vst [vmem:[%s3279_s21 + $0x20] sm:$0xff] %v1996_v49  ;;  %v1879_v29 = vadd.f32 %v1878_v19, %v1813_v37  ;;  %v1946_v50 = vpop.f32.mrf.mxu1 }
 0x216   : > { %v1944_v25 = vadd.f32 %v1943_v38, %v1879_v29 }
 0x218   : > { %v1981_v5 = vadd.f32 %v1944_v25, %v1701_v2  ;;  %v1703_v41 = vpop.f32.mrf.mxu2 }
 0x219   : > { %v1816_v47 = vpop.f32.mrf.mxu3  ;;  %v1704_v26 = vadd.f32 %v3273_v55, %v1703_v41 }
 0x21a   : > { %v1997_v42 = vmax.f32 %v1981_v5, 0.0 }
 0x21b   : > { %v1881_v57 = vpop.f32.mrf.mxu0 }
 0x21c   : > { %2013 = vst [vmem:[%s3279_s21 + $0x28] sm:$0xff] %v1997_v42  ;;  %v1882_v32 = vadd.f32 %v1881_v57, %v1816_v47  ;;  %v1949_v21 = vpop.f32.mrf.mxu1 }
 0x21e   : > { %v1947_v12 = vadd.f32 %v1946_v50, %v1882_v32 }
 0x220   : > { %v1982_v4 = vadd.f32 %v1947_v12, %v1704_v26  ;;  %v1706_v35 = vpop.f32.mrf.mxu2 }
 0x221   : > { %v1819_v46 = vpop.f32.mrf.mxu3  ;;  %v1707_v40 = vadd.f32 %v3273_v55, %v1706_v35 }
 0x222   : > { %v1998_v33 = vmax.f32 %v1982_v4, 0.0 }
 0x223   : > { %v1884_v34 = vpop.f32.mrf.mxu0 }
 0x224   : > { %2014 = vst [vmem:[%s3279_s21 + $0x30] sm:$0xff] %v1998_v33  ;;  %v1885_v48 = vadd.f32 %v1884_v34, %v1819_v46  ;;  %v1952_v60 = vpop.f32.mrf.mxu1 }
 0x226   : > { %v1950_v36 = vadd.f32 %v1949_v21, %v1885_v48 }
 0x228   : > { %v1983_v51 = vadd.f32 %v1950_v36, %v1707_v40  ;;  %v1709_v52 = vpop.f32.mrf.mxu2 }
 0x229   : > { %v1822_v53 = vpop.f32.mrf.mxu3  ;;  %v1710_v7 = vadd.f32 %v3273_v55, %v1709_v52 }
 0x22a   : > { %v1999_v11 = vmax.f32 %v1983_v51, 0.0 }
 0x22b   : > { %v1887_v17 = vpop.f32.mrf.mxu0 }
 0x22c   : > { %2015 = vst [vmem:[%s3279_s21 + $0x38] sm:$0xff] %v1999_v11  ;;  %v1888_v59 = vadd.f32 %v1887_v17, %v1822_v53  ;;  %v1955_v58 = vpop.f32.mrf.mxu1 }
 0x22e   : > { %v1953_v10 = vadd.f32 %v1952_v60, %v1888_v59 }
 0x230   : > { %v1984_v18 = vadd.f32 %v1953_v10, %v1710_v7  ;;  %v1712_v20 = vpop.f32.mrf.mxu2 }
 0x231   : > { %v1825_v54 = vpop.f32.mrf.mxu3  ;;  %v1713_v9 = vadd.f32 %v3273_v55, %v1712_v20 }
 0x232   : > { %v2000_v61 = vmax.f32 %v1984_v18, 0.0 }
 0x233   : > { %v1890_v44 = vpop.f32.mrf.mxu0 }
 0x234   : > { %2016 = vst [vmem:[%s3279_s21 + $0x40] sm:$0xff] %v2000_v61  ;;  %v1891_v8 = vadd.f32 %v1890_v44, %v1825_v54  ;;  %v1958_v22 = vpop.f32.mrf.mxu1 }
 0x236   : > { %v1956_v15 = vadd.f32 %v1955_v58, %v1891_v8 }
 0x238   : > { %v1985_v56 = vadd.f32 %v1956_v15, %v1713_v9  ;;  %v1715_v0 = vpop.f32.mrf.mxu2 }
 0x239   : > { %v1828_v23 = vpop.f32.mrf.mxu3  ;;  %v1716_v43 = vadd.f32 %v3273_v55, %v1715_v0 }
 0x23a   : > { %v2001_v62 = vmax.f32 %v1985_v56, 0.0 }
 0x23b   : > { %v1893_v6 = vpop.f32.mrf.mxu0 }
 0x23c   : > { %2017 = vst [vmem:[%s3279_s21 + $0x48] sm:$0xff] %v2001_v62  ;;  %v1894_v24 = vadd.f32 %v1893_v6, %v1828_v23  ;;  %v1961_v13 = vpop.f32.mrf.mxu1 }
 0x23e   : > { %v1959_v63 = vadd.f32 %v1958_v22, %v1894_v24 }
 0x240   : > { %v1986_v27 = vadd.f32 %v1959_v63, %v1716_v43  ;;  %v1718_v14 = vpop.f32.mrf.mxu2 }
 0x241   : > { %v1831_v16 = vpop.f32.mrf.mxu3  ;;  %v1719_v45 = vadd.f32 %v3273_v55, %v1718_v14 }
 0x242   : > { %v2002_v28 = vmax.f32 %v1986_v27, 0.0 }
 0x243   : > { %v1896_v30 = vpop.f32.mrf.mxu0 }
 0x244   : > { %2018 = vst [vmem:[%s3279_s21 + $0x50] sm:$0xff] %v2002_v28  ;;  %v1897_v31 = vadd.f32 %v1896_v30, %v1831_v16  ;;  %v1964_v1 = vpop.f32.mrf.mxu1 }
 0x246   : > { %v1962_v38 = vadd.f32 %v1961_v13, %v1897_v31 }
 0x248   : > { %v1987_v39 = vadd.f32 %v1962_v38, %v1719_v45  ;;  %v1721_v3 = vpop.f32.mrf.mxu2 }
 0x249   : > { %v1834_v37 = vpop.f32.mrf.mxu3  ;;  %v1722_v2 = vadd.f32 %v3273_v55, %v1721_v3 }
 0x24a   : > { %v2003_v49 = vmax.f32 %v1987_v39, 0.0 }
 0x24b   : > { %v1899_v19 = vpop.f32.mrf.mxu0 }
 0x24c   : > { %2019 = vst [vmem:[%s3279_s21 + $0x58] sm:$0xff] %v2003_v49  ;;  %v1900_v29 = vadd.f32 %v1899_v19, %v1834_v37  ;;  %v1967_v41 = vpop.f32.mrf.mxu1 }
 0x24e   : > { %v1965_v50 = vadd.f32 %v1964_v1, %v1900_v29 }
 0x250   : > { %v1988_v25 = vadd.f32 %v1965_v50, %v1722_v2  ;;  %v1724_v5 = vpop.f32.mrf.mxu2 }
 0x251   : > { %v1837_v47 = vpop.f32.mrf.mxu3  ;;  %v1725_v26 = vadd.f32 %v3273_v55, %v1724_v5 }
 0x252   : > { %v2004_v42 = vmax.f32 %v1988_v25, 0.0 }
 0x253   : > { %v1902_v57 = vpop.f32.mrf.mxu0 }
 0x254   : > { %2020 = vst [vmem:[%s3279_s21 + $0x60] sm:$0xff] %v2004_v42  ;;  %v1903_v32 = vadd.f32 %v1902_v57, %v1837_v47  ;;  %v1970_v33 = vpop.f32.mrf.mxu1 }
 0x256   : > { %v1968_v21 = vadd.f32 %v1967_v41, %v1903_v32 }
 0x258   : > { %v1989_v12 = vadd.f32 %v1968_v21, %v1725_v26  ;;  %v1727_v4 = vpop.f32.mrf.mxu2 }
 0x259   : > { %v1840_v35 = vpop.f32.mrf.mxu3  ;;  %v1728_v40 = vadd.f32 %v3273_v55, %v1727_v4 }
 0x25a   : > { %v2005_v46 = vmax.f32 %v1989_v12, 0.0 }
 0x25b   : > { %v1905_v34 = vpop.f32.mrf.mxu0 }
 0x25c   : > { %2021 = vst [vmem:[%s3279_s21 + $0x68] sm:$0xff] %v2005_v46  ;;  %v1906_v48 = vadd.f32 %v1905_v34, %v1840_v35  ;;  %v1973_v7 = vpop.f32.mrf.mxu1 }
 0x25e   : > { %v1971_v60 = vadd.f32 %v1970_v33, %v1906_v48 }
 0x260   : > { %v1990_v36 = vadd.f32 %v1971_v60, %v1728_v40  ;;  %v1730_v51 = vpop.f32.mrf.mxu2 }
 0x261   : > { %v1843_v53 = vpop.f32.mrf.mxu3  ;;  %v1731_v59 = vadd.f32 %v3273_v55, %v1730_v51 }
 0x262   : > { %v2006_v52 = vmax.f32 %v1990_v36, 0.0 }
 0x263   : > { %v1908_v11 = vpop.f32.mrf.mxu0 }
 0x264   : > { %2022 = vst [vmem:[%s3279_s21 + $0x70] sm:$0xff] %v2006_v52  ;;  %v1909_v17 = vadd.f32 %v1908_v11, %v1843_v53 }
 0x266   : > { %v1974_v58 = vadd.f32 %v1973_v7, %v1909_v17 }
 0x268   : > { %v1991_v10 = vadd.f32 %v1974_v58, %v1731_v59 }
 0x26a   : > { %v2007_v18 = vmax.f32 %v1991_v10, 0.0 }
 0x26c   : > { %2023 = vst [vmem:[%s3279_s21 + $0x78] sm:$0xff] %v2007_v18 }
 0x26d PF: > { %p13_p9 = scmp.ge.s32.totalorder %s2329_s25, 4   ;;  %s3330_s21 = smov %s2270_s22 }
 0x26e   : > { %s3331_s22 = smov %s2338_s28  ;;  %s3332_s23 = smov %s2329_s25 }
 0x26f   :  { %15 = sbr.rel (!%p13_p9) target bundleno = 2 (0x2), region = 168 }

// kernel: graph_encoder_forward.3
= control target key start
LH: loop header
LB: loop body
LE: loop exit
PB: predicated region body
PF: predicated region fallthrough
CT: control target
= control target key end

     0   :  { %s2373_s24 = smov 0   ;;  %s2375_s25 = smov 0   ;;  %s3390_s0 = inlined_call_operand.vmem [shape: bf16[3,256,256], index: 0, kind: input, shape index: {}]   ;;  %s3391_s1 = inlined_call_operand.vmem [shape: f32[3,256,1], index: 1, kind: input, shape index: {}]   ;;  %s3392_s2 = inlined_call_operand.vmem [shape: f32[256,128], index: 2, kind: input, shape index: {}]   ;;  %s3393_s3 = inlined_call_operand.vmem [shape: f32[128,128], index: 3, kind: input, shape index: {}]   ;;  %s3394_s4 = inlined_call_operand.vmem [shape: f32[384,128], index: 4, kind: input, shape index: {}]   ;;  %s3395_s5 = inlined_call_operand.vmem [shape: f32[1,128], index: 5, kind: input, shape index: {}]   ;;  %s3396_s6 = inlined_call_operand.vmem [shape: f32[8,256], index: 6, kind: input, shape index: {}]   ;;  %s3397_s7 = inlined_call_operand.vmem [shape: f32[2,8,128], index: 7, kind: output, shape index: {}]  }
   0x1   :  { %s2377_s26 = smov 0  }
   0x2 LB: > { %s2389_s27 = sadd.s32 4294967295, %s2330_s26   ;;  %s2392_s28 = sadd.s32 1, %s2330_s26   ;;  %s2330_s26 = sphi %s2377_s26, %s3401_s26   ;;  %s2326_s25 = sphi %s2375_s25, %s3400_s25   ;;  %s2322_s24 = sphi %s2373_s24, %s3399_s24  }
   0x3   : > { %s21_s29 = ssub.s32 %s2330_s26, %s2392_s28  ;;  %s24_s30 = sadd.s32 1, %s2326_s25 }
   0x4   : > { %p22_p0 = scmp.eq.s32.totalorder %s21_s29, 0  ;;  %p31_p1 = scmp.ne.s32.totalorder %s2326_s25, %s2322_s24 }
   0x5   : > { %p32_p2 = scmp.eq.s32.totalorder %s2330_s26, 0  ;;  %p2165_p4 = scmp.ge.s32.totalorder %s2330_s26, 2 }
   0x6   : > { %s2401_s8 = scalar_select %p22_p0, %s2326_s25, %s24_s30  }
   0x7   : > { %p2403_p3 = por %p32_p2, %p31_p1  ;;  %231 = sbr.rel (%p2165_p4) target bundleno = 116 (0x74), region = 32 }
   0xc   : > { %234 = sbr.rel (!%p2403_p3) target bundleno = 64 (0x40), region = 36  ;;  %s236_s10 = sand.u32 (%p2403_p3), 1, %s2326_s25  }
   0xd   : > { %s2242_s11 = sshll.u32 (%p2403_p3), %s2330_s26, 7  ;;  %s2276_s12 = smul.u32 (%p2403_p3), 384, %s236_s10 }
   0xe   : > { %s2415_s15 = scalar_lea.vmem (%p2403_p3), %s3390_s0, %s2242_s11 }
   0xf   : > { %v365_v0 = vld [vmem:[%s2415_s15] sm:$0xff] (%p2403_p3)  ;;  %v367_v1 = vld [vmem:[%s2415_s15 + $0x8] sm:$0xff] (%p2403_p3)  ;;  %v369_v2 = vld [vmem:[%s2415_s15 + $0x10] sm:$0xff] (%p2403_p3)  ;;  %s2420_s16 = scalar_lea.vmem (%p2403_p3), [#allocation2], %s2276_s12 }
  0x10   : > { %366 = vst [vmem:[%s2420_s16] sm:$0xff] (%p2403_p3), %v365_v0  ;;  %v371_v3 = vld [vmem:[%s2415_s15 + $0x18] sm:$0xff] (%p2403_p3)  ;;  %v373_v4 = vld [vmem:[%s2415_s15 + $0x20] sm:$0xff] (%p2403_p3)  ;;  %v375_v5 = vld [vmem:[%s2415_s15 + $0x28] sm:$0xff] (%p2403_p3) }
  0x11   : > { %368 = vst [vmem:[%s2420_s16 + $0x8] sm:$0xff] %v367_v1  ;;  %v377_v6 = vld [vmem:[%s2415_s15 + $0x30] sm:$0xff]  ;;  %v379_v7 = vld [vmem:[%s2415_s15 + $0x38] sm:$0xff]  ;;  %v381_v8 = vld [vmem:[%s2415_s15 + $0x40] sm:$0xff] }
  0x12   : > { %370 = vst [vmem:[%s2420_s16 + $0x10] sm:$0xff] %v369_v2  ;;  %v383_v9 = vld [vmem:[%s2415_s15 + $0x48] sm:$0xff]  ;;  %v385_v10 = vld [vmem:[%s2415_s15 + $0x50] sm:$0xff]  ;;  %v387_v11 = vld [vmem:[%s2415_s15 + $0x58] sm:$0xff] }
  0x13   : > { %372 = vst [vmem:[%s2420_s16 + $0x18] sm:$0xff] %v371_v3  ;;  %v389_v12 = vld [vmem:[%s2415_s15 + $0x60] sm:$0xff]  ;;  %v391_v13 = vld [vmem:[%s2415_s15 + $0x68] sm:$0xff]  ;;  %v393_v14 = vld [vmem:[%s2415_s15 + $0x70] sm:$0xff] }
  0x14   : > { %374 = vst [vmem:[%s2420_s16 + $0x20] sm:$0xff] %v373_v4  ;;  %v395_v15 = vld [vmem:[%s2415_s15 + $0x78] sm:$0xff]  ;;  %v397_v16 = vld [vmem:[%s2415_s15 + $0x100] sm:$0xff]  ;;  %v399_v17 = vld [vmem:[%s2415_s15 + $0x108] sm:$0xff] }
  0x15   : > { %376 = vst [vmem:[%s2420_s16 + $0x28] sm:$0xff] %v375_v5  ;;  %v401_v18 = vld [vmem:[%s2415_s15 + $0x110] sm:$0xff]  ;;  %v403_v19 = vld [vmem:[%s2415_s15 + $0x118] sm:$0xff]  ;;  %v405_v20 = vld [vmem:[%s2415_s15 + $0x120] sm:$0xff] }
  0x16   : > { %378 = vst [vmem:[%s2420_s16 + $0x30] sm:$0xff] %v377_v6  ;;  %v407_v21 = vld [vmem:[%s2415_s15 + $0x128] sm:$0xff]  ;;  %v409_v22 = vld [vmem:[%s2415_s15 + $0x130] sm:$0xff]  ;;  %v411_v23 = vld [vmem:[%s2415_s15 + $0x138] sm:$0xff] }
  0x17   : > { %380 = vst [vmem:[%s2420_s16 + $0x38] sm:$0xff] %v379_v7  ;;  %v413_v24 = vld [vmem:[%s2415_s15 + $0x140] sm:$0xff]  ;;  %v415_v25 = vld [vmem:[%s2415_s15 + $0x148] sm:$0xff]  ;;  %v417_v26 = vld [vmem:[%s2415_s15 + $0x150] sm:$0xff] }
  0x18   : > { %382 = vst [vmem:[%s2420_s16 + $0x40] sm:$0xff] %v381_v8  ;;  %v419_v27 = vld [vmem:[%s2415_s15 + $0x158] sm:$0xff]  ;;  %v421_v28 = vld [vmem:[%s2415_s15 + $0x160] sm:$0xff]  ;;  %v423_v29 = vld [vmem:[%s2415_s15 + $0x168] sm:$0xff] }
  0x19   : > { %384 = vst [vmem:[%s2420_s16 + $0x48] sm:$0xff] %v383_v9  ;;  %v425_v30 = vld [vmem:[%s2415_s15 + $0x170] sm:$0xff]  ;;  %v427_v31 = vld [vmem:[%s2415_s15 + $0x178] sm:$0xff]  ;;  %v429_v32 = vld [vmem:[%s2415_s15 + $0x200] sm:$0xff] }
  0x1a   : > { %386 = vst [vmem:[%s2420_s16 + $0x50] sm:$0xff] %v385_v10  ;;  %v431_v33 = vld [vmem:[%s2415_s15 + $0x208] sm:$0xff]  ;;  %v433_v34 = vld [vmem:[%s2415_s15 + $0x210] sm:$0xff]  ;;  %v435_v35 = vld [vmem:[%s2415_s15 + $0x218] sm:$0xff] }
  0x1b   : > { %388 = vst [vmem:[%s2420_s16 + $0x58] sm:$0xff] %v387_v11  ;;  %v437_v36 = vld [vmem:[%s2415_s15 + $0x220] sm:$0xff]  ;;  %v439_v37 = vld [vmem:[%s2415_s15 + $0x228] sm:$0xff]  ;;  %v441_v38 = vld [vmem:[%s2415_s15 + $0x230] sm:$0xff] }
  0x1c   : > { %390 = vst [vmem:[%s2420_s16 + $0x60] sm:$0xff] %v389_v12  ;;  %v443_v39 = vld [vmem:[%s2415_s15 + $0x238] sm:$0xff]  ;;  %v445_v40 = vld [vmem:[%s2415_s15 + $0x240] sm:$0xff]  ;;  %v447_v41 = vld [vmem:[%s2415_s15 + $0x248] sm:$0xff] }
  0x1d   : > { %392 = vst [vmem:[%s2420_s16 + $0x68] sm:$0xff] %v391_v13  ;;  %v449_v42 = vld [vmem:[%s2415_s15 + $0x250] sm:$0xff]  ;;  %v451_v43 = vld [vmem:[%s2415_s15 + $0x258] sm:$0xff]  ;;  %v453_v44 = vld [vmem:[%s2415_s15 + $0x260] sm:$0xff] }
  0x1e   : > { %394 = vst [vmem:[%s2420_s16 + $0x70] sm:$0xff] %v393_v14  ;;  %v455_v45 = vld [vmem:[%s2415_s15 + $0x268] sm:$0xff]  ;;  %v457_v46 = vld [vmem:[%s2415_s15 + $0x270] sm:$0xff]  ;;  %v459_v47 = vld [vmem:[%s2415_s15 + $0x278] sm:$0xff] }
  0x1f   : > { %396 = vst [vmem:[%s2420_s16 + $0x78] sm:$0xff] %v395_v15 }
  0x20   : > { %398 = vst [vmem:[%s2420_s16 + $0x80] sm:$0xff] %v397_v16 }
  0x21   : > { %400 = vst [vmem:[%s2420_s16 + $0x88] sm:$0xff] %v399_v17 }
  0x22   : > { %402 = vst [vmem:[%s2420_s16 + $0x90] sm:$0xff] %v401_v18 }
  0x23   : > { %404 = vst [vmem:[%s2420_s16 + $0x98] sm:$0xff] %v403_v19 }
  0x24   : > { %406 = vst [vmem:[%s2420_s16 + $0xa0] sm:$0xff] %v405_v20 }
  0x25   : > { %408 = vst [vmem:[%s2420_s16 + $0xa8] sm:$0xff] %v407_v21 }
  0x26   : > { %410 = vst [vmem:[%s2420_s16 + $0xb0] sm:$0xff] %v409_v22 }
  0x27   : > { %412 = vst [vmem:[%s2420_s16 + $0xb8] sm:$0xff] %v411_v23 }
  0x28   : > { %414 = vst [vmem:[%s2420_s16 + $0xc0] sm:$0xff] %v413_v24 }
  0x29   : > { %416 = vst [vmem:[%s2420_s16 + $0xc8] sm:$0xff] %v415_v25 }
  0x2a   : > { %418 = vst [vmem:[%s2420_s16 + $0xd0] sm:$0xff] %v417_v26 }
  0x2b   : > { %420 = vst [vmem:[%s2420_s16 + $0xd8] sm:$0xff] %v419_v27 }
  0x2c   : > { %422 = vst [vmem:[%s2420_s16 + $0xe0] sm:$0xff] %v421_v28 }
  0x2d   : > { %424 = vst [vmem:[%s2420_s16 + $0xe8] sm:$0xff] %v423_v29 }
  0x2e   : > { %426 = vst [vmem:[%s2420_s16 + $0xf0] sm:$0xff] %v425_v30 }
  0x2f   : > { %428 = vst [vmem:[%s2420_s16 + $0xf8] sm:$0xff] %v427_v31 }
  0x30   : > { %430 = vst [vmem:[%s2420_s16 + $0x100] sm:$0xff] %v429_v32 }
  0x31   : > { %432 = vst [vmem:[%s2420_s16 + $0x108] sm:$0xff] %v431_v33 }
  0x32   : > { %434 = vst [vmem:[%s2420_s16 + $0x110] sm:$0xff] %v433_v34 }
  0x33   : > { %436 = vst [vmem:[%s2420_s16 + $0x118] sm:$0xff] %v435_v35 }
  0x34   : > { %438 = vst [vmem:[%s2420_s16 + $0x120] sm:$0xff] %v437_v36 }
  0x35   : > { %440 = vst [vmem:[%s2420_s16 + $0x128] sm:$0xff] %v439_v37 }
  0x36   : > { %442 = vst [vmem:[%s2420_s16 + $0x130] sm:$0xff] %v441_v38 }
  0x37   : > { %444 = vst [vmem:[%s2420_s16 + $0x138] sm:$0xff] %v443_v39 }
  0x38   : > { %446 = vst [vmem:[%s2420_s16 + $0x140] sm:$0xff] %v445_v40 }
  0x39   : > { %448 = vst [vmem:[%s2420_s16 + $0x148] sm:$0xff] %v447_v41 }
  0x3a   : > { %450 = vst [vmem:[%s2420_s16 + $0x150] sm:$0xff] %v449_v42 }
  0x3b   : > { %452 = vst [vmem:[%s2420_s16 + $0x158] sm:$0xff] %v451_v43 }
  0x3c   : > { %454 = vst [vmem:[%s2420_s16 + $0x160] sm:$0xff] %v453_v44 }
  0x3d   : > { %456 = vst [vmem:[%s2420_s16 + $0x168] sm:$0xff] %v455_v45 }
  0x3e   : > { %458 = vst [vmem:[%s2420_s16 + $0x170] sm:$0xff] %v457_v46 }
  0x3f   : > { %460 = vst [vmem:[%s2420_s16 + $0x178] sm:$0xff] %v459_v47 }
  0x40 PF: > { %466 = sbr.rel (!%p2403_p3) target bundleno = 116 (0x74), region = 74  ;;  %s468_s17 = sand.u32 (%p2403_p3), 1, %s2326_s25  }
  0x41   : > { %s2243_s18 = sshll.u32 (%p2403_p3), %s2330_s26, 7  ;;  %s2277_s19 = smul.u32 (%p2403_p3), 384, %s468_s17 }
  0x42   : > { %s2522_s22 = scalar_lea.vmem (%p2403_p3), %s3391_s1, %s2243_s18 }
  0x43   : > { %v596_v48 = vld [vmem:[%s2522_s22] sm:$0xff] (%p2403_p3)  ;;  %v598_v49 = vld [vmem:[%s2522_s22 + $0x8] sm:$0xff] (%p2403_p3)  ;;  %v600_v50 = vld [vmem:[%s2522_s22 + $0x10] sm:$0xff] (%p2403_p3)  ;;  %s2527_s23 = scalar_lea.vmem (%p2403_p3), [#allocation3], %s2277_s19 }
  0x44   : > { %597 = vst [vmem:[%s2527_s23] sm:$0xff] (%p2403_p3), %v596_v48  ;;  %v602_v51 = vld [vmem:[%s2522_s22 + $0x18] sm:$0xff] (%p2403_p3)  ;;  %v604_v52 = vld [vmem:[%s2522_s22 + $0x20] sm:$0xff] (%p2403_p3)  ;;  %v606_v53 = vld [vmem:[%s2522_s22 + $0x28] sm:$0xff] (%p2403_p3) }
  0x45   : > { %599 = vst [vmem:[%s2527_s23 + $0x8] sm:$0xff] %v598_v49  ;;  %v608_v54 = vld [vmem:[%s2522_s22 + $0x30] sm:$0xff]  ;;  %v610_v55 = vld [vmem:[%s2522_s22 + $0x38] sm:$0xff]  ;;  %v612_v56 = vld [vmem:[%s2522_s22 + $0x40] sm:$0xff] }
  0x46   : > { %601 = vst [vmem:[%s2527_s23 + $0x10] sm:$0xff] %v600_v50  ;;  %v614_v57 = vld [vmem:[%s2522_s22 + $0x48] sm:$0xff]  ;;  %v616_v58 = vld [vmem:[%s2522_s22 + $0x50] sm:$0xff]  ;;  %v618_v59 = vld [vmem:[%s2522_s22 + $0x58] sm:$0xff] }
  0x47   : > { %603 = vst [vmem:[%s2527_s23 + $0x18] sm:$0xff] %v602_v51  ;;  %v620_v60 = vld [vmem:[%s2522_s22 + $0x60] sm:$0xff]  ;;  %v622_v61 = vld [vmem:[%s2522_s22 + $0x68] sm:$0xff]  ;;  %v624_v62 = vld [vmem:[%s2522_s22 + $0x70] sm:$0xff] }
  0x48   : > { %605 = vst [vmem:[%s2527_s23 + $0x20] sm:$0xff] %v604_v52  ;;  %v626_v63 = vld [vmem:[%s2522_s22 + $0x78] sm:$0xff]  ;;  %v628_v0 = vld [vmem:[%s2522_s22 + $0x100] sm:$0xff]  ;;  %v630_v1 = vld [vmem:[%s2522_s22 + $0x108] sm:$0xff] }
  0x49   : > { %607 = vst [vmem:[%s2527_s23 + $0x28] sm:$0xff] %v606_v53  ;;  %v632_v2 = vld [vmem:[%s2522_s22 + $0x110] sm:$0xff]  ;;  %v634_v3 = vld [vmem:[%s2522_s22 + $0x118] sm:$0xff]  ;;  %v636_v4 = vld [vmem:[%s2522_s22 + $0x120] sm:$0xff] }
  0x4a   : > { %609 = vst [vmem:[%s2527_s23 + $0x30] sm:$0xff] %v608_v54  ;;  %v638_v5 = vld [vmem:[%s2522_s22 + $0x128] sm:$0xff]  ;;  %v640_v6 = vld [vmem:[%s2522_s22 + $0x130] sm:$0xff]  ;;  %v642_v7 = vld [vmem:[%s2522_s22 + $0x138] sm:$0xff] }
  0x4b   : > { %611 = vst [vmem:[%s2527_s23 + $0x38] sm:$0xff] %v610_v55  ;;  %v644_v8 = vld [vmem:[%s2522_s22 + $0x140] sm:$0xff]  ;;  %v646_v9 = vld [vmem:[%s2522_s22 + $0x148] sm:$0xff]  ;;  %v648_v10 = vld [vmem:[%s2522_s22 + $0x150] sm:$0xff] }
  0x4c   : > { %613 = vst [vmem:[%s2527_s23 + $0x40] sm:$0xff] %v612_v56  ;;  %v650_v11 = vld [vmem:[%s2522_s22 + $0x158] sm:$0xff]  ;;  %v652_v12 = vld [vmem:[%s2522_s22 + $0x160] sm:$0xff]  ;;  %v654_v13 = vld [vmem:[%s2522_s22 + $0x168] sm:$0xff] }
  0x4d   : > { %615 = vst [vmem:[%s2527_s23 + $0x48] sm:$0xff] %v614_v57  ;;  %v656_v14 = vld [vmem:[%s2522_s22 + $0x170] sm:$0xff]  ;;  %v658_v15 = vld [vmem:[%s2522_s22 + $0x178] sm:$0xff]  ;;  %v660_v16 = vld [vmem:[%s2522_s22 + $0x200] sm:$0xff] }
  0x4e   : > { %617 = vst [vmem:[%s2527_s23 + $0x50] sm:$0xff] %v616_v58  ;;  %v662_v17 = vld [vmem:[%s2522_s22 + $0x208] sm:$0xff]  ;;  %v664_v18 = vld [vmem:[%s2522_s22 + $0x210] sm:$0xff]  ;;  %v666_v19 = vld [vmem:[%s2522_s22 + $0x218] sm:$0xff] }
  0x4f   : > { %619 = vst [vmem:[%s2527_s23 + $0x58] sm:$0xff] %v618_v59  ;;  %v668_v20 = vld [vmem:[%s2522_s22 + $0x220] sm:$0xff]  ;;  %v670_v21 = vld [vmem:[%s2522_s22 + $0x228] sm:$0xff]  ;;  %v672_v22 = vld [vmem:[%s2522_s22 + $0x230] sm:$0xff] }
  0x50   : > { %621 = vst [vmem:[%s2527_s23 + $0x60] sm:$0xff] %v620_v60  ;;  %v674_v23 = vld [vmem:[%s2522_s22 + $0x238] sm:$0xff]  ;;  %v676_v24 = vld [vmem:[%s2522_s22 + $0x240] sm:$0xff]  ;;  %v678_v25 = vld [vmem:[%s2522_s22 + $0x248] sm:$0xff] }
  0x51   : > { %623 = vst [vmem:[%s2527_s23 + $0x68] sm:$0xff] %v622_v61  ;;  %v680_v26 = vld [vmem:[%s2522_s22 + $0x250] sm:$0xff]  ;;  %v682_v27 = vld [vmem:[%s2522_s22 + $0x258] sm:$0xff]  ;;  %v684_v28 = vld [vmem:[%s2522_s22 + $0x260] sm:$0xff] }
  0x52   : > { %625 = vst [vmem:[%s2527_s23 + $0x70] sm:$0xff] %v624_v62  ;;  %v686_v29 = vld [vmem:[%s2522_s22 + $0x268] sm:$0xff]  ;;  %v688_v30 = vld [vmem:[%s2522_s22 + $0x270] sm:$0xff]  ;;  %v690_v31 = vld [vmem:[%s2522_s22 + $0x278] sm:$0xff] }
  0x53   : > { %627 = vst [vmem:[%s2527_s23 + $0x78] sm:$0xff] %v626_v63 }
  0x54   : > { %629 = vst [vmem:[%s2527_s23 + $0x80] sm:$0xff] %v628_v0 }
  0x55   : > { %631 = vst [vmem:[%s2527_s23 + $0x88] sm:$0xff] %v630_v1 }
  0x56   : > { %633 = vst [vmem:[%s2527_s23 + $0x90] sm:$0xff] %v632_v2 }
  0x57   : > { %635 = vst [vmem:[%s2527_s23 + $0x98] sm:$0xff] %v634_v3 }
  0x58   : > { %637 = vst [vmem:[%s2527_s23 + $0xa0] sm:$0xff] %v636_v4 }
  0x59   : > { %639 = vst [vmem:[%s2527_s23 + $0xa8] sm:$0xff] %v638_v5 }
  0x5a   : > { %641 = vst [vmem:[%s2527_s23 + $0xb0] sm:$0xff] %v640_v6 }
  0x5b   : > { %643 = vst [vmem:[%s2527_s23 + $0xb8] sm:$0xff] %v642_v7 }
  0x5c   : > { %645 = vst [vmem:[%s2527_s23 + $0xc0] sm:$0xff] %v644_v8 }
  0x5d   : > { %647 = vst [vmem:[%s2527_s23 + $0xc8] sm:$0xff] %v646_v9 }
  0x5e   : > { %649 = vst [vmem:[%s2527_s23 + $0xd0] sm:$0xff] %v648_v10 }
  0x5f   : > { %651 = vst [vmem:[%s2527_s23 + $0xd8] sm:$0xff] %v650_v11 }
  0x60   : > { %653 = vst [vmem:[%s2527_s23 + $0xe0] sm:$0xff] %v652_v12 }
  0x61   : > { %655 = vst [vmem:[%s2527_s23 + $0xe8] sm:$0xff] %v654_v13 }
  0x62   : > { %657 = vst [vmem:[%s2527_s23 + $0xf0] sm:$0xff] %v656_v14 }
  0x63   : > { %659 = vst [vmem:[%s2527_s23 + $0xf8] sm:$0xff] %v658_v15 }
  0x64   : > { %661 = vst [vmem:[%s2527_s23 + $0x100] sm:$0xff] %v660_v16 }
  0x65   : > { %663 = vst [vmem:[%s2527_s23 + $0x108] sm:$0xff] %v662_v17 }
  0x66   : > { %665 = vst [vmem:[%s2527_s23 + $0x110] sm:$0xff] %v664_v18 }
  0x67   : > { %667 = vst [vmem:[%s2527_s23 + $0x118] sm:$0xff] %v666_v19 }
  0x68   : > { %669 = vst [vmem:[%s2527_s23 + $0x120] sm:$0xff] %v668_v20 }
  0x69   : > { %671 = vst [vmem:[%s2527_s23 + $0x128] sm:$0xff] %v670_v21 }
  0x6a   : > { %673 = vst [vmem:[%s2527_s23 + $0x130] sm:$0xff] %v672_v22 }
  0x6b   : > { %675 = vst [vmem:[%s2527_s23 + $0x138] sm:$0xff] %v674_v23 }
  0x6c   : > { %677 = vst [vmem:[%s2527_s23 + $0x140] sm:$0xff] %v676_v24 }
  0x6d   : > { %679 = vst [vmem:[%s2527_s23 + $0x148] sm:$0xff] %v678_v25 }
  0x6e   : > { %681 = vst [vmem:[%s2527_s23 + $0x150] sm:$0xff] %v680_v26 }
  0x6f   : > { %683 = vst [vmem:[%s2527_s23 + $0x158] sm:$0xff] %v682_v27 }
  0x70   : > { %685 = vst [vmem:[%s2527_s23 + $0x160] sm:$0xff] %v684_v28 }
  0x71   : > { %687 = vst [vmem:[%s2527_s23 + $0x168] sm:$0xff] %v686_v29 }
  0x72   : > { %689 = vst [vmem:[%s2527_s23 + $0x170] sm:$0xff] %v688_v30 }
  0x73   : > { %691 = vst [vmem:[%s2527_s23 + $0x178] sm:$0xff] %v690_v31 }
  0x74 PF: > { %p2171_p5 = scmp.ge.s32.totalorder %s2330_s26, 1  ;;  %p703_p6 = scmp.lt.s32.totalorder %s2330_s26, 3 }
  0x76   : > { %p704_p7 = pnand %p2171_p5, %p703_p6 }
  0x77   : > { %s710_s13 = sand.u32 (!%p704_p7), 1, %s2322_s24   ;;  %p757_p8 = scmp.lt.s32.totalorder (!%p704_p7), %s2389_s27, 1 }
  0x78   : > { %707 = sbr.rel (%p704_p7) target bundleno = 783 (0x30f), region = 116 }
  0x79   : > { %s2647_s15 = smul.u32 (!%p704_p7), 384, %s710_s13 }
  0x7b   : > { %s2666_s19 = scalar_lea.vmem (!%p704_p7), [#allocation3], %s2647_s15  ;;  %s2843_s16 = scalar_lea.vmem (!%p704_p7), [#allocation2], %s2647_s15 }
  0x7c   : > { %s2174_s15 = sshll.u32 (!%p704_p7), %s2389_s27, 7 }
  0x7d   : > { %v2627_v32 = vld [vmem:[%s3392_s2 + $0x78] sm:$0xff]  ;;  %v2637_v34 = vld [vmem:[%s3392_s2 + $0x70] sm:$0xff]  ;;  %v2656_v36 = vld [vmem:[%s3392_s2 + $0x68] sm:$0xff]  ;;  %v2332_v38 = vmov 0   ;;  %s3266_s30 = scalar_lea.vmem %s3392_s2, %s2174_s15  ;;  %s3403_s27 = smov (!%p757_p8, %s2389_s27), 1 }
  0x7e   : > { %v2632_v33 = vld [vmem:[%s3392_s2 + $0xf8] sm:$0xff]  ;;  %863 = vmatpush.msra.mxu0 %v2627_v32  ;;  %2244 = vmatpush.msra.mxu3 %v2627_v32  ;;  %v2645_v35 = vld [vmem:[%s3392_s2 + $0xf0] sm:$0xff]  ;;  %v2663_v37 = vld [vmem:[%s3392_s2 + $0xe8] sm:$0xff]  ;;  %s2172_s10 = sshll.u32 %s3403_s27, 3 }
  0x7f   : > { %928 = vmatpush.msra.mxu1 %v2632_v33  ;;  %2260 = vmatpush.msra.mxu2 %v2632_v33  ;;  %v994_v39 = vld [vmem:[%s2666_s19 + $0x8] sm:$0xff]  ;;  %v993_v40 = vld [vmem:[%s2666_s19] sm:$0xff]  ;;  %v2687_v43 = vld [vmem:[%s3392_s2 + $0x58] sm:$0xff]  ;;  %s760_s13 = scalar_lea.vmem %s3396_s6, %s2172_s10  ;;  %s764_s27 = scalar_lea.vmem %s3397_s7, %s2172_s10 }
  0x80   : > { %864 = vmatpush.msra.mxu0 %v2637_v34  ;;  %2245 = vmatpush.msra.mxu3 %v2637_v34  ;;  %v2675_v41 = vld [vmem:[%s3392_s2 + $0x60] sm:$0xff]  ;;  %v2694_v44 = vld [vmem:[%s3392_s2 + $0xd8] sm:$0xff]  ;;  %v2701_v45 = vld [vmem:[%s3392_s2 + $0x50] sm:$0xff] }
  0x81   : > { %929 = vmatpush.msra.mxu1 %v2645_v35  ;;  %2261 = vmatpush.msra.mxu2 %v2645_v35  ;;  %v2682_v42 = vld [vmem:[%s3392_s2 + $0xe0] sm:$0xff]  ;;  %v2708_v46 = vld [vmem:[%s3392_s2 + $0xd0] sm:$0xff]  ;;  %v2715_v47 = vld [vmem:[%s3392_s2 + $0x48] sm:$0xff] }
  0x82   : > { %2305 = vset.pattern.permute.xlu1 %v2332_v38  ;;  %2304 = vset.pattern.permute.xlu0 %v2332_v38  ;;  %v2722_v48 = vld [vmem:[%s3392_s2 + $0xc8] sm:$0xff]  ;;  %v2223_v49 = vld [vmem:[%s2666_s19 + $0x100] sm:$0xff]  ;;  %v2745_v53 = vld [vmem:[%s3392_s2 + $0x38] sm:$0xff] }
  0x83   : > { %865 = vmatpush.msra.mxu0 %v2656_v36  ;;  %2246 = vmatpush.msra.mxu3 %v2656_v36  ;;  %v2191_v50 = vld [vmem:[%s2666_s19 + $0x80] sm:$0xff]  ;;  %v2752_v54 = vld [vmem:[%s3392_s2 + $0xb8] sm:$0xff]  ;;  %v2759_v55 = vld [vmem:[%s3392_s2 + $0x30] sm:$0xff] }
  0x84   : > { %930 = vmatpush.msra.mxu1 %v2663_v37  ;;  %2262 = vmatpush.msra.mxu2 %v2663_v37  ;;  %v2733_v51 = vld [vmem:[%s3392_s2 + $0x40] sm:$0xff]  ;;  %v2766_v56 = vld [vmem:[%s3392_s2 + $0xb0] sm:$0xff]  ;;  %v2192_v57 = vld [vmem:[%s2666_s19 + $0x88] sm:$0xff] }
  0x85   : > { %1016 = vperm.xlu1 %2305, %v994_v39   ;;  %1011 = vperm.xlu0 %2304, %v993_v40   ;;  %v2740_v52 = vld [vmem:[%s3392_s2 + $0xc0] sm:$0xff]  ;;  %v2775_v58 = vld [vmem:[%s3392_s2 + $0x28] sm:$0xff]  ;;  %v2193_v60 = vld [vmem:[%s2666_s19 + $0x90] sm:$0xff] }
  0x86   : > { %866 = vmatpush.msra.mxu0 %v2675_v41  ;;  %2247 = vmatpush.msra.mxu3 %v2675_v41  ;;  %v2782_v59 = vld [vmem:[%s3392_s2 + $0xa8] sm:$0xff]  ;;  %v2792_v62 = vld [vmem:[%s3392_s2 + $0x20] sm:$0xff]  ;;  %v2804_v0 = vld [vmem:[%s3392_s2 + $0x18] sm:$0xff] }
  0x87   : > { %931 = vmatpush.msra.mxu1 %v2682_v42  ;;  %2263 = vmatpush.msra.mxu2 %v2682_v42  ;;  %v2224_v61 = vld [vmem:[%s2666_s19 + $0x108] sm:$0xff]  ;;  %v2799_v63 = vld [vmem:[%s3392_s2 + $0xa0] sm:$0xff]  ;;  %v2811_v1 = vld [vmem:[%s3392_s2 + $0x98] sm:$0xff] }
  0x88   : > { %867 = vmatpush.msra.mxu0 %v2687_v43  ;;  %2248 = vmatpush.msra.mxu3 %v2687_v43  ;;  %v2818_v2 = vld [vmem:[%s3392_s2 + $0x10] sm:$0xff]  ;;  %v2833_v5 = vld [vmem:[%s3392_s2 + $0x8] sm:$0xff]  ;;  %v815_v7 = vld [vmem:[%s2843_s16] sm:$0xff] }
  0x89   : > { %932 = vmatpush.msra.mxu1 %v2694_v44  ;;  %2264 = vmatpush.msra.mxu2 %v2694_v44  ;;  %v2825_v3 = vld [vmem:[%s3392_s2 + $0x90] sm:$0xff]  ;;  %v2840_v6 = vld [vmem:[%s3392_s2 + $0x88] sm:$0xff]  ;;  %v2194_v8 = vld [vmem:[%s2666_s19 + $0x98] sm:$0xff]  ;;  %v831_v13 = vunpack.c.l.bf16 %v815_v7  ;;  %v832_v15 = vunpack.c.h.bf16 %v815_v7 }
  0x8a   : > { %868 = vmatpush.msra.mxu0 %v2701_v45  ;;  %2249 = vmatpush.msra.mxu3 %v2701_v45  ;;  %v995_v4 = vld [vmem:[%s2666_s19 + $0x10] sm:$0xff]  ;;  %v824_v9 = vld [vmem:[%s2843_s16 + $0x48] sm:$0xff]  ;;  %v2855_v11 = vld [vmem:[%s3392_s2] sm:$0xff] }
  0x8b   : > { %933 = vmatpush.msra.mxu1 %v2708_v46  ;;  %2265 = vmatpush.msra.mxu2 %v2708_v46  ;;  %v2225_v10 = vld [vmem:[%s2666_s19 + $0x110] sm:$0xff]  ;;  %v2862_v12 = vld [vmem:[%s3392_s2 + $0x80] sm:$0xff]  ;;  %v849_v14 = vunpack.c.l.bf16 %v824_v9  ;;  %v850_v16 = vunpack.c.h.bf16 %v824_v9  ;;  %v996_v17 = vld [vmem:[%s2666_s19 + $0x18] sm:$0xff] }
  0x8c   : > { %869 = vmatpush.msra.mxu0 %v2715_v47  ;;  %2250 = vmatpush.msra.mxu3 %v2715_v47  ;;  %v816_v18 = vld [vmem:[%s2843_s16 + $0x8] sm:$0xff]  ;;  %v2195_v19 = vld [vmem:[%s2666_s19 + $0xa0] sm:$0xff]  ;;  %v825_v20 = vld [vmem:[%s2843_s16 + $0x50] sm:$0xff] }
  0x8d   : > { %934 = vmatpush.msra.mxu1 %v2722_v48  ;;  %2266 = vmatpush.msra.mxu2 %v2722_v48  ;;  %v2226_v21 = vld [vmem:[%s2666_s19 + $0x118] sm:$0xff]  ;;  %v833_v22 = vunpack.c.l.bf16 %v816_v18  ;;  %v851_v23 = vunpack.c.l.bf16 %v825_v20  ;;  %v834_v24 = vunpack.c.h.bf16 %v816_v18  ;;  %v852_v25 = vunpack.c.h.bf16 %v825_v20  ;;  %v997_v26 = vld [vmem:[%s2666_s19 + $0x20] sm:$0xff]  ;;  %v817_v27 = vld [vmem:[%s2843_s16 + $0x10] sm:$0xff] }
  0x8e   : > { %1595 = vperm.xlu1 %2305, %v2223_v49   ;;  %1303 = vperm.xlu0 %2304, %v2191_v50   ;;  %v2196_v28 = vld [vmem:[%s2666_s19 + $0xa8] sm:$0xff]  ;;  %v826_v29 = vld [vmem:[%s2843_s16 + $0x58] sm:$0xff]  ;;  %v2227_v30 = vld [vmem:[%s2666_s19 + $0x120] sm:$0xff]  ;;  %v835_v31 = vunpack.c.l.bf16 %v817_v27 }
  0x8f   : > { %870 = vmatpush.msra.mxu0 %v2733_v51  ;;  %2251 = vmatpush.msra.mxu3 %v2733_v51  ;;  %v998_v39 = vld [vmem:[%s2666_s19 + $0x28] sm:$0xff]  ;;  %v2197_v40 = vld [vmem:[%s2666_s19 + $0xb0] sm:$0xff]  ;;  %v827_v49 = vld [vmem:[%s2843_s16 + $0x60] sm:$0xff] }
  0x90   : > { %935 = vmatpush.msra.mxu1 %v2740_v52  ;;  %2267 = vmatpush.msra.mxu2 %v2740_v52  ;;  %v2228_v50 = vld [vmem:[%s2666_s19 + $0x128] sm:$0xff]  ;;  %v2198_v7 = vld [vmem:[%s2666_s19 + $0xb8] sm:$0xff]  ;;  %v2229_v9 = vld [vmem:[%s2666_s19 + $0x130] sm:$0xff] }
  0x91   : > { %871 = vmatpush.msra.mxu0 %v2745_v53  ;;  %2252 = vmatpush.msra.mxu3 %v2745_v53  ;;  %v2200_v20 = vld [vmem:[%s2666_s19 + $0xc8] sm:$0xff] }
  0x92   : > { %936 = vmatpush.msra.mxu1 %v2752_v54  ;;  %2268 = vmatpush.msra.mxu2 %v2752_v54 }
  0x93   : > { %2306 = vset.pattern.permute.xlu2 %v2332_v38  ;;  %872 = vmatpush.msra.mxu0 %v2759_v55  ;;  %v854_v38 = vunpack.c.h.bf16 %v826_v29 }
  0x94   : > { %2253 = vmatpush.msra.mxu3 %v2759_v55  ;;  %937 = vmatpush.msra.mxu1 %v2766_v56 }
  0x95   : > { %2269 = vmatpush.msra.mxu2 %v2766_v56  ;;  %1308 = vperm.xlu2 %2306, %v2192_v57  }
  0x96   : > { %873 = vmatpush.msra.mxu0 %v2775_v58  ;;  %2254 = vmatpush.msra.mxu3 %v2775_v58 }
  0x97   : > { %938 = vmatpush.msra.mxu1 %v2782_v59  ;;  %2270 = vmatpush.msra.mxu2 %v2782_v59 }
  0x98   : > { %1313 = vperm.xlu1 %2305, %v2193_v60   ;;  %1600 = vperm.xlu0 %2304, %v2224_v61   ;;  %v856_v61 = vunpack.c.h.bf16 %v827_v49 }
  0x99   : > { %874 = vmatpush.msra.mxu0 %v2792_v62  ;;  %2255 = vmatpush.msra.mxu3 %v2792_v62 }
  0x9a   : > { %939 = vmatpush.msra.mxu1 %v2799_v63  ;;  %2271 = vmatpush.msra.mxu2 %v2799_v63 }
  0x9b   : > { %875 = vmatpush.msra.mxu0 %v2804_v0  ;;  %2256 = vmatpush.msra.mxu3 %v2804_v0 }
  0x9c   : > { %940 = vmatpush.msra.mxu1 %v2811_v1  ;;  %2272 = vmatpush.msra.mxu2 %v2811_v1 }
  0x9d   : > { %876 = vmatpush.msra.mxu0 %v2818_v2  ;;  %2257 = vmatpush.msra.mxu3 %v2818_v2 }
  0x9e   : > { %941 = vmatpush.msra.mxu1 %v2825_v3  ;;  %2273 = vmatpush.msra.mxu2 %v2825_v3 }
  0x9f   : > { %1021 = vperm.xlu2 %2306, %v995_v4   ;;  %877 = vmatpush.msra.mxu0 %v2833_v5  ;;  %v999_v4 = vld [vmem:[%s2666_s19 + $0x30] sm:$0xff] }
  0xa0   : > { %2258 = vmatpush.msra.mxu3 %v2833_v5  ;;  %942 = vmatpush.msra.mxu1 %v2840_v6 }
  0xa1   : > { %2274 = vmatpush.msra.mxu2 %v2840_v6  ;;  %1318 = vperm.xlu1 %2305, %v2194_v8   ;;  %v828_v8 = vld [vmem:[%s2843_s16 + $0x68] sm:$0xff] }
  0xa2   : > { %1605 = vperm.xlu0 %2304, %v2225_v10   ;;  %878 = vmatpush.msra.mxu0 %v2855_v11 }
  0xa3   : > { %2259 = vmatpush.msra.mxu3 %v2855_v11  ;;  %943 = vmatpush.msra.mxu1 %v2862_v12 }
  0xa4   : > { %2275 = vmatpush.msra.mxu2 %v2862_v12  ;;  %879 = vmatmul.f32.vlgmr.msra.gmra.mxu0 %v831_v13 }
  0xa5   : > { %906 = vmatmul.f32.vlgmr.msra.gmra.mxu3 %v849_v14  ;;  %944 = vmatmul.f32.vlgmr.msra.gmra.mxu1 %v832_v15  ;;  %v820_v14 = vld [vmem:[%s2843_s16 + $0x28] sm:$0xff]  ;;  %v2199_v15 = vld [vmem:[%s2666_s19 + $0xc0] sm:$0xff] }
  0xa6   : > { %971 = vmatmul.f32.vlgmr.msra.gmra.mxu2 %v850_v16  ;;  %1219 = vmatpush.msrb.mxu3 %v2632_v33  ;;  %v829_v16 = vld [vmem:[%s2843_s16 + $0x70] sm:$0xff]  ;;  %v842_v18 = vunpack.c.h.bf16 %v820_v14 }
  0xa7   : > { %1026 = vperm.xlu2 %2306, %v996_v17   ;;  %1154 = vmatpush.msrb.mxu2 %v2627_v32  ;;  %v2230_v17 = vld [vmem:[%s2666_s19 + $0x138] sm:$0xff] }
  0xa8   : > { %1220 = vmatpush.msrb.mxu3 %v2645_v35  ;;  %1446 = vmatpush.msrb.mxu0 %v2627_v32  ;;  %v853_v32 = vunpack.c.l.bf16 %v826_v29  ;;  %v2233_v29 = vld [vmem:[%s2666_s19 + $0x150] sm:$0xff] }
  0xa9   : > { %1323 = vperm.xlu1 %2305, %v2195_v19   ;;  %1155 = vmatpush.msrb.mxu2 %v2637_v34  ;;  %v821_v19 = vld [vmem:[%s2843_s16 + $0x30] sm:$0xff] }
  0xaa   : > { %1610 = vperm.xlu0 %2304, %v2226_v21   ;;  %1221 = vmatpush.msrb.mxu3 %v2663_v37  ;;  %v830_v21 = vld [vmem:[%s2843_s16 + $0x78] sm:$0xff] }
  0xab   : > { %1156 = vmatpush.msrb.mxu2 %v2656_v36  ;;  %1511 = vmatpush.msrb.mxu1 %v2632_v33  ;;  %v836_v33 = vunpack.c.h.bf16 %v817_v27 }
  0xac   : > { %882 = vmatmul.f32.gmra.mxu0 %v833_v22  ;;  %1222 = vmatpush.msrb.mxu3 %v2682_v42  ;;  %v2231_v22 = vld [vmem:[%s2666_s19 + $0x140] sm:$0xff] }
  0xad   : > { %909 = vmatmul.f32.gmra.mxu3 %v851_v23  ;;  %947 = vmatmul.f32.gmra.mxu1 %v834_v24  ;;  %v844_v23 = vunpack.c.h.bf16 %v821_v19  ;;  %v862_v24 = vunpack.c.h.bf16 %v830_v21 }
  0xae   : > { %974 = vmatmul.f32.gmra.mxu2 %v852_v25  ;;  %1223 = vmatpush.msrb.mxu3 %v2694_v44  ;;  %v2175_v25 = vld [vmem:[%s2843_s16 + $0x80] sm:$0xff] }
  0xaf   : > { %1031 = vperm.xlu2 %2306, %v997_v26   ;;  %1157 = vmatpush.msrb.mxu2 %v2675_v41  ;;  %v2232_v26 = vld [vmem:[%s2666_s19 + $0x148] sm:$0xff]  ;;  %v1122_v27 = vunpack.c.l.bf16 %v2175_v25 }
  0xb0   : > { %1224 = vmatpush.msrb.mxu3 %v2708_v46  ;;  %1447 = vmatpush.msrb.mxu0 %v2637_v34  ;;  %v818_v34 = vld [vmem:[%s2843_s16 + $0x18] sm:$0xff] }
  0xb1   : > { %1328 = vperm.xlu1 %2305, %v2196_v28   ;;  %1158 = vmatpush.msrb.mxu2 %v2687_v43  ;;  %v837_v57 = vunpack.c.l.bf16 %v818_v34  ;;  %v838_v60 = vunpack.c.h.bf16 %v818_v34  ;;  %v2176_v28 = vld [vmem:[%s2843_s16 + $0x88] sm:$0xff] }
  0xb2   : > { %1615 = vperm.xlu0 %2304, %v2227_v30   ;;  %1225 = vmatpush.msrb.mxu3 %v2722_v48  ;;  %v1124_v30 = vunpack.c.l.bf16 %v2176_v28  ;;  %v2204_v34 = vld [vmem:[%s2666_s19 + $0xe8] sm:$0xff] }
  0xb3   : > { %1159 = vmatpush.msrb.mxu2 %v2701_v45  ;;  %1512 = vmatpush.msrb.mxu1 %v2645_v35  ;;  %v855_v35 = vunpack.c.l.bf16 %v827_v49  ;;  %v2235_v49 = vld [vmem:[%s2666_s19 + $0x160] sm:$0xff] }
  0xb4   : > { %885 = vmatmul.f32.gmra.mxu0 %v835_v31  ;;  %1226 = vmatpush.msrb.mxu3 %v2740_v52  ;;  %v2177_v31 = vld [vmem:[%s2843_s16 + $0x90] sm:$0xff] }
  0xb5   : > { %912 = vmatmul.f32.gmra.mxu3 %v853_v32  ;;  %950 = vmatmul.f32.gmra.mxu1 %v836_v33 }
  0xb6   : > { %977 = vmatmul.f32.gmra.mxu2 %v854_v38  ;;  %1227 = vmatpush.msrb.mxu3 %v2752_v54  ;;  %v1005_v38 = vld [vmem:[%s2666_s19 + $0x60] sm:$0xff] }
  0xb7   : > { %1036 = vperm.xlu2 %2306, %v998_v39   ;;  %1160 = vmatpush.msrb.mxu2 %v2715_v47  ;;  %v2208_v39 = vld [vmem:[%s2843_s16 + $0x108] sm:$0xff] }
  0xb8   : > { %1228 = vmatpush.msrb.mxu3 %v2766_v56  ;;  %1448 = vmatpush.msrb.mxu0 %v2656_v36  ;;  %v819_v36 = vld [vmem:[%s2843_s16 + $0x20] sm:$0xff] }
  0xb9   : > { %1333 = vperm.xlu1 %2305, %v2197_v40   ;;  %1161 = vmatpush.msrb.mxu2 %v2733_v51  ;;  %v839_v10 = vunpack.c.l.bf16 %v819_v36  ;;  %v840_v13 = vunpack.c.h.bf16 %v819_v36  ;;  %v2178_v40 = vld [vmem:[%s2843_s16 + $0x98] sm:$0xff]  ;;  %v2205_v36 = vld [vmem:[%s2666_s19 + $0xf0] sm:$0xff] }
  0xba   : > { %1620 = vperm.xlu0 %2304, %v2228_v50   ;;  %1229 = vmatpush.msrb.mxu3 %v2782_v59  ;;  %v1416_v50 = vunpack.c.l.bf16 %v2208_v39 }
  0xbb   : > { %1162 = vmatpush.msrb.mxu2 %v2745_v53  ;;  %1513 = vmatpush.msrb.mxu1 %v2663_v37  ;;  %v857_v37 = vunpack.c.l.bf16 %v828_v8 }
  0xbc   : > { %888 = vmatmul.f32.gmra.mxu0 %v837_v57  ;;  %1230 = vmatpush.msrb.mxu3 %v2799_v63  ;;  %v1129_v57 = vunpack.c.h.bf16 %v2178_v40 }
  0xbd   : > { %915 = vmatmul.f32.gmra.mxu3 %v855_v35  ;;  %953 = vmatmul.f32.gmra.mxu1 %v838_v60  ;;  %v1417_v35 = vunpack.c.h.bf16 %v2208_v39  ;;  %v1128_v60 = vunpack.c.l.bf16 %v2178_v40 }
  0xbe   : > { %980 = vmatmul.f32.gmra.mxu2 %v856_v61  ;;  %1449 = vmatpush.msrb.mxu0 %v2675_v41  ;;  %v858_v41 = vunpack.c.h.bf16 %v828_v8  ;;  %v1006_v61 = vld [vmem:[%s2666_s19 + $0x68] sm:$0xff] }
  0xbf   : > { %1041 = vperm.xlu2 %2306, %v999_v4   ;;  %1163 = vmatpush.msrb.mxu2 %v2759_v55  ;;  %v2209_v4 = vld [vmem:[%s2843_s16 + $0x110] sm:$0xff]  ;;  %v2236_v8 = vld [vmem:[%s2666_s19 + $0x168] sm:$0xff] }
  0xc0   : > { %1514 = vmatpush.msrb.mxu1 %v2682_v42  ;;  %1231 = vmatpush.msrb.mxu3 %v2811_v1  ;;  %v1000_v42 = vld [vmem:[%s2666_s19 + $0x38] sm:$0xff] }
  0xc1   : > { %1338 = vperm.xlu1 %2305, %v2198_v7   ;;  %1164 = vmatpush.msrb.mxu2 %v2775_v58  ;;  %v2179_v7 = vld [vmem:[%s2843_s16 + $0xa0] sm:$0xff] }
  0xc2   : > { %1625 = vperm.xlu0 %2304, %v2229_v9   ;;  %1450 = vmatpush.msrb.mxu0 %v2687_v43  ;;  %v841_v43 = vunpack.c.l.bf16 %v820_v14  ;;  %v1418_v9 = vunpack.c.l.bf16 %v2209_v4  ;;  %v2206_v14 = vld [vmem:[%s2666_s19 + $0xf8] sm:$0xff] }
  0xc3   : > { %1165 = vmatpush.msrb.mxu2 %v2792_v62  ;;  %1515 = vmatpush.msrb.mxu1 %v2694_v44  ;;  %v859_v44 = vunpack.c.l.bf16 %v829_v16 }
  0xc4   : > { %891 = vmatmul.f32.gmra.mxu0 %v839_v10  ;;  %1232 = vmatpush.msrb.mxu3 %v2825_v3  ;;  %v1131_v10 = vunpack.c.h.bf16 %v2179_v7 }
  0xc5   : > { %918 = vmatmul.f32.gmra.mxu3 %v857_v37  ;;  %956 = vmatmul.f32.gmra.mxu1 %v840_v13  ;;  %v1419_v37 = vunpack.c.h.bf16 %v2209_v4  ;;  %v1130_v13 = vunpack.c.l.bf16 %v2179_v7  ;;  %v1703_v4 = vld [vmem:[%s3393_s3 + $0x70] sm:$0xff]  ;;  %v2186_v7 = vld [vmem:[%s2843_s16 + $0xd8] sm:$0xff] }
  0xc6   : > { %983 = vmatmul.f32.gmra.mxu2 %v858_v41  ;;  %1451 = vmatpush.msrb.mxu0 %v2701_v45  ;;  %v860_v45 = vunpack.c.h.bf16 %v829_v16  ;;  %v1007_v41 = vld [vmem:[%s2666_s19 + $0x70] sm:$0xff] }
  0xc7   : > { %1046 = vperm.xlu2 %2306, %v1000_v42   ;;  %1166 = vmatpush.msrb.mxu2 %v2804_v0  ;;  %v2210_v42 = vld [vmem:[%s2843_s16 + $0x118] sm:$0xff]  ;;  %v2237_v16 = vld [vmem:[%s2666_s19 + $0x170] sm:$0xff] }
  0xc8   : > { %1516 = vmatpush.msrb.mxu1 %v2708_v46  ;;  %1233 = vmatpush.msrb.mxu3 %v2840_v6  ;;  %v1001_v46 = vld [vmem:[%s2666_s19 + $0x40] sm:$0xff] }
  0xc9   : > { %1343 = vperm.xlu1 %2305, %v2199_v15   ;;  %1167 = vmatpush.msrb.mxu2 %v2818_v2  ;;  %v2180_v15 = vld [vmem:[%s2843_s16 + $0xa8] sm:$0xff] }
  0xca   : > { %1630 = vperm.xlu0 %2304, %v2230_v17   ;;  %1452 = vmatpush.msrb.mxu0 %v2715_v47  ;;  %v843_v47 = vunpack.c.l.bf16 %v821_v19  ;;  %v1420_v17 = vunpack.c.l.bf16 %v2210_v42  ;;  %v2181_v19 = vld [vmem:[%s2843_s16 + $0xb0] sm:$0xff] }
  0xcb   : > { %1168 = vmatpush.msrb.mxu2 %v2833_v5  ;;  %1517 = vmatpush.msrb.mxu1 %v2722_v48  ;;  %v861_v48 = vunpack.c.l.bf16 %v830_v21  ;;  %v1135_v21 = vunpack.c.h.bf16 %v2181_v19 }
  0xcc   : > { %894 = vmatmul.f32.gmra.mxu0 %v841_v43  ;;  %1234 = vmatpush.msrb.mxu3 %v2862_v12  ;;  %v1133_v43 = vunpack.c.h.bf16 %v2180_v15 }
  0xcd   : > { %921 = vmatmul.f32.gmra.mxu3 %v859_v44  ;;  %959 = vmatmul.f32.gmra.mxu1 %v842_v18  ;;  %v1421_v44 = vunpack.c.h.bf16 %v2210_v42  ;;  %v1132_v18 = vunpack.c.l.bf16 %v2180_v15  ;;  %v1701_v42 = vld [vmem:[%s3393_s3 + $0x60] sm:$0xff]  ;;  %v1804_v15 = vld [vmem:[%s3394_s4 + $0xf0] sm:$0xff] }
  0xce   : > { %986 = vmatmul.f32.gmra.mxu2 %v860_v45  ;;  %1453 = vmatpush.msrb.mxu0 %v2733_v51  ;;  %v1002_v51 = vld [vmem:[%s2666_s19 + $0x48] sm:$0xff]  ;;  %v1008_v45 = vld [vmem:[%s2666_s19 + $0x78] sm:$0xff] }
  0xcf   : > { %1051 = vperm.xlu2 %2306, %v1001_v46   ;;  %1169 = vmatpush.msrb.mxu2 %v2855_v11  ;;  %v2211_v46 = vld [vmem:[%s2843_s16 + $0x120] sm:$0xff] }
  0xd0   : > { %1518 = vmatpush.msrb.mxu1 %v2740_v52  ;;  %1454 = vmatpush.msrb.mxu0 %v2745_v53  ;;  %v822_v52 = vld [vmem:[%s2843_s16 + $0x38] sm:$0xff]  ;;  %v2201_v53 = vld [vmem:[%s2666_s19 + $0xd0] sm:$0xff] }
  0xd1   : > { %1348 = vperm.xlu1 %2305, %v2200_v20   ;;  %v1422_v20 = vunpack.c.l.bf16 %v2211_v46 }
  0xd2   : > { %1635 = vperm.xlu0 %2304, %v2231_v22   ;;  %1519 = vmatpush.msrb.mxu1 %v2752_v54  ;;  %v845_v54 = vunpack.c.l.bf16 %v822_v52  ;;  %v1423_v22 = vunpack.c.h.bf16 %v2211_v46 }
  0xd3   : > { %1455 = vmatpush.msrb.mxu0 %v2759_v55  ;;  %v846_v55 = vunpack.c.h.bf16 %v822_v52 }
  0xd4   : > { %897 = vmatmul.f32.gmra.mxu0 %v843_v47  ;;  %1520 = vmatpush.msrb.mxu1 %v2766_v56  ;;  %v1123_v56 = vunpack.c.h.bf16 %v2175_v25  ;;  %v1134_v47 = vunpack.c.l.bf16 %v2181_v19  ;;  %v1144_v19 = vunpack.c.l.bf16 %v2186_v7 }
  0xd5   : > { %924 = vmatmul.f32.gmra.mxu3 %v861_v48  ;;  %962 = vmatmul.f32.gmra.mxu1 %v844_v23  ;;  %v2238_v48 = vld [vmem:[%s2666_s19 + $0x178] sm:$0xff]  ;;  %v2212_v23 = vld [vmem:[%s2843_s16 + $0x128] sm:$0xff] }
  0xd6   : > { %989 = vmatmul.f32.gmra.mxu2 %v862_v24  ;;  %1456 = vmatpush.msrb.mxu0 %v2775_v58  ;;  %v1003_v58 = vld [vmem:[%s2666_s19 + $0x50] sm:$0xff]  ;;  %v2182_v24 = vld [vmem:[%s2843_s16 + $0xb8] sm:$0xff] }
  0xd7   : > { %1056 = vperm.xlu2 %2306, %v1002_v51   ;;  %1521 = vmatpush.msrb.mxu1 %v2782_v59  ;;  %v823_v59 = vld [vmem:[%s2843_s16 + $0x40] sm:$0xff]  ;;  %v1424_v51 = vunpack.c.l.bf16 %v2212_v23  ;;  %v1137_v52 = vunpack.c.h.bf16 %v2182_v24  ;;  %v1136_v25 = vunpack.c.l.bf16 %v2182_v24 }
  0xd8   : > { %1457 = vmatpush.msrb.mxu0 %v2792_v62  ;;  %v2202_v62 = vld [vmem:[%s2666_s19 + $0xd8] sm:$0xff]  ;;  %v1802_v24 = vld [vmem:[%s3394_s4 + $0xe0] sm:$0xff] }
  0xd9   : > { %1353 = vperm.xlu1 %2305, %v2201_v53   ;;  %1522 = vmatpush.msrb.mxu1 %v2799_v63  ;;  %v847_v63 = vunpack.c.l.bf16 %v823_v59  ;;  %v1425_v53 = vunpack.c.h.bf16 %v2212_v23  ;;  %v2217_v23 = vld [vmem:[%s2843_s16 + $0x150] sm:$0xff] }
  0xda   : > { %1640 = vperm.xlu0 %2304, %v2232_v26   ;;  %1458 = vmatpush.msrb.mxu0 %v2804_v0  ;;  %v848_v0 = vunpack.c.h.bf16 %v823_v59  ;;  %v2213_v26 = vld [vmem:[%s2843_s16 + $0x130] sm:$0xff]  ;;  %v2214_v59 = vld [vmem:[%s2843_s16 + $0x138] sm:$0xff] }
  0xdb   : > { %1523 = vmatpush.msrb.mxu1 %v2811_v1  ;;  %v1125_v1 = vunpack.c.h.bf16 %v2176_v28  ;;  %v1789_v28 = vld [vmem:[%s3394_s4 + $0x78] sm:$0xff] }
  0xdc   : > { %900 = vmatmul.f32.gmra.mxu0 %v845_v54  ;;  %v2183_v54 = vld [vmem:[%s2843_s16 + $0xc0] sm:$0xff]  ;;  %1822 = vmatpush.msra.mxu3 %v1789_v28  ;;  %v1435_v28 = vunpack.c.h.bf16 %v2217_v23 }
  0xdd   : > { %965 = vmatmul.f32.gmra.mxu1 %v846_v55  ;;  %1235 = vmatmul.f32.vlgmr.msrb.gmra.mxu3 %v1123_v56  ;;  %v1426_v55 = vunpack.c.l.bf16 %v2213_v26  ;;  %v1139_v56 = vunpack.c.h.bf16 %v2183_v54 }
  0xde   : > { %1170 = vmatmul.f32.vlgmr.msrb.gmra.mxu2 %v1122_v27  ;;  %1459 = vmatpush.msrb.mxu0 %v2818_v2  ;;  %v1004_v2 = vld [vmem:[%s2666_s19 + $0x58] sm:$0xff]  ;;  %v1427_v27 = vunpack.c.h.bf16 %v2213_v26 }
  0xdf   : > { %1061 = vperm.xlu2 %2306, %v1003_v58   ;;  %1524 = vmatpush.msrb.mxu1 %v2825_v3  ;;  %v2207_v3 = vld [vmem:[%s2843_s16 + $0x100] sm:$0xff]  ;;  %v1138_v58 = vunpack.c.l.bf16 %v2183_v54  ;;  %v1801_v26 = vld [vmem:[%s3394_s4 + $0xd8] sm:$0xff] }
  0xe0   : > { %1460 = vmatpush.msrb.mxu0 %v2833_v5  ;;  %v2203_v5 = vld [vmem:[%s2666_s19 + $0xe0] sm:$0xff]  ;;  %v1414_v32 = vunpack.c.l.bf16 %v2207_v3  ;;  %v1415_v33 = vunpack.c.h.bf16 %v2207_v3 }
  0xe1   : > { %1358 = vperm.xlu1 %2305, %v2202_v62   ;;  %1525 = vmatpush.msrb.mxu1 %v2840_v6  ;;  %v2234_v6 = vld [vmem:[%s2666_s19 + $0x158] sm:$0xff]  ;;  %v2184_v62 = vld [vmem:[%s2843_s16 + $0xc8] sm:$0xff]  ;;  %v1818_v54 = vld [vmem:[%s3394_s4 + $0x160] sm:$0xff] }
  0xe2   : > { %1645 = vperm.xlu0 %2304, %v2233_v29   ;;  %1461 = vmatpush.msrb.mxu0 %v2855_v11  ;;  %v1127_v11 = vunpack.c.h.bf16 %v2177_v31  ;;  %v1428_v29 = vunpack.c.l.bf16 %v2214_v59  ;;  %v1140_v3 = vunpack.c.l.bf16 %v2184_v62 }
  0xe3   : > { %1526 = vmatpush.msrb.mxu1 %v2862_v12  ;;  %v1126_v12 = vunpack.c.l.bf16 %v2177_v31  ;;  %v1786_v31 = vld [vmem:[%s3394_s4 + $0x60] sm:$0xff] }
  0xe4   : > { %903 = vmatmul.f32.gmra.mxu0 %v847_v63  ;;  %v1788_v63 = vld [vmem:[%s3394_s4 + $0x70] sm:$0xff] }
  0xe5   : > { %968 = vmatmul.f32.gmra.mxu1 %v848_v0  ;;  %1238 = vmatmul.f32.gmra.mxu3 %v1125_v1  ;;  %v1141_v1 = vunpack.c.h.bf16 %v2184_v62 }
  0xe6   : > { %1173 = vmatmul.f32.gmra.mxu2 %v1124_v30  ;;  %v1429_v30 = vunpack.c.h.bf16 %v2214_v59  ;;  %1823 = vmatpush.msra.mxu3 %v1788_v63 }
  0xe7   : > { %1066 = vperm.xlu2 %2306, %v1004_v2  }
  0xe9   : > { %1363 = vperm.xlu1 %2305, %v2203_v5   ;;  %v1787_v5 = vld [vmem:[%s3394_s4 + $0x68] sm:$0xff] }
  0xea   : > { %1650 = vperm.xlu0 %2304, %v2234_v6   ;;  %1824 = vmatpush.msra.mxu3 %v1787_v5  ;;  %v2215_v6 = vld [vmem:[%s2843_s16 + $0x140] sm:$0xff]  ;;  %v1800_v5 = vld [vmem:[%s3394_s4 + $0xd0] sm:$0xff] }
  0xeb   : > { %v1431_v40 = vunpack.c.h.bf16 %v2215_v6 }
  0xec   : > { %1462 = vmatmul.f32.vlgmr.msrb.gmra.mxu0 %v1414_v32  ;;  %v2185_v32 = vld [vmem:[%s2843_s16 + $0xd0] sm:$0xff]  ;;  %1825 = vmatpush.msra.mxu3 %v1786_v31  ;;  %v1697_v31 = vld [vmem:[%s3393_s3 + $0x40] sm:$0xff] }
  0xed   : > { %1241 = vmatmul.f32.gmra.mxu3 %v1127_v11  ;;  %1527 = vmatmul.f32.vlgmr.msrb.gmra.mxu1 %v1415_v33  ;;  %v1785_v11 = vld [vmem:[%s3394_s4 + $0x58] sm:$0xff] }
  0xee   : > { %1176 = vmatmul.f32.gmra.mxu2 %v1126_v12  ;;  %v1430_v12 = vunpack.c.l.bf16 %v2215_v6  ;;  %1826 = vmatpush.msra.mxu3 %v1785_v11  ;;  %v1775_v6 = vld [vmem:[%s3394_s4 + $0x8] sm:$0xff] }
  0xef   : > { %1071 = vperm.xlu2 %2306, %v1005_v38   ;;  %v1784_v38 = vld [vmem:[%s3394_s4 + $0x50] sm:$0xff]  ;;  %v1799_v11 = vld [vmem:[%s3394_s4 + $0xc8] sm:$0xff] }
  0xf0   : > { %1827 = vmatpush.msra.mxu3 %v1784_v38  ;;  %v1696_v38 = vld [vmem:[%s3393_s3 + $0x38] sm:$0xff] }
  0xf1   : > { %1368 = vperm.xlu1 %2305, %v2204_v34   ;;  %v1143_v34 = vunpack.c.h.bf16 %v2185_v32 }
  0xf2   : > { %1655 = vperm.xlu0 %2304, %v2235_v49  }
  0xf4   : > { %1465 = vmatmul.f32.gmra.mxu0 %v1416_v50 }
  0xf5   : > { %1244 = vmatmul.f32.gmra.mxu3 %v1129_v57  ;;  %1530 = vmatmul.f32.gmra.mxu1 %v1417_v35  ;;  %v1142_v35 = vunpack.c.l.bf16 %v2185_v32  ;;  %v2218_v32 = vld [vmem:[%s2843_s16 + $0x158] sm:$0xff] }
  0xf6   : > { %1179 = vmatmul.f32.gmra.mxu2 %v1128_v60  ;;  %v1704_v60 = vld [vmem:[%s3393_s3 + $0x78] sm:$0xff] }
  0xf7   : > { %1076 = vperm.xlu2 %2306, %v1006_v61   ;;  %v1783_v61 = vld [vmem:[%s3394_s4 + $0x48] sm:$0xff]  ;;  %1709 = vmatpush.msra.mxu2 %v1704_v60  ;;  %v1436_v60 = vunpack.c.l.bf16 %v2218_v32 }
  0xf8   : > { %1828 = vmatpush.msra.mxu3 %v1783_v61  ;;  %v1695_v61 = vld [vmem:[%s3393_s3 + $0x30] sm:$0xff] }
  0xf9   : > { %1373 = vperm.xlu1 %2305, %v2205_v36   ;;  %v1782_v36 = vld [vmem:[%s3394_s4 + $0x40] sm:$0xff]  ;;  %1710 = vmatpush.msra.mxu2 %v1703_v4 }
  0xfa   : > { %1660 = vperm.xlu0 %2304, %v2236_v8   ;;  %v2216_v8 = vld [vmem:[%s2843_s16 + $0x148] sm:$0xff]  ;;  %1829 = vmatpush.msra.mxu3 %v1782_v36 }
  0xfc   : > { %1468 = vmatmul.f32.gmra.mxu0 %v1418_v9  ;;  %v1702_v9 = vld [vmem:[%s3393_s3 + $0x68] sm:$0xff] }
  0xfd   : > { %1247 = vmatmul.f32.gmra.mxu3 %v1131_v10  ;;  %1533 = vmatmul.f32.gmra.mxu1 %v1419_v37  ;;  %v1781_v10 = vld [vmem:[%s3394_s4 + $0x38] sm:$0xff] }
  0xfe   : > { %1182 = vmatmul.f32.gmra.mxu2 %v1130_v13  ;;  %v1805_v37 = vld [vmem:[%s3394_s4 + $0xf8] sm:$0xff]  ;;  %1830 = vmatpush.msra.mxu3 %v1781_v10 }
  0xff   : > { %1081 = vperm.xlu2 %2306, %v1007_v41   ;;  %1887 = vmatpush.msra.mxu0 %v1805_v37  ;;  %v1432_v41 = vunpack.c.l.bf16 %v2216_v8 }
 0x100   : > { %1711 = vmatpush.msra.mxu2 %v1702_v9 }
 0x101   : > { %1378 = vperm.xlu1 %2305, %v2206_v14   ;;  %v1780_v14 = vld [vmem:[%s3394_s4 + $0x30] sm:$0xff]  ;;  %1888 = vmatpush.msra.mxu0 %v1804_v15  ;;  %v1813_v15 = vld [vmem:[%s3394_s4 + $0x138] sm:$0xff] }
 0x102   : > { %1665 = vperm.xlu0 %2304, %v2237_v16   ;;  %1831 = vmatpush.msra.mxu3 %v1780_v14  ;;  %v1694_v14 = vld [vmem:[%s3393_s3 + $0x28] sm:$0xff] }
 0x103   : > { %1712 = vmatpush.msra.mxu2 %v1701_v42  ;;  %v1797_v42 = vld [vmem:[%s3394_s4 + $0xb8] sm:$0xff] }
 0x104   : > { %1471 = vmatmul.f32.gmra.mxu0 %v1420_v17  ;;  %v1145_v17 = vunpack.c.h.bf16 %v2186_v7  ;;  %v1437_v7 = vunpack.c.h.bf16 %v2218_v32 }
 0x105   : > { %1250 = vmatmul.f32.gmra.mxu3 %v1133_v43  ;;  %1536 = vmatmul.f32.gmra.mxu1 %v1421_v44  ;;  %v1433_v43 = vunpack.c.h.bf16 %v2216_v8  ;;  %v1821_v44 = vld [vmem:[%s3394_s4 + $0x178] sm:$0xff]  ;;  %v1814_v8 = vld [vmem:[%s3394_s4 + $0x140] sm:$0xff] }
 0x106   : > { %1185 = vmatmul.f32.gmra.mxu2 %v1132_v18  ;;  %1952 = vmatpush.msra.mxu1 %v1821_v44  ;;  %v2189_v44 = vld [vmem:[%s2843_s16 + $0xf0] sm:$0xff] }
 0x107   : > { %1086 = vperm.xlu2 %2306, %v1008_v45  }
 0x10c   : > { %1474 = vmatmul.f32.gmra.mxu0 %v1422_v20  ;;  %v1779_v20 = vld [vmem:[%s3394_s4 + $0x28] sm:$0xff] }
 0x10d   : > { %1253 = vmatmul.f32.gmra.mxu3 %v1135_v21  ;;  %1539 = vmatmul.f32.gmra.mxu1 %v1423_v22  ;;  %v1803_v21 = vld [vmem:[%s3394_s4 + $0xe8] sm:$0xff]  ;;  %v1820_v22 = vld [vmem:[%s3394_s4 + $0x170] sm:$0xff] }
 0x10e   : > { %1188 = vmatmul.f32.gmra.mxu2 %v1134_v47  ;;  %1889 = vmatpush.msra.mxu0 %v1803_v21  ;;  %v1700_v47 = vld [vmem:[%s3393_s3 + $0x58] sm:$0xff]  ;;  %v1795_v21 = vld [vmem:[%s3394_s4 + $0xa8] sm:$0xff] }
 0x10f   : > { %1670 = vperm.xlu2 %2306, %v2238_v48   ;;  %1832 = vmatpush.msra.mxu3 %v1779_v20  ;;  %v1778_v48 = vld [vmem:[%s3394_s4 + $0x20] sm:$0xff]  ;;  %v1812_v20 = vld [vmem:[%s3394_s4 + $0x130] sm:$0xff] }
 0x110   : > { %1953 = vmatpush.msra.mxu1 %v1820_v22  ;;  %1713 = vmatpush.msra.mxu2 %v1700_v47 }
 0x111   : > { %1833 = vmatpush.msra.mxu3 %v1778_v48  ;;  %1890 = vmatpush.msra.mxu0 %v1802_v24  ;;  %v1692_v48 = vld [vmem:[%s3393_s3 + $0x18] sm:$0xff] }
 0x113   : > { %1891 = vmatpush.msra.mxu0 %v1801_v26 }
 0x114   : > { %1477 = vmatmul.f32.gmra.mxu0 %v1424_v51  ;;  %v1819_v51 = vld [vmem:[%s3394_s4 + $0x168] sm:$0xff] }
 0x115   : > { %1256 = vmatmul.f32.gmra.mxu3 %v1137_v52  ;;  %1542 = vmatmul.f32.gmra.mxu1 %v1425_v53  ;;  %v2187_v52 = vld [vmem:[%s2843_s16 + $0xe0] sm:$0xff]  ;;  %v1699_v53 = vld [vmem:[%s3393_s3 + $0x50] sm:$0xff] }
 0x116   : > { %1191 = vmatmul.f32.gmra.mxu2 %v1136_v25  ;;  %v1777_v25 = vld [vmem:[%s3394_s4 + $0x18] sm:$0xff]  ;;  %1954 = vmatpush.msra.mxu1 %v1819_v51  ;;  %v1147_v62 = vunpack.c.h.bf16 %v2187_v52  ;;  %v1151_v51 = vunpack.c.h.bf16 %v2189_v44 }
 0x117   : > { %1714 = vmatpush.msra.mxu2 %v1699_v53  ;;  %1834 = vmatpush.msra.mxu3 %v1777_v25 }
 0x118   : > { %1955 = vmatpush.msra.mxu1 %v1818_v54  ;;  %1892 = vmatpush.msra.mxu0 %v1800_v5  ;;  %v1150_v54 = vunpack.c.l.bf16 %v2189_v44  ;;  %v1809_v5 = vld [vmem:[%s3394_s4 + $0x118] sm:$0xff] }
 0x11a   : > { %1893 = vmatpush.msra.mxu0 %v1799_v11 }
 0x11c   : > { %1480 = vmatmul.f32.gmra.mxu0 %v1426_v55 }
 0x11d   : > { %1259 = vmatmul.f32.gmra.mxu3 %v1139_v56  ;;  %1545 = vmatmul.f32.gmra.mxu1 %v1427_v27  ;;  %v1434_v56 = vunpack.c.l.bf16 %v2217_v23  ;;  %v1698_v27 = vld [vmem:[%s3393_s3 + $0x48] sm:$0xff] }
 0x11e   : > { %1194 = vmatmul.f32.gmra.mxu2 %v1138_v58  ;;  %v1776_v58 = vld [vmem:[%s3394_s4 + $0x10] sm:$0xff]  ;;  %v1811_v23 = vld [vmem:[%s3394_s4 + $0x128] sm:$0xff] }
 0x11f   : > { %1715 = vmatpush.msra.mxu2 %v1698_v27  ;;  %1835 = vmatpush.msra.mxu3 %v1776_v58  ;;  %v1691_v27 = vld [vmem:[%s3393_s3 + $0x10] sm:$0xff]  ;;  %v1810_v58 = vld [vmem:[%s3394_s4 + $0x120] sm:$0xff] }
 0x121   : > { %v3009_v0 = vpop.f32.mrf.mxu0  ;;  %1716 = vmatpush.msra.mxu2 %v1697_v31  ;;  %1836 = vmatpush.msra.mxu3 %v1775_v6  ;;  %v1792_v6 = vld [vmem:[%s3394_s4 + $0x90] sm:$0xff] }
 0x122   : > { %v3011_v2 = vpop.f32.mrf.mxu1 }
 0x123   : > { %1717 = vmatpush.msra.mxu2 %v1696_v38 }
 0x124   : > { %1483 = vmatmul.f32.gmra.mxu0 %v1428_v29  ;;  %v1817_v29 = vld [vmem:[%s3394_s4 + $0x158] sm:$0xff] }
 0x125   : > { %1262 = vmatmul.f32.gmra.mxu3 %v1141_v1  ;;  %1548 = vmatmul.f32.gmra.mxu1 %v1429_v30 }
 0x126   : > { %1197 = vmatmul.f32.gmra.mxu2 %v1140_v3  ;;  %v1146_v3 = vunpack.c.l.bf16 %v2187_v52  ;;  %1956 = vmatpush.msra.mxu1 %v1817_v29  ;;  %v2190_v29 = vld [vmem:[%s2843_s16 + $0xf8] sm:$0xff] }
 0x127   : > { %1718 = vmatpush.msra.mxu2 %v1695_v61  ;;  %v1152_v61 = vunpack.c.l.bf16 %v2190_v29 }
 0x128   : > { %v907_v33 = vpop.f32.mrf.mxu3 }
 0x129   : > { %v972_v39 = vpop.f32.mrf.mxu2  ;;  %v3029_v50 = vpop.f32.mrf.mxu0  ;;  %1719 = vmatpush.msra.mxu2 %v1694_v14 }
 0x12a   : > { %v3027_v49 = vadd.f32 %v972_v39, %v907_v33  ;;  %v3031_v57 = vpop.f32.mrf.mxu1  ;;  %v1816_v33 = vld [vmem:[%s3394_s4 + $0x150] sm:$0xff]  ;;  %v1774_v39 = vld [vmem:[%s3394_s4] sm:$0xff] }
 0x12b   : > { %1957 = vmatpush.msra.mxu1 %v1816_v33  ;;  %1837 = vmatpush.msra.mxu3 %v1774_v39  ;;  %v1689_v33 = vld [vmem:[%s3393_s3] sm:$0xff]  ;;  %v1153_v39 = vunpack.c.h.bf16 %v2190_v29  ;;  %v800_v29 = vld [vmem:[%s3266_s30 + $0x8] sm:$0xff] }
 0x12c   : > { %1486 = vmatmul.f32.gmra.mxu0 %v1430_v12  ;;  %v2188_v12 = vld [vmem:[%s2843_s16 + $0xe8] sm:$0xff] }
 0x12d   : > { %1265 = vmatmul.f32.gmra.mxu3 %v1143_v34  ;;  %1551 = vmatmul.f32.gmra.mxu1 %v1431_v40  ;;  %v1798_v34 = vld [vmem:[%s3394_s4 + $0xc0] sm:$0xff]  ;;  %v1815_v40 = vld [vmem:[%s3394_s4 + $0x148] sm:$0xff]  ;;  %v1149_v36 = vunpack.c.h.bf16 %v2188_v12 }
 0x12e   : > { %1200 = vmatmul.f32.gmra.mxu2 %v1142_v35  ;;  %1894 = vmatpush.msra.mxu0 %v1798_v34 }
 0x12f   : > { %1958 = vmatpush.msra.mxu1 %v1815_v40 }
 0x130   : > { %v910_v13 = vpop.f32.mrf.mxu3  ;;  %1895 = vmatpush.msra.mxu0 %v1797_v42  ;;  %v1806_v42 = vld [vmem:[%s3394_s4 + $0x100] sm:$0xff] }
 0x131   : > { %v975_v16 = vpop.f32.mrf.mxu2  ;;  %v3070_v45 = vpop.f32.mrf.mxu0  ;;  %1959 = vmatpush.msra.mxu1 %v1814_v8  ;;  %v2221_v8 = vld [vmem:[%s2843_s16 + $0x170] sm:$0xff] }
 0x132   : > { %v3068_v18 = vadd.f32 %v975_v16, %v910_v13  ;;  %v3072_v46 = vpop.f32.mrf.mxu1  ;;  %v1148_v13 = vunpack.c.l.bf16 %v2188_v12  ;;  %v3176_v16 = vpop.permute.xlu0 %1011  ;;  %v1808_v12 = vld [vmem:[%s3394_s4 + $0x110] sm:$0xff] }
 0x133   : > { %1960 = vmatpush.msra.mxu1 %v1813_v15  ;;  %v946_v15 = vadd.f32 %v3011_v2, %v3009_v0 }
 0x134   : > { %1489 = vmatmul.f32.gmra.mxu0 %v1432_v41  ;;  %v3165_v41 = vpop.permute.xlu2 %1308 }
 0x135   : > { %1268 = vmatmul.f32.gmra.mxu3 %v1145_v17  ;;  %1554 = vmatmul.f32.gmra.mxu1 %v1433_v43  ;;  %v2219_v17 = vld [vmem:[%s2843_s16 + $0x160] sm:$0xff]  ;;  %v1796_v43 = vld [vmem:[%s3394_s4 + $0xb0] sm:$0xff]  ;;  %v1089_v2 = vmul.f32 %v3176_v16, %v946_v15 }
 0x136   : > { %1203 = vmatmul.f32.gmra.mxu2 %v1144_v19  ;;  %v1693_v19 = vld [vmem:[%s3393_s3 + $0x20] sm:$0xff]  ;;  %v1438_v47 = vunpack.c.l.bf16 %v2219_v17  ;;  %1896 = vmatpush.msra.mxu0 %v1796_v43  ;;  %v1439_v52 = vunpack.c.h.bf16 %v2219_v17  ;;  %v1442_v43 = vunpack.c.l.bf16 %v2221_v8 }
 0x137   : > { %1720 = vmatpush.msra.mxu2 %v1693_v19  ;;  %1961 = vmatpush.msra.mxu1 %v1812_v20  ;;  %v1443_v20 = vunpack.c.h.bf16 %v2221_v8 }
 0x138   : > { %v913_v55 = vpop.f32.mrf.mxu3  ;;  %1897 = vmatpush.msra.mxu0 %v1795_v21 }
 0x139   : > { %v978_v59 = vpop.f32.mrf.mxu2  ;;  %v3120_v1 = vpop.f32.mrf.mxu0  ;;  %1721 = vmatpush.msra.mxu2 %v1692_v48  ;;  %1962 = vmatpush.msra.mxu1 %v1811_v23  ;;  %v2222_v48 = vld [vmem:[%s2843_s16 + $0x178] sm:$0xff] }
 0x13a   : > { %v3118_v63 = vadd.f32 %v978_v59, %v913_v55  ;;  %v3122_v30 = vpop.f32.mrf.mxu1  ;;  %v3204_v55 = vpop.permute.xlu1 %1016 }
 0x13b   : > { %v3228_v31 = vpop.permute.xlu0 %1303  ;;  %1722 = vmatpush.msra.mxu2 %v1691_v27  ;;  %1963 = vmatpush.msra.mxu1 %v1810_v58  ;;  %v1445_v27 = vunpack.c.h.bf16 %v2222_v48 }
 0x13c   : > { %1492 = vmatmul.f32.gmra.mxu0 %v1434_v56  ;;  %v1794_v56 = vld [vmem:[%s3394_s4 + $0xa0] sm:$0xff]  ;;  %v3215_v59 = vpop.permute.xlu2 %1021 }
 0x13d   : > { %1271 = vmatmul.f32.gmra.mxu3 %v1147_v62  ;;  %1557 = vmatmul.f32.gmra.mxu1 %v1435_v28  ;;  %v2220_v62 = vld [vmem:[%s2843_s16 + $0x168] sm:$0xff]  ;;  %v1793_v28 = vld [vmem:[%s3394_s4 + $0x98] sm:$0xff] }
 0x13e   : > { %1206 = vmatmul.f32.gmra.mxu2 %v1146_v3  ;;  %1898 = vmatpush.msra.mxu0 %v1794_v56  ;;  %v1690_v3 = vld [vmem:[%s3393_s3 + $0x8] sm:$0xff]  ;;  %v1440_v11 = vunpack.c.l.bf16 %v2220_v62  ;;  %v1441_v34 = vunpack.c.h.bf16 %v2220_v62 }
 0x13f   : > { %1723 = vmatpush.msra.mxu2 %v1690_v3  ;;  %1964 = vmatpush.msra.mxu1 %v1809_v5 }
 0x140   : > { %v916_v35 = vpop.f32.mrf.mxu3  ;;  %1899 = vmatpush.msra.mxu0 %v1793_v28 }
 0x141   : > { %v981_v4 = vpop.f32.mrf.mxu2  ;;  %v3161_v10 = vpop.f32.mrf.mxu0  ;;  %1724 = vmatpush.msra.mxu2 %v1689_v33  ;;  %1965 = vmatpush.msra.mxu1 %v1808_v12 }
 0x142   : > { %v3159_v9 = vadd.f32 %v981_v4, %v916_v35  ;;  %v3163_v37 = vpop.f32.mrf.mxu1  ;;  %1900 = vmatpush.msra.mxu0 %v1792_v6  ;;  %v1791_v4 = vld [vmem:[%s3394_s4 + $0x88] sm:$0xff] }
 0x143   : > { %v1601_v44 = vpop.permute.xlu0 %1600 }
 0x144   : > { %1495 = vmatmul.f32.gmra.mxu0 %v1436_v60  ;;  %v3259_v14 = vpop.permute.xlu2 %1026 }
 0x145   : > { %1274 = vmatmul.f32.gmra.mxu3 %v1149_v36  ;;  %1560 = vmatmul.f32.gmra.mxu1 %v1437_v7  ;;  %v1807_v36 = vld [vmem:[%s3394_s4 + $0x108] sm:$0xff]  ;;  %v1596_v7 = vpop.permute.xlu1 %1595 }
 0x146   : > { %1209 = vmatmul.f32.gmra.mxu2 %v1148_v13  ;;  %v1790_v13 = vld [vmem:[%s3394_s4 + $0x80] sm:$0xff]  ;;  %1901 = vmatpush.msra.mxu0 %v1791_v4 }
 0x147   : > { %1966 = vmatpush.msra.mxu1 %v1807_v36 }
 0x148   : > { %v919_v22 = vpop.f32.mrf.mxu3  ;;  %1902 = vmatpush.msra.mxu0 %v1790_v13 }
 0x149   : > { %v984_v24 = vpop.f32.mrf.mxu2  ;;  %v3200_v25 = vpop.f32.mrf.mxu0  ;;  %1967 = vmatpush.msra.mxu1 %v1806_v42 }
 0x14a   : > { %v3198_v53 = vadd.f32 %v984_v24, %v919_v22  ;;  %v3202_v26 = vpop.f32.mrf.mxu1  ;;  %v949_v24 = vadd.f32 %v3031_v57, %v3029_v50  ;;  %v952_v50 = vadd.f32 %v3072_v46, %v3070_v45  ;;  %v955_v45 = vadd.f32 %v3122_v30, %v3120_v1 }
 0x14b   : > { %v1606_v16 = vpop.permute.xlu0 %1605  ;;  %v958_v30 = vadd.f32 %v3163_v37, %v3161_v10  ;;  %v961_v10 = vadd.f32 %v3202_v26, %v3200_v25 }
 0x14c   : > { %1498 = vmatmul.f32.gmra.mxu0 %v1438_v47  ;;  %v799_v47 = vld [vmem:[%s3266_s30] sm:$0xff]  ;;  %v1090_v28 = vmul.f32 %v3204_v55, %v949_v24  ;;  %v1091_v55 = vmul.f32 %v3215_v59, %v952_v50  ;;  %v1092_v42 = vmul.f32 %v3259_v14, %v955_v45  ;;  %v805_v45 = vld [vmem:[%s3266_s30 + $0x30] sm:$0xff] }
 0x14d   : > { %1277 = vmatmul.f32.gmra.mxu3 %v1151_v51  ;;  %1563 = vmatmul.f32.gmra.mxu1 %v1439_v52  ;;  %v1314_v23 = vpop.permute.xlu1 %1313  ;;  %v1444_v52 = vunpack.c.l.bf16 %v2222_v48 }
 0x14e   : > { %1212 = vmatmul.f32.gmra.mxu2 %v1150_v54  ;;  %v1032_v54 = vpop.permute.xlu2 %1031 }
 0x14f   : > { %v1093_v14 = vmul.f32 %v1032_v54, %v958_v30 }
 0x150   : > { %v922_v32 = vpop.f32.mrf.mxu3 }
 0x151   : > { %v987_v38 = vpop.f32.mrf.mxu2  ;;  %v3241_v35 = vpop.f32.mrf.mxu0 }
 0x152   : > { %v3239_v40 = vadd.f32 %v987_v38, %v922_v32  ;;  %v3243_v60 = vpop.f32.mrf.mxu1 }
 0x153   : > { %v964_v25 = vadd.f32 %v3243_v60, %v3241_v35 }
 0x154   : > { %1501 = vmatmul.f32.gmra.mxu0 %v1440_v11 }
 0x155   : > { %1280 = vmatmul.f32.gmra.mxu3 %v1153_v39  ;;  %1566 = vmatmul.f32.gmra.mxu1 %v1441_v34  ;;  %v1319_v5 = vpop.permute.xlu1 %1318  ;;  %v801_v39 = vld [vmem:[%s3266_s30 + $0x10] sm:$0xff]  ;;  %v1611_v34 = vpop.permute.xlu0 %1610 }
 0x156   : > { %1215 = vmatmul.f32.gmra.mxu2 %v1152_v61  ;;  %v1037_v12 = vpop.permute.xlu2 %1036 }
 0x157   : > { %v1094_v50 = vmul.f32 %v1037_v12, %v961_v10 }
 0x158   : > { %v925_v17 = vpop.f32.mrf.mxu3 }
 0x159   : > { %v990_v19 = vpop.f32.mrf.mxu2  ;;  %v3270_v22 = vpop.f32.mrf.mxu0 }
 0x15a   : > { %v3268_v21 = vadd.f32 %v990_v19, %v925_v17  ;;  %v3272_v0 = vpop.f32.mrf.mxu1  ;;  %v802_v17 = vld [vmem:[%s3266_s30 + $0x18] sm:$0xff] }
 0x15b   : > { %v967_v35 = vadd.f32 %v3272_v0, %v3270_v22 }
 0x15c   : > { %1504 = vmatmul.f32.gmra.mxu0 %v1442_v43 }
 0x15d   : > { %1569 = vmatmul.f32.gmra.mxu1 %v1443_v20  ;;  %1838 = vmatmul.f32.vlgmr.msra.gmra.mxu3 %v1089_v2  ;;  %v1324_v59 = vpop.permute.xlu1 %1323  ;;  %v1616_v1 = vpop.permute.xlu0 %1615 }
 0x15e   : > { %1725 = vmatmul.f32.vlgmr.msra.gmra.mxu2 %v799_v47 }
 0x160   : > { %v1236_v51 = vpop.f32.mrf.mxu3 }
 0x161   : > { %v1171_v56 = vpop.f32.mrf.mxu2  ;;  %v3279_v58 = vpop.f32.mrf.mxu0 }
 0x162   : > { %v3281_v62 = vpop.f32.mrf.mxu1  ;;  %v1237_v3 = vadd.f32 %v1236_v51, %v1171_v56  ;;  %v803_v51 = vld [vmem:[%s3266_s30 + $0x20] sm:$0xff] }
 0x163   : > { %v970_v22 = vadd.f32 %v3281_v62, %v3279_v58 }
 0x164   : > { %1507 = vmatmul.f32.gmra.mxu0 %v1444_v52  ;;  %v1381_v32 = vmul.f32 %v3228_v31, %v1237_v3 }
 0x165   : > { %1572 = vmatmul.f32.gmra.mxu1 %v1445_v27  ;;  %1841 = vmatmul.f32.gmra.mxu3 %v1090_v28  ;;  %v1329_v52 = vpop.permute.xlu1 %1328  ;;  %v1621_v28 = vpop.permute.xlu0 %1620 }
 0x166   : > { %1728 = vmatmul.f32.gmra.mxu2 %v800_v29 }
 0x168   : > { %v1239_v57 = vpop.f32.mrf.mxu3 }
 0x169   : > { %v1174_v6 = vpop.f32.mrf.mxu2  ;;  %v1463_v11 = vpop.f32.mrf.mxu0 }
 0x16a   : > { %v1528_v33 = vpop.f32.mrf.mxu1  ;;  %v1240_v4 = vadd.f32 %v1239_v57, %v1174_v6  ;;  %v804_v6 = vld [vmem:[%s3266_s30 + $0x28] sm:$0xff] }
 0x16b   : > { %v1529_v38 = vadd.f32 %v1528_v33, %v1463_v11 }
 0x16c   : > { %1903 = vmatmul.f32.vlgmr.msra.gmra.mxu0 %v1381_v32  ;;  %v1382_v36 = vmul.f32 %v3165_v41, %v1240_v4 }
 0x16d   : > { %v1673_v61 = vmul.f32 %v1596_v7, %v1529_v38  ;;  %1844 = vmatmul.f32.gmra.mxu3 %v1091_v55  ;;  %v1042_v7 = vpop.permute.xlu2 %1041  ;;  %v1334_v11 = vpop.permute.xlu1 %1333 }
 0x16e   : > { %1731 = vmatmul.f32.gmra.mxu2 %v801_v39  ;;  %v1626_v12 = vpop.permute.xlu0 %1625 }
 0x16f   : > { %1968 = vmatmul.f32.vlgmr.msra.gmra.mxu1 %v1673_v61  ;;  %v1095_v61 = vmul.f32 %v1042_v7, %v964_v25  ;;  %v806_v7 = vld [vmem:[%s3266_s30 + $0x38] sm:$0xff] }
 0x170   : > { %v1242_v46 = vpop.f32.mrf.mxu3 }
 0x171   : > { %v1177_v31 = vpop.f32.mrf.mxu2  ;;  %v1466_v8 = vpop.f32.mrf.mxu0 }
 0x172   : > { %v1531_v13 = vpop.f32.mrf.mxu1  ;;  %v1243_v19 = vadd.f32 %v1242_v46, %v1177_v31 }
 0x173   : > { %v1532_v15 = vadd.f32 %v1531_v13, %v1466_v8 }
 0x174   : > { %1906 = vmatmul.f32.gmra.mxu0 %v1382_v36  ;;  %v1383_v2 = vmul.f32 %v1314_v23, %v1243_v19 }
 0x175   : > { %v1674_v43 = vmul.f32 %v1601_v44, %v1532_v15  ;;  %1847 = vmatmul.f32.gmra.mxu3 %v1092_v42  ;;  %v1047_v27 = vpop.permute.xlu2 %1046  ;;  %v1339_v31 = vpop.permute.xlu1 %1338 }
 0x176   : > { %1734 = vmatmul.f32.gmra.mxu2 %v802_v17  ;;  %v1096_v15 = vmul.f32 %v1047_v27, %v967_v35 }
 0x177   : > { %1971 = vmatmul.f32.gmra.mxu1 %v1674_v43  ;;  %v1631_v43 = vpop.permute.xlu0 %1630 }
 0x178   : > { %v1245_v41 = vpop.f32.mrf.mxu3 }
 0x179   : > { %v1180_v20 = vpop.f32.mrf.mxu2  ;;  %v1469_v47 = vpop.f32.mrf.mxu0 }
 0x17a   : > { %v1534_v48 = vpop.f32.mrf.mxu1  ;;  %v1246_v56 = vadd.f32 %v1245_v41, %v1180_v20 }
 0x17b   : > { %v1535_v24 = vadd.f32 %v1534_v48, %v1469_v47 }
 0x17c   : > { %1909 = vmatmul.f32.gmra.mxu0 %v1383_v2  ;;  %v1384_v29 = vmul.f32 %v1319_v5, %v1246_v56 }
 0x17d   : > { %v1675_v44 = vmul.f32 %v1606_v16, %v1535_v24  ;;  %1850 = vmatmul.f32.gmra.mxu3 %v1093_v14  ;;  %v1052_v33 = vpop.permute.xlu2 %1051  ;;  %v1344_v47 = vpop.permute.xlu1 %1343  ;;  %v807_v24 = vld [vmem:[%s3266_s30 + $0x40] sm:$0xff] }
 0x17e   : > { %1737 = vmatmul.f32.gmra.mxu2 %v803_v51  ;;  %v1097_v48 = vmul.f32 %v1052_v33, %v970_v22 }
 0x17f   : > { %1974 = vmatmul.f32.gmra.mxu1 %v1675_v44  ;;  %v1636_v56 = vpop.permute.xlu0 %1635 }
 0x180   : > { %v1248_v37 = vpop.f32.mrf.mxu3 }
 0x181   : > { %v1183_v23 = vpop.f32.mrf.mxu2  ;;  %v1472_v3 = vpop.f32.mrf.mxu0 }
 0x182   : > { %v1537_v54 = vpop.f32.mrf.mxu1  ;;  %v1249_v16 = vadd.f32 %v1248_v37, %v1183_v23 }
 0x183   : > { %v1538_v57 = vadd.f32 %v1537_v54, %v1472_v3 }
 0x184   : > { %1912 = vmatmul.f32.gmra.mxu0 %v1384_v29  ;;  %v1385_v5 = vmul.f32 %v1324_v59, %v1249_v16  ;;  %v808_v29 = vld [vmem:[%s3266_s30 + $0x48] sm:$0xff] }
 0x185   : > { %v1676_v32 = vmul.f32 %v1611_v34, %v1538_v57  ;;  %1853 = vmatmul.f32.gmra.mxu3 %v1094_v50  ;;  %v1057_v42 = vpop.permute.xlu2 %1056  ;;  %v1349_v3 = vpop.permute.xlu1 %1348 }
 0x186   : > { %1740 = vmatmul.f32.gmra.mxu2 %v804_v6 }
 0x187   : > { %1977 = vmatmul.f32.gmra.mxu1 %v1676_v32  ;;  %v1641_v32 = vpop.permute.xlu0 %1640 }
 0x188   : > { %v1251_v26 = vpop.f32.mrf.mxu3 }
 0x189   : > { %v1186_v55 = vpop.f32.mrf.mxu2  ;;  %v1475_v38 = vpop.f32.mrf.mxu0 }
 0x18a   : > { %v1540_v39 = vpop.f32.mrf.mxu1  ;;  %v1252_v46 = vadd.f32 %v1251_v26, %v1186_v55  ;;  %v809_v55 = vld [vmem:[%s3266_s30 + $0x50] sm:$0xff] }
 0x18b   : > { %v1541_v4 = vadd.f32 %v1540_v39, %v1475_v38 }
 0x18c   : > { %1915 = vmatmul.f32.gmra.mxu0 %v1385_v5  ;;  %v1386_v8 = vmul.f32 %v1329_v52, %v1252_v46 }
 0x18d   : > { %v1677_v34 = vmul.f32 %v1616_v1, %v1541_v4  ;;  %1856 = vmatmul.f32.gmra.mxu3 %v1095_v61  ;;  %v1062_v51 = vpop.permute.xlu2 %1061  ;;  %v1354_v39 = vpop.permute.xlu1 %1353 }
 0x18e   : > { %1743 = vmatmul.f32.gmra.mxu2 %v805_v45  ;;  %v1099_v33 = vmul.f32 %v1062_v51, %v3068_v18  ;;  %v812_v51 = vld [vmem:[%s3266_s30 + $0x68] sm:$0xff] }
 0x18f   : > { %1980 = vmatmul.f32.gmra.mxu1 %v1677_v34 }
 0x190   : > { %v1254_v60 = vpop.f32.mrf.mxu3 }
 0x191   : > { %v1189_v36 = vpop.f32.mrf.mxu2  ;;  %v1478_v13 = vpop.f32.mrf.mxu0 }
 0x192   : > { %v1543_v59 = vpop.f32.mrf.mxu1  ;;  %v1255_v1 = vadd.f32 %v1254_v60, %v1189_v36  ;;  %v1646_v60 = vpop.permute.xlu0 %1645 }
 0x193   : > { %v1544_v17 = vadd.f32 %v1543_v59, %v1478_v13 }
 0x194   : > { %1918 = vmatmul.f32.gmra.mxu0 %v1386_v8  ;;  %v1387_v41 = vmul.f32 %v1334_v11, %v1255_v1 }
 0x195   : > { %v1678_v19 = vmul.f32 %v1621_v28, %v1544_v17  ;;  %1859 = vmatmul.f32.gmra.mxu3 %v1096_v15  ;;  %v1098_v28 = vmul.f32 %v1057_v42, %v3027_v49  ;;  %v1067_v57 = vpop.permute.xlu2 %1066  ;;  %v1359_v59 = vpop.permute.xlu1 %1358 }
 0x196   : > { %1746 = vmatmul.f32.gmra.mxu2 %v806_v7  ;;  %v1100_v35 = vmul.f32 %v1067_v57, %v3118_v63  ;;  %v811_v63 = vld [vmem:[%s3266_s30 + $0x60] sm:$0xff] }
 0x197   : > { %1983 = vmatmul.f32.gmra.mxu1 %v1678_v19 }
 0x198   : > { %v1257_v0 = vpop.f32.mrf.mxu3 }
 0x199   : > { %v1192_v30 = vpop.f32.mrf.mxu2  ;;  %v1481_v20 = vpop.f32.mrf.mxu0 }
 0x19a   : > { %v1546_v2 = vpop.f32.mrf.mxu1  ;;  %v1258_v44 = vadd.f32 %v1257_v0, %v1192_v30  ;;  %v1651_v22 = vpop.permute.xlu0 %1650 }
 0x19b   : > { %v1547_v14 = vadd.f32 %v1546_v2, %v1481_v20 }
 0x19c   : > { %1921 = vmatmul.f32.gmra.mxu0 %v1387_v41  ;;  %v1388_v27 = vmul.f32 %v1339_v31, %v1258_v44  ;;  %v810_v31 = vld [vmem:[%s3266_s30 + $0x58] sm:$0xff] }
 0x19d   : > { %v1679_v52 = vmul.f32 %v1626_v12, %v1547_v14  ;;  %1862 = vmatmul.f32.gmra.mxu3 %v1097_v48  ;;  %v1072_v61 = vpop.permute.xlu2 %1071 }
 0x19e   : > { %1749 = vmatmul.f32.gmra.mxu2 %v807_v24  ;;  %v1364_v24 = vpop.permute.xlu1 %1363 }
 0x19f   : > { %1986 = vmatmul.f32.gmra.mxu1 %v1679_v52 }
 0x1a0   : > { %v1260_v58 = vpop.f32.mrf.mxu3 }
 0x1a1   : > { %v1195_v62 = vpop.f32.mrf.mxu2  ;;  %v1484_v10 = vpop.f32.mrf.mxu0 }
 0x1a2   : > { %v1549_v37 = vpop.f32.mrf.mxu1  ;;  %v1261_v50 = vadd.f32 %v1260_v58, %v1195_v62  ;;  %v1656_v58 = vpop.permute.xlu0 %1655 }
 0x1a3   : > { %v1550_v23 = vadd.f32 %v1549_v37, %v1484_v10 }
 0x1a4   : > { %1924 = vmatmul.f32.gmra.mxu0 %v1388_v27  ;;  %v1389_v11 = vmul.f32 %v1344_v47, %v1261_v50 }
 0x1a5   : > { %v1680_v54 = vmul.f32 %v1631_v43, %v1550_v23  ;;  %1865 = vmatmul.f32.gmra.mxu3 %v1098_v28  ;;  %v1101_v43 = vmul.f32 %v1072_v61, %v3159_v9  ;;  %v1077_v1 = vpop.permute.xlu2 %1076 }
 0x1a6   : > { %1752 = vmatmul.f32.gmra.mxu2 %v808_v29  ;;  %v1102_v14 = vmul.f32 %v1077_v1, %v3198_v53  ;;  %v813_v29 = vld [vmem:[%s3266_s30 + $0x70] sm:$0xff] }
 0x1a7   : > { %1989 = vmatmul.f32.gmra.mxu1 %v1680_v54 }
 0x1a8   : > { %v1263_v6 = vpop.f32.mrf.mxu3 }
 0x1a9   : > { %v1198_v16 = vpop.f32.mrf.mxu2  ;;  %v1487_v25 = vpop.f32.mrf.mxu0 }
 0x1aa   : > { %v1552_v26 = vpop.f32.mrf.mxu1  ;;  %v1264_v38 = vadd.f32 %v1263_v6, %v1198_v16 }
 0x1ab   : > { %v1553_v49 = vadd.f32 %v1552_v26, %v1487_v25 }
 0x1ac   : > { %1927 = vmatmul.f32.gmra.mxu0 %v1389_v11  ;;  %v1390_v45 = vmul.f32 %v1349_v3, %v1264_v38  ;;  %v1369_v3 = vpop.permute.xlu1 %1368 }
 0x1ad   : > { %v1681_v5 = vmul.f32 %v1636_v56, %v1553_v49  ;;  %1868 = vmatmul.f32.gmra.mxu3 %v1099_v33  ;;  %v1082_v44 = vpop.permute.xlu2 %1081  ;;  %v814_v49 = vld [vmem:[%s3266_s30 + $0x78] sm:$0xff] }
 0x1ae   : > { %1755 = vmatmul.f32.gmra.mxu2 %v809_v55  ;;  %v1103_v23 = vmul.f32 %v1082_v44, %v3239_v40 }
 0x1af   : > { %1992 = vmatmul.f32.gmra.mxu1 %v1681_v5 }
 0x1b0   : > { %v1266_v12 = vpop.f32.mrf.mxu3 }
 0x1b1   : > { %v1201_v4 = vpop.f32.mrf.mxu2  ;;  %v1490_v34 = vpop.f32.mrf.mxu0 }
 0x1b2   : > { %v1555_v46 = vpop.f32.mrf.mxu1  ;;  %v1267_v8 = vadd.f32 %v1266_v12, %v1201_v4 }
 0x1b3   : > { %v1556_v18 = vadd.f32 %v1555_v46, %v1490_v34 }
 0x1b4   : > { %1930 = vmatmul.f32.gmra.mxu0 %v1390_v45  ;;  %v1391_v15 = vmul.f32 %v1354_v39, %v1267_v8  ;;  %v1374_v38 = vpop.permute.xlu1 %1373 }
 0x1b5   : > { %v1682_v36 = vmul.f32 %v1641_v32, %v1556_v18  ;;  %1871 = vmatmul.f32.gmra.mxu3 %v1100_v35  ;;  %v1087_v57 = vpop.permute.xlu2 %1086  ;;  %v1661_v32 = vpop.permute.xlu0 %1660 }
 0x1b6   : > { %1758 = vmatmul.f32.gmra.mxu2 %v810_v31  ;;  %v1104_v33 = vmul.f32 %v1087_v57, %v3268_v21 }
 0x1b7   : > { %1995 = vmatmul.f32.gmra.mxu1 %v1682_v36 }
 0x1b8   : > { %v1269_v13 = vpop.f32.mrf.mxu3 }
 0x1b9   : > { %v1204_v42 = vpop.f32.mrf.mxu2  ;;  %v1493_v17 = vpop.f32.mrf.mxu0 }
 0x1ba   : > { %v1558_v7 = vpop.f32.mrf.mxu1  ;;  %v1270_v30 = vadd.f32 %v1269_v13, %v1204_v42 }
 0x1bb   : > { %v1559_v19 = vadd.f32 %v1558_v7, %v1493_v17  ;;  %v3327_v17 = vld [vmem:[%s3395_s5] ss:$0 sm:$0xff] }
 0x1bc   : > { %1933 = vmatmul.f32.gmra.mxu0 %v1391_v15  ;;  %v1392_v2 = vmul.f32 %v1359_v59, %v1270_v30  ;;  %v1379_v18 = vpop.permute.xlu1 %1378 }
 0x1bd   : > { %v1683_v0 = vmul.f32 %v1646_v60, %v1559_v19  ;;  %1874 = vmatmul.f32.gmra.mxu3 %v1101_v43  ;;  %v1666_v46 = vpop.permute.xlu0 %1665  ;;  %v1671_v42 = vpop.permute.xlu2 %1670 }
 0x1be   : > { %1761 = vmatmul.f32.gmra.mxu2 %v811_v63 }
 0x1bf   : > { %1998 = vmatmul.f32.gmra.mxu1 %v1683_v0 }
 0x1c0   : > { %v1272_v41 = vpop.f32.mrf.mxu3 }
 0x1c1   : > { %v1207_v20 = vpop.f32.mrf.mxu2  ;;  %v1496_v47 = vpop.f32.mrf.mxu0 }
 0x1c2   : > { %v1561_v48 = vpop.f32.mrf.mxu1  ;;  %v1273_v56 = vadd.f32 %v1272_v41, %v1207_v20 }
 0x1c3   : > { %v1562_v9 = vadd.f32 %v1561_v48, %v1496_v47 }
 0x1c4   : > { %1936 = vmatmul.f32.gmra.mxu0 %v1392_v2  ;;  %v1393_v10 = vmul.f32 %v1364_v24, %v1273_v56 }
 0x1c5   : > { %v1684_v52 = vmul.f32 %v1651_v22, %v1562_v9  ;;  %1877 = vmatmul.f32.gmra.mxu3 %v1102_v14 }
 0x1c6   : > { %1764 = vmatmul.f32.gmra.mxu2 %v812_v51 }
 0x1c7   : > { %2001 = vmatmul.f32.gmra.mxu1 %v1684_v52 }
 0x1c8   : > { %v1275_v62 = vpop.f32.mrf.mxu3 }
 0x1c9   : > { %v1210_v27 = vpop.f32.mrf.mxu2  ;;  %v1499_v37 = vpop.f32.mrf.mxu0 }
 0x1ca   : > { %v1564_v28 = vpop.f32.mrf.mxu1  ;;  %v1276_v50 = vadd.f32 %v1275_v62, %v1210_v27 }
 0x1cb   : > { %v1565_v53 = vadd.f32 %v1564_v28, %v1499_v37 }
 0x1cc   : > { %1939 = vmatmul.f32.gmra.mxu0 %v1393_v10  ;;  %v1394_v11 = vmul.f32 %v1369_v3, %v1276_v50 }
 0x1cd   : > { %v1685_v54 = vmul.f32 %v1656_v58, %v1565_v53  ;;  %1880 = vmatmul.f32.gmra.mxu3 %v1103_v23 }
 0x1ce   : > { %1767 = vmatmul.f32.gmra.mxu2 %v813_v29 }
 0x1cf   : > { %2004 = vmatmul.f32.gmra.mxu1 %v1685_v54 }
 0x1d0   : > { %v1278_v6 = vpop.f32.mrf.mxu3 }
 0x1d1   : > { %v1213_v16 = vpop.f32.mrf.mxu2  ;;  %v1502_v25 = vpop.f32.mrf.mxu0 }
 0x1d2   : > { %v1567_v26 = vpop.f32.mrf.mxu1  ;;  %v1279_v5 = vadd.f32 %v1278_v6, %v1213_v16 }
 0x1d3   : > { %v1568_v40 = vadd.f32 %v1567_v26, %v1502_v25 }
 0x1d4   : > { %1942 = vmatmul.f32.gmra.mxu0 %v1394_v11  ;;  %v1395_v61 = vmul.f32 %v1374_v38, %v1279_v5 }
 0x1d5   : > { %v1686_v55 = vmul.f32 %v1661_v32, %v1568_v40  ;;  %1883 = vmatmul.f32.gmra.mxu3 %v1104_v33 }
 0x1d6   : > { %1770 = vmatmul.f32.gmra.mxu2 %v814_v49 }
 0x1d7   : > { %2007 = vmatmul.f32.gmra.mxu1 %v1686_v55 }
 0x1d8   : > { %v1281_v39 = vpop.f32.mrf.mxu3 }
 0x1d9   : > { %v1216_v12 = vpop.f32.mrf.mxu2  ;;  %v1505_v4 = vpop.f32.mrf.mxu0 }
 0x1da   : > { %v1570_v45 = vpop.f32.mrf.mxu1  ;;  %v1282_v60 = vadd.f32 %v1281_v39, %v1216_v12 }
 0x1db   : > { %v1571_v34 = vadd.f32 %v1570_v45, %v1505_v4 }
 0x1dc   : > { %1945 = vmatmul.f32.gmra.mxu0 %v1395_v61  ;;  %v1396_v36 = vmul.f32 %v1379_v18, %v1282_v60 }
 0x1dd   : > { %v1687_v35 = vmul.f32 %v1666_v46, %v1571_v34 }
 0x1df   : > { %2010 = vmatmul.f32.gmra.mxu1 %v1687_v35 }
 0x1e0   : > { %v1839_v21 = vpop.f32.mrf.mxu3 }
 0x1e1   : > { %v1726_v31 = vpop.f32.mrf.mxu2  ;;  %v1508_v8 = vpop.f32.mrf.mxu0 }
 0x1e2   : > { %v1573_v13 = vpop.f32.mrf.mxu1  ;;  %v1727_v1 = vadd.f32 %v3327_v17, %v1726_v31 }
 0x1e3   : > { %v1574_v59 = vadd.f32 %v1573_v13, %v1508_v8 }
 0x1e4   : > { %1948 = vmatmul.f32.gmra.mxu0 %v1396_v36 }
 0x1e5   : > { %v1688_v15 = vmul.f32 %v1671_v42, %v1574_v59 }
 0x1e7   : > { %2013 = vmatmul.f32.gmra.mxu1 %v1688_v15 }
 0x1e8   : > { %v1842_v7 = vpop.f32.mrf.mxu3 }
 0x1e9   : > { %v1729_v43 = vpop.f32.mrf.mxu2  ;;  %v1904_v19 = vpop.f32.mrf.mxu0 }
 0x1ea   : > { %v1905_v63 = vadd.f32 %v1904_v19, %v1839_v21  ;;  %v1730_v48 = vadd.f32 %v3327_v17, %v1729_v43 }
 0x1ec   : > { %v1969_v22 = vpop.f32.mrf.mxu1 }
 0x1ed   : > { %v1970_v0 = vadd.f32 %v1969_v22, %v1905_v63 }
 0x1ef   : > { %v3330_v30 = vadd.f32 %v1970_v0, %v1727_v1 }
 0x1f0   : > { %v1845_v41 = vpop.f32.mrf.mxu3 }
 0x1f1   : > { %v1732_v20 = vpop.f32.mrf.mxu2  ;;  %v1907_v2 = vpop.f32.mrf.mxu0 }
 0x1f2   : > { %v1908_v47 = vadd.f32 %v1907_v2, %v1842_v7  ;;  %v1733_v58 = vadd.f32 %v3327_v17, %v1732_v20 }
 0x1f4   : > { %v1972_v14 = vpop.f32.mrf.mxu1 }
 0x1f5   : > { %v1973_v24 = vadd.f32 %v1972_v14, %v1908_v47 }
 0x1f7   : > { %v3333_v9 = vadd.f32 %v1973_v24, %v1730_v48 }
 0x1f8   : > { %v1848_v51 = vpop.f32.mrf.mxu3 }
 0x1f9   : > { %v1735_v52 = vpop.f32.mrf.mxu2  ;;  %v1910_v44 = vpop.f32.mrf.mxu0 }
 0x1fa   : > { %v1911_v56 = vadd.f32 %v1910_v44, %v1845_v41  ;;  %v1736_v29 = vadd.f32 %v3327_v17, %v1735_v52 }
 0x1fc   : > { %v1975_v62 = vpop.f32.mrf.mxu1 }
 0x1fd   : > { %v1976_v27 = vadd.f32 %v1975_v62, %v1911_v56 }
 0x1ff   : > { %v3336_v10 = vadd.f32 %v1976_v27, %v1733_v58 }
 0x200   : > { %v1851_v37 = vpop.f32.mrf.mxu3 }
 0x201   : > { %v1738_v28 = vpop.f32.mrf.mxu2  ;;  %v1913_v23 = vpop.f32.mrf.mxu0 }
 0x202   : > { %v1914_v53 = vadd.f32 %v1913_v23, %v1848_v51  ;;  %v1739_v11 = vadd.f32 %v3327_v17, %v1738_v28 }
 0x204   : > { %v1978_v3 = vpop.f32.mrf.mxu1 }
 0x205   : > { %v1979_v54 = vadd.f32 %v1978_v3, %v1914_v53 }
 0x207   : > { %v3339_v50 = vadd.f32 %v1979_v54, %v1736_v29 }
 0x208   : > { %v1854_v57 = vpop.f32.mrf.mxu3 }
 0x209   : > { %v1741_v6 = vpop.f32.mrf.mxu2  ;;  %v1916_v32 = vpop.f32.mrf.mxu0 }
 0x20a   : > { %v1917_v16 = vadd.f32 %v1916_v32, %v1851_v37  ;;  %v1742_v38 = vadd.f32 %v3327_v17, %v1741_v6 }
 0x20c   : > { %v1981_v25 = vpop.f32.mrf.mxu1 }
 0x20d   : > { %v1982_v26 = vadd.f32 %v1981_v25, %v1917_v16 }
 0x20f   : > { %v3342_v33 = vadd.f32 %v1982_v26, %v1739_v11 }
 0x210   : > { %v1857_v40 = vpop.f32.mrf.mxu3 }
 0x211   : > { %v1744_v49 = vpop.f32.mrf.mxu2  ;;  %v1919_v55 = vpop.f32.mrf.mxu0 }
 0x212   : > { %v1920_v5 = vadd.f32 %v1919_v55, %v1854_v57  ;;  %v1745_v35 = vadd.f32 %v3327_v17, %v1744_v49 }
 0x214   : > { %v1984_v39 = vpop.f32.mrf.mxu1 }
 0x215   : > { %v1985_v12 = vadd.f32 %v1984_v39, %v1920_v5 }
 0x217   : > { %v3345_v61 = vadd.f32 %v1985_v12, %v1742_v38 }
 0x218   : > { %v1860_v4 = vpop.f32.mrf.mxu3 }
 0x219   : > { %v1747_v45 = vpop.f32.mrf.mxu2  ;;  %v1922_v34 = vpop.f32.mrf.mxu0 }
 0x21a   : > { %v1923_v46 = vadd.f32 %v1922_v34, %v1857_v40  ;;  %v1748_v59 = vadd.f32 %v3327_v17, %v1747_v45 }
 0x21c   : > { %v1987_v60 = vpop.f32.mrf.mxu1 }
 0x21d   : > { %v1988_v21 = vadd.f32 %v1987_v60, %v1923_v46 }
 0x21f   : > { %v3348_v18 = vadd.f32 %v1988_v21, %v1745_v35 }
 0x220   : > { %v1863_v31 = vpop.f32.mrf.mxu3 }
 0x221   : > { %v1750_v36 = vpop.f32.mrf.mxu2  ;;  %v1925_v8 = vpop.f32.mrf.mxu0 }
 0x222   : > { %v1926_v13 = vadd.f32 %v1925_v8, %v1860_v4  ;;  %v1751_v22 = vadd.f32 %v3327_v17, %v1750_v36 }
 0x224   : > { %v1990_v42 = vpop.f32.mrf.mxu1 }
 0x225   : > { %v1991_v15 = vadd.f32 %v1990_v42, %v1926_v13 }
 0x227   : > { %v3351_v7 = vadd.f32 %v1991_v15, %v1748_v59 }
 0x228   : > { %v1866_v43 = vpop.f32.mrf.mxu3 }
 0x229   : > { %v1753_v19 = vpop.f32.mrf.mxu2  ;;  %v1928_v63 = vpop.f32.mrf.mxu0 }
 0x22a   : > { %v1929_v1 = vadd.f32 %v1928_v63, %v1863_v31 }
 0x22c   : > { %v1993_v0 = vpop.f32.mrf.mxu1 }
 0x22d   : > { %v1994_v41 = vadd.f32 %v1993_v0, %v1929_v1 }
 0x22f   : > { %v3354_v20 = vadd.f32 %v1994_v41, %v1751_v22  ;;  %v1754_v41 = vadd.f32 %v3327_v17, %v1753_v19  ;;  %v2039_v19 = vmax.f32 %v3348_v18, 0.0  ;;  %v2034_v18 = vmax.f32 %v3333_v9, 0.0 }
 0x230   : > { %v1869_v2 = vpop.f32.mrf.mxu3 }
 0x231   : > { %v1756_v47 = vpop.f32.mrf.mxu2  ;;  %v1931_v48 = vpop.f32.mrf.mxu0 }
 0x232   : > { %v1932_v8 = vadd.f32 %v1931_v48, %v1866_v43  ;;  %v1757_v63 = vadd.f32 %v3327_v17, %v1756_v47 }
 0x234   : > { %v1996_v14 = vpop.f32.mrf.mxu1 }
 0x238   : > { %v1872_v51 = vpop.f32.mrf.mxu3 }
 0x239   : > { %v1759_v24 = vpop.f32.mrf.mxu2  ;;  %v1934_v52 = vpop.f32.mrf.mxu0 }
 0x23a   : > { %v1935_v35 = vadd.f32 %v1934_v52, %v1869_v2  ;;  %v1760_v13 = vadd.f32 %v3327_v17, %v1759_v24  ;;  %v1997_v2 = vadd.f32 %v1996_v14, %v1932_v8  ;;  %v2038_v14 = vmax.f32 %v3345_v61, 0.0 }
 0x23b   : > { %v2033_v61 = vmax.f32 %v3330_v30, 0.0 }
 0x23c   : > { %v1999_v44 = vpop.f32.mrf.mxu1  ;;  %v2026_v48 = vadd.f32 %v1997_v2, %v1754_v41 }
 0x23d   : > { %v2000_v1 = vadd.f32 %v1999_v44, %v1935_v35  ;;  %v2041_v44 = vmax.f32 %v3354_v20, 0.0  ;;  %v2035_v20 = vmax.f32 %v3336_v10, 0.0 }
 0x23e   : > { %v2042_v47 = vmax.f32 %v2026_v48, 0.0 }
 0x240   : > { %v1875_v62 = vpop.f32.mrf.mxu3 }
 0x241   : > { %v1937_v56 = vpop.f32.mrf.mxu0  ;;  %v1762_v58 = vpop.f32.mrf.mxu2 }
 0x242   : > { %v1938_v4 = vadd.f32 %v1937_v56, %v1872_v51  ;;  %v1763_v60 = vadd.f32 %v3327_v17, %v1762_v58  ;;  %v2027_v56 = vadd.f32 %v2000_v1, %v1757_v63 }
 0x244   : > { %v2002_v27 = vpop.f32.mrf.mxu1  ;;  %v2043_v58 = vmax.f32 %v2027_v56, 0.0 }
 0x245   : > { %v2003_v59 = vadd.f32 %v2002_v27, %v1938_v4  ;;  %v2036_v27 = vmax.f32 %v3339_v50, 0.0 }
 0x247   : > { %v2028_v51 = vadd.f32 %v2003_v59, %v1760_v13 }
 0x248   : > { %v1878_v53 = vpop.f32.mrf.mxu3 }
 0x249   : > { %v1940_v37 = vpop.f32.mrf.mxu0  ;;  %v1765_v23 = vpop.f32.mrf.mxu2  ;;  %v2044_v24 = vmax.f32 %v2028_v51, 0.0 }
 0x24a   : > { %v1941_v26 = vadd.f32 %v1940_v37, %v1875_v62  ;;  %v1766_v45 = vadd.f32 %v3327_v17, %v1765_v23  ;;  %v2037_v62 = vmax.f32 %v3342_v33, 0.0 }
 0x24c   : > { %v2005_v28 = vpop.f32.mrf.mxu1 }
 0x24d   : > { %v2006_v21 = vadd.f32 %v2005_v28, %v1941_v26 }
 0x24f   : > { %v2029_v22 = vadd.f32 %v2006_v21, %v1763_v60 }
 0x250   : > { %v1881_v57 = vpop.f32.mrf.mxu3 }
 0x251   : > { %v1943_v29 = vpop.f32.mrf.mxu0  ;;  %v1768_v54 = vpop.f32.mrf.mxu2  ;;  %v2045_v43 = vmax.f32 %v2029_v22, 0.0 }
 0x252   : > { %v1944_v25 = vadd.f32 %v1943_v29, %v1878_v53  ;;  %v1769_v55 = vadd.f32 %v3327_v17, %v1768_v54 }
 0x254   : > { %v2008_v3 = vpop.f32.mrf.mxu1 }
 0x255   : > { %v2009_v34 = vadd.f32 %v2008_v3, %v1944_v25 }
 0x257   : > { %v2030_v42 = vadd.f32 %v2009_v34, %v1766_v45 }
 0x258   : > { %v1884_v40 = vpop.f32.mrf.mxu3 }
 0x259   : > { %v1946_v6 = vpop.f32.mrf.mxu0  ;;  %v1771_v11 = vpop.f32.mrf.mxu2  ;;  %v2046_v52 = vmax.f32 %v2030_v42, 0.0 }
 0x25a   : > { %v1947_v16 = vadd.f32 %v1946_v6, %v1881_v57  ;;  %v1772_v39 = vadd.f32 %v3327_v17, %v1771_v11  ;;  %v2040_v17 = vmax.f32 %v3351_v7, 0.0  ;;  %v2049_v7 = vld [vmem:[%s760_s13] sm:$0xff] }
 0x25c   : > { %v2011_v32 = vpop.f32.mrf.mxu1 }
 0x25d   : > { %v2012_v5 = vadd.f32 %v2011_v32, %v1947_v16 }
 0x25f   : > { %v2031_v31 = vadd.f32 %v2012_v5, %v1769_v55 }
 0x261   : > { %v1949_v49 = vpop.f32.mrf.mxu0  ;;  %v2047_v0 = vmax.f32 %v2031_v31, 0.0 }
 0x262   : > { %v1950_v38 = vadd.f32 %v1949_v49, %v1884_v40 }
 0x264   : > { %v2014_v12 = vpop.f32.mrf.mxu1 }
 0x265   : > { %v2015_v46 = vadd.f32 %v2014_v12, %v1950_v38 }
 0x267   : > { %v2032_v36 = vadd.f32 %v2015_v46, %v1772_v39 }
 0x269   : > { %v2048_v15 = vmax.f32 %v2032_v36, 0.0 }
 0x26b   : > { %2050 = vmatpush.msrb.mxu2 %v2048_v15 }
 0x26d   : > { %2051 = vmatpush.msrb.mxu2 %v2047_v0 }
 0x26f   : > { %2052 = vmatpush.msrb.mxu2 %v2046_v52 }
 0x271   : > { %2053 = vmatpush.msrb.mxu2 %v2045_v43 }
 0x273   : > { %2054 = vmatpush.msrb.mxu2 %v2044_v24 }
 0x275   : > { %2055 = vmatpush.msrb.mxu2 %v2043_v58 }
 0x277   : > { %2056 = vmatpush.msrb.mxu2 %v2042_v47 }
 0x279   : > { %2057 = vmatpush.msrb.mxu2 %v2041_v44 }
 0x27b   : > { %2058 = vmatpush.msrb.mxu2 %v2040_v17 }
 0x27d   : > { %2059 = vmatpush.msrb.mxu2 %v2039_v19 }
 0x27f   : > { %2060 = vmatpush.msrb.mxu2 %v2038_v14 }
 0x281   : > { %2061 = vmatpush.msrb.mxu2 %v2037_v62 }
 0x283   : > { %2062 = vmatpush.msrb.mxu2 %v2036_v27 }
 0x285   : > { %2063 = vmatpush.msrb.mxu2 %v2035_v20 }
 0x287   : > { %2064 = vmatpush.msrb.mxu2 %v2034_v18 }
 0x289   : > { %2065 = vmatpush.msrb.mxu2 %v2033_v61 }
 0x28a   : > { %2066 = vmatmul.f32.vlgmr.msrb.gmra.mxu2 %v2049_v7 }
 0x30d   : > { %v2067_v50 = vpop.f32.mrf.mxu2 }
 0x30e   : > { %2070 = vst [vmem:[%s764_s27] sm:$0xff] %v2067_v50 }
 0x30f PF: > { %p14_p9 = scmp.ge.s32.totalorder %s2392_s28, 4   ;;  %s3399_s24 = smov %s2326_s25 }
 0x310   : > { %s3400_s25 = smov %s2401_s8  ;;  %s3401_s26 = smov %s2392_s28 }
 0x311   :  { %16 = sbr.rel (!%p14_p9) target bundleno = 2 (0x2), region = 175 }

</bundles_post_ra>
